<compile_context>
chip_gen: v5e
topology: v5e:2x2
jax: 0.10.0
libtpu: 0.0.40
codegen_flags: <defaults>
</compile_context>

<pallas_src>
import jax
import jax.numpy as jnp
from jax.experimental import pallas as pl
from jax.experimental.pallas import tpu as pltpu

T = 20
DMODEL = 512      # reference module default


def build_pos_enc_table(t=T, dmodel=DMODEL):
    """Deterministic parameter init, mirroring torch pos_enc() exactly."""
    pos = jnp.arange(t, dtype=jnp.float32)[:, None]                 # (T, 1)
    col = jnp.arange(dmodel, dtype=jnp.float32)                     # (D,)
    denom = jnp.power(10000.0, 2.0 * col / float(dmodel))           # (D,)
    ang = pos / denom                                               # (T, D)
    is_even = (jnp.arange(dmodel) % 2) == 0
    return jnp.where(is_even[None, :], jnp.sin(ang), jnp.cos(ang)).astype(jnp.float32)


def _gather_kernel(idx_ref, emb_ref, out_ref):
    # idx_ref : (r_blk, 128) int32, lane-dense block of positions
    # emb_ref : (t_pad, D)   zero-padded table, resident in VMEM every step
    # out_ref : (r_blk*128, D) lane/sublane-dense output tile
    t_pad = emb_ref.shape[0]
    emb = emb_ref[...]                                              # hoisted
    # iota_t[t, c] = t  (sublane index); built once per block.
    iota_t = jax.lax.broadcasted_iota(jnp.int32, (t_pad, 128), 0)
    r_blk = idx_ref.shape[0]
    for r in range(r_blk):                    # small static unroll (<= 4)
        idx_row = idx_ref[r:r + 1, :]                               # (1, 128)
        # Transposed one-hot: oh_t[t, c] = (idx_row[c] == t).  Sublane
        # broadcast of a lane-dense row -> no lanes->sublanes relayout needed.
        oh_t = (iota_t == idx_row).astype(jnp.float32)              # (t_pad, 128)
        # out_chunk[c, d] = sum_t oh_t[t, c] * emb[t, d]  (TN matmul on MXU).
        chunk = jax.lax.dot_general(
            oh_t, emb, (((0,), (0,)), ((), ())),
            preferred_element_type=jnp.float32,
            precision=jax.lax.Precision.HIGHEST)                    # exact gather
        out_ref[r * 128:(r + 1) * 128, :] = chunk.astype(out_ref.dtype)


def positional_enc_forward(inputs, embedding):
    """inputs: integer array of any shape, values in [0, T).
       returns float32 array of shape inputs.shape + (dmodel,)."""
    t, d = embedding.shape

    # Zero-pad the table rows once to the MXU contraction width (>= 128).
    t_pad = ((max(t, 128) + 127) // 128) * 128
    emb_pad = jnp.pad(embedding, ((0, t_pad - t), (0, 0)))

    idx_flat = inputs.reshape(-1).astype(jnp.int32)
    idx_flat = jnp.clip(idx_flat, 0, t - 1)                  # guard OOB indices
    n = idx_flat.shape[0]
    n_pad = ((n + 127) // 128) * 128                         # lane-dense rows of 128
    idx_pad = jnp.pad(idx_flat, (0, n_pad - n))

    # Right-size the block: largest candidate that divides n_pad (all are
    # multiples of 128, so output blocks stay sublane/lane aligned).
    block = 128
    for cand in (512, 384, 256, 128):
        if n_pad % cand == 0:
            block = cand
            break
    r_blk = block // 128
    n_blocks = n_pad // block

    # Lane-dense index layout: (n_blocks, r_blk, 128), contiguous 2 KiB DMAs.
    idx3 = idx_pad.reshape(n_blocks, r_blk, 128)

    out_flat = pl.pallas_call(
        _gather_kernel,
        out_shape=jax.ShapeDtypeStruct((n_pad, d), jnp.float32),
        grid_spec=pltpu.PrefetchScalarGridSpec(
            num_scalar_prefetch=0,
            grid=(n_blocks,),
            in_specs=[
                pl.BlockSpec((None, r_blk, 128), lambda i: (i, 0, 0)),  # indices
                pl.BlockSpec((t_pad, d), lambda i: (0, 0)),             # resident table
            ],
            out_specs=pl.BlockSpec((block, d), lambda i: (i, 0)),
        ),
        compiler_params=pltpu.CompilerParams(
            dimension_semantics=("parallel",)),
        cost_estimate=pl.CostEstimate(
            flops=2 * n_pad * t_pad * d,
            transcendentals=0,
            bytes_accessed=n_pad * 4 + n_pad * d * 4 + t_pad * d * 4),
    )(idx3, emb_pad)

    if n != n_pad:                       # skip the tail-slice copy when exact
        out_flat = out_flat[:n]
    return out_flat.reshape(inputs.shape + (d,))


if __name__ == "__main__":
    key = jax.random.PRNGKey(0)

    embedding = build_pos_enc_table(T, DMODEL)          # (20, 512) float32

    # Test 1: small batch of position-id sequences (module-typical shape).
    inputs = jax.random.randint(key, (2, 8), 0, T, dtype=jnp.int32)
    out = positional_enc_forward(inputs, embedding)
    out = jax.block_until_ready(out)
    ref = embedding[inputs]
    assert out.shape == inputs.shape + (DMODEL,), out.shape
    assert out.dtype == jnp.float32
    assert jnp.allclose(out, ref, rtol=1e-6, atol=1e-6), "mismatch vs reference"

    # Test 2: larger input exercising a multi-step grid (n_pad=1152, block=384).
    key2 = jax.random.PRNGKey(1)
    inputs2 = jax.random.randint(key2, (2, 520), 0, T, dtype=jnp.int32)
    out2 = jax.block_until_ready(positional_enc_forward(inputs2, embedding))
    ref2 = embedding[inputs2]
    assert out2.shape == inputs2.shape + (DMODEL,), out2.shape
    assert jnp.allclose(out2, ref2, rtol=1e-6, atol=1e-6), "mismatch vs reference (test 2)"

    print("KERNEL_OK")
</pallas_src>

<mosaic_0001>
module attributes {stable_mosaic.version = 11 : i64} {
  func.func @_gather_kernel(%arg0: i32, %arg1: memref<1x1x128xi32, #tpu.memory_space<vmem>>, %arg2: memref<128x512xf32, #tpu.memory_space<vmem>>, %arg3: memref<128x512xf32, #tpu.memory_space<vmem>>) attributes {dimension_semantics = [#tpu.dimension_semantics<parallel>], iteration_bounds = array<i64: 1>, scalar_prefetch = 0 : i64, scratch_operands = 0 : i64, tpu.core_type = #tpu.core_type<tc>, window_params = [{transform_indices = @transform_0, window_bounds = array<i64: 1, 1, 128>}, {pipeline_mode = #tpu.pipeline_mode<synchronous>, transform_indices = @transform_1, window_bounds = array<i64: 128, 512>}, {transform_indices = @transform_2, window_bounds = array<i64: 128, 512>}]} {
    %c0 = arith.constant 0 : index
    %c0_0 = arith.constant 0 : index
    %0 = vector.load %arg2[%c0, %c0_0] : memref<128x512xf32, #tpu.memory_space<vmem>>, vector<128x512xf32>
    %1 = tpu.iota {dimensions = array<i32: 0>} : vector<128x128xi32>
    %c0_1 = arith.constant 0 : index
    %c0_2 = arith.constant 0 : index
    %c0_3 = arith.constant 0 : index
    %2 = vector.load %arg1[%c0_1, %c0_2, %c0_3] : memref<1x1x128xi32, #tpu.memory_space<vmem>>, vector<1x1x128xi32>
    %3 = vector.shape_cast %2 : vector<1x1x128xi32> to vector<1x128xi32>
    %4 = vector.broadcast %3 : vector<1x128xi32> to vector<128x128xi32>
    %5 = arith.cmpi eq, %1, %4 : vector<128x128xi32>
    %6 = arith.extui %5 : vector<128x128xi1> to vector<128x128xi32>
    %7 = arith.sitofp %6 : vector<128x128xi32> to vector<128x128xf32>
    %cst = arith.constant dense<0.000000e+00> : vector<128x512xf32>
    %8 = tpu.matmul %7, %0, %cst {dimension_numbers = #tpu.dot_dimension_numbers<[0], [0], [1], [1], [0, 1, 1, 1], [], []>, precision = #tpu.contract_precision<fp32>} : vector<128x128xf32>, vector<128x512xf32>, vector<128x512xf32> -> vector<128x512xf32>
    %c0_4 = arith.constant 0 : index
    %c0_5 = arith.constant 0 : index
    %9 = vector.load %arg3[%c0_4, %c0_5] : memref<128x512xf32, #tpu.memory_space<vmem>>, vector<128x512xf32>
    tpu.vector_store %arg3[%c0_4, %c0_5], %8 {strides = array<i32>} : memref<128x512xf32, #tpu.memory_space<vmem>>, vector<128x512xf32>,
    return
  }
  func.func @transform_0(%arg0: i32) -> (i32, i32, i32) {
    %c0_i32 = arith.constant 0 : i32
    %c0_i32_0 = arith.constant 0 : i32
    %c0_i32_1 = arith.constant 0 : i32
    return %arg0, %c0_i32, %c0_i32_0 : i32, i32, i32
  }
  func.func @transform_1(%arg0: i32) -> (i32, i32) {
    %c0_i32 = arith.constant 0 : i32
    %c0_i32_0 = arith.constant 0 : i32
    %c0_i32_1 = arith.constant 0 : i32
    return %c0_i32, %c0_i32_0 : i32, i32
  }
  func.func @transform_2(%arg0: i32) -> (i32, i32) {
    %c0_i32 = arith.constant 0 : i32
    %c0_i32_0 = arith.constant 0 : i32
    return %arg0, %c0_i32 : i32, i32
  }
}

</mosaic_0001>

<bundles_post_ra>
// kernel: tpu_custom_call.1
= control target key start
LH: loop header
LB: loop body
LE: loop exit
PB: predicated region body
PF: predicated region fallthrough
CT: control target
= control target key end

     0   :  { %7 = vsyncpa [#allocation3], 0  ;;  %s5416_s0 = inlined_call_operand.hbm [shape: s32[1,1,128], index: 0, kind: input, shape index: {}]   ;;  %s5417_s1 = inlined_call_operand.hbm [shape: f32[128,512], index: 1, kind: input, shape index: {}]   ;;  %s5418_s2 = inlined_call_operand.hbm [shape: f32[128,512], index: 2, kind: output, shape index: {}]  }
   0x1   :  { %8 = vsyncpa [#allocation6], 0 }
   0x2   :  { %9 = vsyncpa [#allocation4], 0  ;;  %s15_s11 = sshll.u32 %s5416_s0, 4  ;;  %s3614_s12 = smov [#allocation2]   ;;  %s16_s11 = int_to_ptr.hbm [resolvable:$true] %s15_s11 }
   0x3   :  { %s17_s13 = sshll.u32 %s3614_s12, 4  ;;  %s25_s16 = sshll.u32 %s5417_s1, 4  ;;  %s18_s13 = int_to_ptr.vmem [resolvable:$true] %s17_s13  ;;  %s26_s16 = int_to_ptr.hbm [resolvable:$true] %s25_s16 }
   0x4   :  { %20 = dma.hbm_to_vmem [thread:$0]  %s16_s11, 16, %s18_s13, [#allocation3]  }
   0x5   :  { %s3615_s17 = smov [#allocation5]   ;;  %s3616_s19 = smov 512  }
   0x6   :  { %s27_s18 = sshll.u32 %s3615_s17, 4  ;;  %s3617_s20 = smov 32   ;;  %s28_s18 = int_to_ptr.vmem [resolvable:$true] %s27_s18 }
   0x7   :  { %33 = dma.hbm_to_vmem [thread:$0]  %s26_s16, 8192, %s28_s18, [#allocation6], %s3616_s19, %s3616_s19, %s3617_s20  }
   0x8   :  { %3608 = dma.done.wait [#allocation3], 16  }
   0x9   :  { %3609 = vsyncadd [#allocation3], 4294967280 }
   0xa   :  { %3610 = dma.done.wait [#allocation6], 8192  }
   0xb   :  { %3611 = vsyncadd [#allocation6], 4294959104  ;;  %v106_v0 = vlaneseq  ;;  %v3646_v2 = vld [vmem:[#allocation2] ss:$0 sm:$0xff]  ;;  %v3618_v4 = vmov 0.0   ;;  %v102_v28 = vld [vmem:[#allocation5 + $0x1e0] sm:$0xff] }
   0xc   :  { %v98_v29 = vld [vmem:[#allocation5 + $0x1c0] sm:$0xff]  ;;  %v3686_v31 = vand.u32 4294901760, %v102_v28  ;;  %s3619_s0 = smov [#allocation7]   ;;  %s3499_s23 = sshll.u32 %s5418_s2, 4  ;;  %s3500_s23 = int_to_ptr.hbm [resolvable:$true] %s3499_s23 }
   0xd   :  { %v3644_v1 = vshrl.u32 %v106_v0, 7  ;;  %v94_v30 = vld [vmem:[#allocation5 + $0x1a0] sm:$0xff]  ;;  %v3688_v32 = vand.u32 4294901760, %v98_v29  ;;  %s3497_s1 = sshll.u32 %s3619_s0, 4  ;;  %s3498_s1 = int_to_ptr.vmem [resolvable:$true] %s3497_s1 }
   0xe   :  { %v3690_v33 = vand.u32 4294901760, %v94_v30  ;;  %v90_v34 = vld [vmem:[#allocation5 + $0x180] sm:$0xff]  ;;  %v3700_v43 = vsub.f32 %v102_v28, %v3686_v31  ;;  %657 = vmatpush.msra.mxu3 %v3686_v31  ;;  %206 = vmatpush.msra.mxu0 %v3686_v31 }
   0xf   :  { %vm125_vm0 = vcmp.eq.s32.totalorder %v3644_v1, %v3646_v2  ;;  %v108_v3 = vadd.s32 8, %v3644_v1  ;;  %v109_v7 = vadd.s32 16, %v3644_v1  ;;  %v110_v9 = vadd.s32 24, %v3644_v1  ;;  %v86_v35 = vld [vmem:[#allocation5 + $0x160] sm:$0xff] }
  0x10   :  { %v3513_v5 = vsel %vm125_vm0, 1.0, %v3618_v4  ;;  %v111_v11 = vadd.s32 32, %v3644_v1  ;;  %v112_v13 = vadd.s32 40, %v3644_v1  ;;  %v113_v15 = vadd.s32 48, %v3644_v1  ;;  %v82_v36 = vld [vmem:[#allocation5 + $0x140] sm:$0xff]  ;;  %529 = vmatpush.msra.mxu2 %v3700_v43  ;;  %659 = vmatpush.msra.mxu3 %v3688_v32 }
  0x11   :  { %173 = vxpose.xlu0.b32.start [1/16] %v3513_v5, 128  ;;  %vm126_vm1 = vcmp.eq.s32.totalorder %v108_v3, %v3646_v2  ;;  %vm127_vm2 = vcmp.eq.s32.totalorder %v109_v7, %v3646_v2  ;;  %vm128_vm3 = vcmp.eq.s32.totalorder %v110_v9, %v3646_v2  ;;  %v114_v17 = vadd.s32 56, %v3644_v1  ;;  %v78_v41 = vld [vmem:[#allocation5 + $0x120] sm:$0xff]  ;;  %208 = vmatpush.msra.mxu0 %v3688_v32 }
  0x12   :  { %v3514_v6 = vsel %vm126_vm1, 1.0, %v3618_v4  ;;  %v3515_v8 = vsel %vm127_vm2, 1.0, %v3618_v4  ;;  %v3516_v10 = vsel %vm128_vm3, 1.0, %v3618_v4  ;;  %vm129_vm4 = vcmp.eq.s32.totalorder %v111_v11, %v3646_v2  ;;  %v74_v42 = vld [vmem:[#allocation5 + $0x100] sm:$0xff]  ;;  %661 = vmatpush.msra.mxu3 %v3690_v33 }
  0x13   :  { %v3517_v12 = vsel %vm129_vm4, 1.0, %v3618_v4  ;;  %vm130_vm5 = vcmp.eq.s32.totalorder %v112_v13, %v3646_v2  ;;  %vm131_vm6 = vcmp.eq.s32.totalorder %v113_v15, %v3646_v2  ;;  %vm132_vm7 = vcmp.eq.s32.totalorder %v114_v17, %v3646_v2  ;;  %210 = vmatpush.msra.mxu0 %v3690_v33  ;;  %v70_v63 = vld [vmem:[#allocation5 + $0xe0] sm:$0xff] }
  0x14   :  { %v3518_v14 = vsel %vm130_vm5, 1.0, %v3618_v4  ;;  %v3519_v16 = vsel %vm131_vm6, 1.0, %v3618_v4  ;;  %v3520_v18 = vsel %vm132_vm7, 1.0, %v3618_v4  ;;  %v115_v19 = vadd.s32 64, %v3644_v1  ;;  %v66_v0 = vld [vmem:[#allocation5 + $0xc0] sm:$0xff] }
  0x15   :  { %v116_v21 = vadd.s32 72, %v3644_v1  ;;  %v117_v23 = vadd.s32 80, %v3644_v1  ;;  %v118_v25 = vadd.s32 88, %v3644_v1  ;;  %v119_v26 = vadd.s32 96, %v3644_v1  ;;  %v62_v3 = vld [vmem:[#allocation5 + $0xa0] sm:$0xff] }
  0x16   :  { %vm133_vm8 = vcmp.eq.s32.totalorder %v115_v19, %v3646_v2  ;;  %v3693_v38 = vand.u32 4294901760, %v90_v34  ;;  %v3695_v39 = vand.u32 4294901760, %v86_v35  ;;  %v3697_v40 = vand.u32 4294901760, %v82_v36  ;;  %v54_v19 = vld [vmem:[#allocation5 + $0x60] sm:$0xff] }
  0x17   :  { %v3521_v20 = vsel %vm133_vm8, 1.0, %v3618_v4  ;;  %vm134_vm9 = vcmp.eq.s32.totalorder %v116_v21, %v3646_v2  ;;  %vm135_vm10 = vcmp.eq.s32.totalorder %v117_v23, %v3646_v2  ;;  %vm136_vm11 = vcmp.eq.s32.totalorder %v118_v25, %v3646_v2  ;;  %v50_v25 = vld [vmem:[#allocation5 + $0x40] sm:$0xff] }
  0x18   :  { %v3522_v22 = vsel %vm134_vm9, 1.0, %v3618_v4  ;;  %v3523_v24 = vsel %vm135_vm10, 1.0, %v3618_v4  ;;  %v3524_v27 = vsel %vm136_vm11, 1.0, %v3618_v4  ;;  %vm137_vm12 = vcmp.eq.s32.totalorder %v119_v26, %v3646_v2  ;;  %663 = vmatpush.msra.mxu3 %v3693_v38  ;;  %212 = vmatpush.msra.mxu0 %v3693_v38 }
  0x19   :  { %174 = vxpose.xlu0.b32.cont [2/16] %v3514_v6, 128  ;;  %v3525_v37 = vsel %vm137_vm12, 1.0, %v3618_v4  ;;  %v3703_v44 = vsub.f32 %v98_v29, %v3688_v32  ;;  %v3706_v45 = vsub.f32 %v94_v30, %v3690_v33  ;;  %v3710_v46 = vand.u32 4294901760, %v78_v41 }
  0x1a   :  { %v3713_v47 = vsub.f32 %v90_v34, %v3693_v38  ;;  %v3716_v48 = vsub.f32 %v86_v35, %v3695_v39  ;;  %v3719_v49 = vsub.f32 %v82_v36, %v3697_v40  ;;  %v3721_v50 = vand.u32 4294901760, %v74_v42  ;;  %665 = vmatpush.msra.mxu3 %v3695_v39  ;;  %214 = vmatpush.msra.mxu0 %v3695_v39 }
  0x1b   :  { %v120_v51 = vadd.s32 104, %v3644_v1  ;;  %v368_v52 = vand.u32 4294901760, %v3700_v43  ;;  %v374_v53 = vand.u32 4294901760, %v3703_v44  ;;  %v380_v54 = vand.u32 4294901760, %v3706_v45  ;;  %532 = vmatpush.msra.mxu2 %v3703_v44 }
  0x1c   :  { %v386_v55 = vand.u32 4294901760, %v3713_v47  ;;  %v392_v56 = vand.u32 4294901760, %v3716_v48  ;;  %v3733_v57 = vsub.f32 %v78_v41, %v3710_v46  ;;  %v398_v61 = vand.u32 4294901760, %v3719_v49  ;;  %667 = vmatpush.msra.mxu3 %v3697_v40  ;;  %216 = vmatpush.msra.mxu0 %v3697_v40 }
  0x1d   :  { %v369_v58 = vsub.f32 %v3700_v43, %v368_v52  ;;  %v375_v59 = vsub.f32 %v3703_v44, %v374_v53  ;;  %v381_v60 = vsub.f32 %v3706_v45, %v380_v54  ;;  %v3749_v62 = vsub.f32 %v74_v42, %v3721_v50  ;;  %535 = vmatpush.msra.mxu2 %v3706_v45  ;;  %v103_v43 = vld [vmem:[#allocation5 + $0x1e8] sm:$0xff] }
  0x1e   :  { %vm138_vm13 = vcmp.eq.s32.totalorder %v120_v51, %v3646_v2  ;;  %v387_v7 = vsub.f32 %v3713_v47, %v386_v55  ;;  %v404_v9 = vand.u32 4294901760, %v3733_v57  ;;  %v3765_v13 = vand.u32 4294901760, %v66_v0  ;;  %669 = vmatpush.msra.mxu3 %v3710_v46  ;;  %218 = vmatpush.msra.mxu0 %v3710_v46 }
  0x1f   :  { %v370_v5 = vand.u32 4294901760, %v369_v58  ;;  %v376_v6 = vand.u32 4294901760, %v375_v59  ;;  %v382_v11 = vand.u32 4294901760, %v381_v60  ;;  %538 = vmatpush.msra.mxu2 %v3713_v47  ;;  %v3526_v15 = vsel %vm138_vm13, 1.0, %v3618_v4 }
  0x20   :  { %v399_v17 = vsub.f32 %v3719_v49, %v398_v61  ;;  %v3798_v29 = vand.u32 4294901760, %v54_v19  ;;  %671 = vmatpush.msra.mxu3 %v3721_v50  ;;  %220 = vmatpush.msra.mxu0 %v3721_v50 }
  0x21   :  { %175 = vxpose.xlu0.b32.cont [3/16] %v3515_v8, 128  ;;  %v393_v8 = vsub.f32 %v3716_v48, %v392_v56  ;;  %371 = vmatpush.msra.mxu1 %v370_v5  ;;  %v122_v5 = vadd.s32 120, %v3644_v1 }
  0x22   :  { %541 = vmatpush.msra.mxu2 %v3716_v48  ;;  %v400_v30 = vand.u32 4294901760, %v399_v17  ;;  %v3820_v58 = vsub.f32 %v54_v19, %v3798_v29  ;;  %v95_v48 = vld [vmem:[#allocation5 + $0x1a8] sm:$0xff] }
  0x23   :  { %377 = vmatpush.msra.mxu1 %v376_v6  ;;  %v394_v26 = vand.u32 4294901760, %v393_v8  ;;  %vm140_vm15 = vcmp.eq.s32.totalorder %v122_v5, %v3646_v2 }
  0x24   :  { %544 = vmatpush.msra.mxu2 %v3719_v49  ;;  %v440_v8 = vand.u32 4294901760, %v3820_v58  ;;  %v3528_v17 = vsel %vm140_vm15, 1.0, %v3618_v4 }
  0x25   :  { %383 = vmatpush.msra.mxu1 %v382_v11 }
  0x26   :  { %547 = vmatpush.msra.mxu2 %v3733_v57 }
  0x28   :  { %550 = vmatpush.msra.mxu2 %v3749_v62 }
  0x29   :  { %176 = vxpose.xlu0.b32.cont [4/16] %v3516_v10, 128  ;;  %v58_v10 = vld [vmem:[#allocation5 + $0x80] sm:$0xff] }
  0x2a   :  { %v3786_v23 = vand.u32 4294901760, %v58_v10 }
  0x2c   :  { %v3808_v36 = vsub.f32 %v58_v10, %v3786_v23 }
  0x31   :  { %177 = vxpose.xlu0.b32.cont [5/16] %v3517_v12, 128  ;;  %v3763_v12 = vand.u32 4294901760, %v70_v63 }
  0x33   :  { %v3781_v21 = vsub.f32 %v70_v63, %v3763_v12  ;;  %673 = vmatpush.msra.mxu3 %v3763_v12  ;;  %222 = vmatpush.msra.mxu0 %v3763_v12 }
  0x35   :  { %553 = vmatpush.msra.mxu2 %v3781_v21  ;;  %675 = vmatpush.msra.mxu3 %v3765_v13 }
  0x36   :  { %224 = vmatpush.msra.mxu0 %v3765_v13 }
  0x39   :  { %178 = vxpose.xlu0.b32.cont [6/16] %v3518_v14, 128  ;;  %v3767_v14 = vand.u32 4294901760, %v62_v3 }
  0x3b   :  { %v3796_v28 = vsub.f32 %v62_v3, %v3767_v14  ;;  %677 = vmatpush.msra.mxu3 %v3767_v14  ;;  %226 = vmatpush.msra.mxu0 %v3767_v14 }
  0x3d   :  { %v428_v51 = vand.u32 4294901760, %v3796_v28  ;;  %679 = vmatpush.msra.mxu3 %v3786_v23  ;;  %228 = vmatpush.msra.mxu0 %v3786_v23 }
  0x3f   :  { %681 = vmatpush.msra.mxu3 %v3798_v29  ;;  %230 = vmatpush.msra.mxu0 %v3798_v29 }
  0x41   :  { %179 = vxpose.xlu0.b32.cont [7/16] %v3519_v16, 128  ;;  %v121_v16 = vadd.s32 112, %v3644_v1 }
  0x43   :  { %vm139_vm14 = vcmp.eq.s32.totalorder %v121_v16, %v3646_v2  ;;  %v441_v16 = vsub.f32 %v3820_v58, %v440_v8 }
  0x44   :  { %v3527_v59 = vsel %vm139_vm14, 1.0, %v3618_v4 }
  0x49   :  { %180 = vxpose.xlu0.b32.cont [8/16] %v3520_v18, 128  ;;  %v410_v18 = vand.u32 4294901760, %v3749_v62 }
  0x4b   :  { %v411_v34 = vsub.f32 %v3749_v62, %v410_v18 }
  0x4d   :  { %v412_v60 = vand.u32 4294901760, %v411_v34 }
  0x51   :  { %181 = vxpose.xlu0.b32.cont [9/16] %v3521_v20, 128  ;;  %v388_v20 = vand.u32 4294901760, %v387_v7  ;;  %v429_v7 = vsub.f32 %v3796_v28, %v428_v51 }
  0x53   :  { %389 = vmatpush.msra.mxu1 %v388_v20  ;;  %v442_v20 = vand.u32 4294901760, %v441_v16 }
  0x55   :  { %395 = vmatpush.msra.mxu1 %v394_v26  ;;  %v42_v26 = vld [vmem:[#allocation5] sm:$0xff] }
  0x56   :  { %v3871_v34 = vand.u32 4294901760, %v42_v26 }
  0x57   :  { %401 = vmatpush.msra.mxu1 %v400_v30 }
  0x59   :  { %182 = vxpose.xlu0.b32.cont [10/16] %v3522_v22, 128  ;;  %v3784_v22 = vsub.f32 %v66_v0, %v3765_v13  ;;  %v434_v0 = vand.u32 4294901760, %v3808_v36 }
  0x5b   :  { %v422_v35 = vand.u32 4294901760, %v3784_v22  ;;  %556 = vmatpush.msra.mxu2 %v3784_v22  ;;  %v435_v1 = vsub.f32 %v3808_v36, %v434_v0 }
  0x5d   :  { %v423_v63 = vsub.f32 %v3784_v22, %v422_v35  ;;  %559 = vmatpush.msra.mxu2 %v3796_v28  ;;  %v436_v2 = vand.u32 4294901760, %v435_v1 }
  0x5f   :  { %v424_v10 = vand.u32 4294901760, %v423_v63  ;;  %562 = vmatpush.msra.mxu2 %v3808_v36 }
  0x61   :  { %183 = vxpose.xlu0.b32.cont [11/16] %v3523_v24, 128  ;;  %v405_v24 = vsub.f32 %v3733_v57, %v404_v9  ;;  %565 = vmatpush.msra.mxu2 %v3820_v58 }
  0x63   :  { %v406_v41 = vand.u32 4294901760, %v405_v24  ;;  %v46_v24 = vld [vmem:[#allocation5 + $0x20] sm:$0xff] }
  0x65   :  { %407 = vmatpush.msra.mxu1 %v406_v41 }
  0x67   :  { %413 = vmatpush.msra.mxu1 %v412_v60 }
  0x69   :  { %184 = vxpose.xlu0.b32.cont [12/16] %v3524_v27, 128  ;;  %v416_v27 = vand.u32 4294901760, %v3781_v21 }
  0x6b   :  { %v417_v42 = vsub.f32 %v3781_v21, %v416_v27 }
  0x6d   :  { %v418_v6 = vand.u32 4294901760, %v417_v42  ;;  %v457_v42 = vsub.f32 %v42_v26, %v3871_v34 }
  0x6f   :  { %419 = vmatpush.msra.mxu1 %v418_v6  ;;  %v458_v60 = vand.u32 4294901760, %v457_v42 }
  0x71   :  { %185 = vxpose.xlu0.b32.cont [13/16] %v3525_v37, 128  ;;  %v3810_v37 = vand.u32 4294901760, %v50_v25  ;;  %425 = vmatpush.msra.mxu1 %v424_v10  ;;  %v459_v5 = vsub.f32 %v457_v42, %v458_v60 }
  0x73   :  { %v3833_v3 = vsub.f32 %v50_v25, %v3810_v37  ;;  %683 = vmatpush.msra.mxu3 %v3810_v37  ;;  %v3867_v25 = vand.u32 4294901760, %v46_v24  ;;  %232 = vmatpush.msra.mxu0 %v3810_v37  ;;  %v460_v6 = vand.u32 4294901760, %v459_v5 }
  0x75   :  { %v446_v11 = vand.u32 4294901760, %v3833_v3  ;;  %568 = vmatpush.msra.mxu2 %v3833_v3  ;;  %v451_v30 = vsub.f32 %v46_v24, %v3867_v25  ;;  %685 = vmatpush.msra.mxu3 %v3867_v25 }
  0x76   :  { %234 = vmatpush.msra.mxu0 %v3867_v25 }
  0x77   :  { %v447_v19 = vsub.f32 %v3833_v3, %v446_v11  ;;  %v452_v41 = vand.u32 4294901760, %v451_v30  ;;  %571 = vmatpush.msra.mxu2 %v451_v30  ;;  %687 = vmatpush.msra.mxu3 %v3871_v34 }
  0x78   :  { %236 = vmatpush.msra.mxu0 %v3871_v34 }
  0x79   :  { %186 = vxpose.xlu0.b32.cont [14/16] %v3526_v15, 128  ;;  %v430_v15 = vand.u32 4294901760, %v429_v7  ;;  %v448_v4 = vand.u32 4294901760, %v447_v19  ;;  %574 = vmatpush.msra.mxu2 %v457_v42 }
  0x7a   :  { %788 = vmatpush.msrb.mxu0 %v368_v52 }
  0x7b   :  { %431 = vmatpush.msra.mxu1 %v430_v15 }
  0x7c   :  { %792 = vmatpush.msrb.mxu0 %v374_v53 }
  0x7d   :  { %437 = vmatpush.msra.mxu1 %v436_v2 }
  0x7e   :  { %796 = vmatpush.msrb.mxu0 %v380_v54 }
  0x7f   :  { %443 = vmatpush.msra.mxu1 %v442_v20 }
  0x80   :  { %800 = vmatpush.msrb.mxu0 %v386_v55 }
  0x81   :  { %187 = vxpose.xlu0.b32.cont [15/16] %v3527_v59, 128  ;;  %449 = vmatpush.msra.mxu1 %v448_v4  ;;  %v453_v59 = vsub.f32 %v451_v30, %v452_v41 }
  0x82   :  { %804 = vmatpush.msrb.mxu0 %v392_v56 }
  0x83   :  { %v454_v63 = vand.u32 4294901760, %v453_v59 }
  0x84   :  { %808 = vmatpush.msrb.mxu0 %v398_v61  ;;  %v91_v61 = vld [vmem:[#allocation5 + $0x188] sm:$0xff] }
  0x85   :  { %455 = vmatpush.msra.mxu1 %v454_v63 }
  0x86   :  { %812 = vmatpush.msrb.mxu0 %v404_v9  ;;  %v3958_v9 = vand.u32 4294901760, %v91_v61 }
  0x87   :  { %461 = vmatpush.msra.mxu1 %v460_v6 }
  0x88   :  { %816 = vmatpush.msrb.mxu0 %v410_v18 }
  0x89   :  { %188 = vxpose.xlu0.b32.end [16/16] %v3528_v17, 128  ;;  %915 = vmatpush.msrb.mxu1 %v3686_v31  ;;  %v3899_v31 = vand.u32 4294901760, %v103_v43 }
  0x8a   :  { %820 = vmatpush.msrb.mxu0 %v416_v27 }
  0x8b   :  { %917 = vmatpush.msrb.mxu1 %v3688_v32  ;;  %1012 = vmatpush.msrb.mxu2 %v3899_v31  ;;  %v3906_v32 = vsub.f32 %v103_v43, %v3899_v31 }
  0x8c   :  { %824 = vmatpush.msrb.mxu0 %v422_v35 }
  0x8d   :  { %919 = vmatpush.msrb.mxu1 %v3690_v33  ;;  %v5429_v33 = vand.u32 4294901760, %v3906_v32 }
  0x8e   :  { %828 = vmatpush.msrb.mxu0 %v428_v51 }
  0x8f   :  { %921 = vmatpush.msrb.mxu1 %v3693_v38  ;;  %v1175_v38 = vsub.f32 %v3906_v32, %v5429_v33 }
  0x90   :  { %832 = vmatpush.msrb.mxu0 %v434_v0 }
  0x91   :  { %923 = vmatpush.msrb.mxu1 %v3695_v39  ;;  %v99_v39 = vld [vmem:[#allocation5 + $0x1c8] sm:$0xff] }
  0x92   :  { %v3921_v44 = vand.u32 4294901760, %v99_v39  ;;  %836 = vmatpush.msrb.mxu0 %v440_v8 }
  0x93   :  { %925 = vmatpush.msrb.mxu1 %v3697_v40  ;;  %v1176_v40 = vand.u32 4294901760, %v1175_v38 }
  0x94   :  { %1014 = vmatpush.msrb.mxu2 %v3921_v44  ;;  %v3928_v45 = vsub.f32 %v99_v39, %v3921_v44  ;;  %840 = vmatpush.msrb.mxu0 %v446_v11  ;;  %v83_v11 = vld [vmem:[#allocation5 + $0x148] sm:$0xff] }
  0x95   :  { %927 = vmatpush.msrb.mxu1 %v3710_v46  ;;  %1177 = vmatpush.msrb.mxu3 %v1176_v40  ;;  %v4018_v16 = vand.u32 4294901760, %v83_v11 }
  0x96   :  { %v5427_v46 = vand.u32 4294901760, %v3928_v45  ;;  %844 = vmatpush.msrb.mxu0 %v452_v41 }
  0x97   :  { %929 = vmatpush.msrb.mxu1 %v3721_v50  ;;  %v3939_v50 = vand.u32 4294901760, %v95_v48  ;;  %v4027_v2 = vsub.f32 %v83_v11, %v4018_v16 }
  0x98   :  { %v1181_v47 = vsub.f32 %v3928_v45, %v5427_v46  ;;  %848 = vmatpush.msrb.mxu0 %v458_v60 }
  0x99   :  { %931 = vmatpush.msrb.mxu1 %v3763_v12  ;;  %1016 = vmatpush.msrb.mxu2 %v3939_v50  ;;  %v3944_v52 = vsub.f32 %v95_v48, %v3939_v50  ;;  %v5423_v4 = vand.u32 4294901760, %v4027_v2 }
  0x9a   :  { %v1182_v49 = vand.u32 4294901760, %v1181_v47  ;;  %v75_v47 = vld [vmem:[#allocation5 + $0x108] sm:$0xff] }
  0x9b   :  { %933 = vmatpush.msrb.mxu1 %v3765_v13  ;;  %v5426_v54 = vand.u32 4294901760, %v3944_v52  ;;  %1018 = vmatpush.msrb.mxu2 %v3958_v9  ;;  %v3967_v13 = vsub.f32 %v91_v61, %v3958_v9  ;;  %v1205_v26 = vsub.f32 %v4027_v2, %v5423_v4 }
  0x9c   :  { %1183 = vmatpush.msrb.mxu3 %v1182_v49  ;;  %v4076_v49 = vand.u32 4294901760, %v75_v47 }
  0x9d   :  { %935 = vmatpush.msrb.mxu1 %v3767_v14  ;;  %v1187_v56 = vsub.f32 %v3944_v52, %v5426_v54  ;;  %v5425_v21 = vand.u32 4294901760, %v3967_v13  ;;  %v1206_v41 = vand.u32 4294901760, %v1205_v26 }
  0x9f   :  { %937 = vmatpush.msrb.mxu1 %v3786_v23  ;;  %v1188_v62 = vand.u32 4294901760, %v1187_v56  ;;  %v1193_v27 = vsub.f32 %v3967_v13, %v5425_v21  ;;  %v4084_v56 = vsub.f32 %v75_v47, %v4076_v49  ;;  %v59_v21 = vld [vmem:[#allocation5 + $0x88] sm:$0xff] }
  0xa0   :  { %v4188_v46 = vand.u32 4294901760, %v59_v21 }
  0xa1   :  { %939 = vmatpush.msrb.mxu1 %v3798_v29  ;;  %1189 = vmatpush.msrb.mxu3 %v1188_v62  ;;  %v87_v29 = vld [vmem:[#allocation5 + $0x168] sm:$0xff]  ;;  %v1194_v35 = vand.u32 4294901760, %v1193_v27 }
  0xa2   :  { %v3987_v36 = vand.u32 4294901760, %v87_v29 }
  0xa3   :  { %941 = vmatpush.msrb.mxu1 %v3810_v37  ;;  %1195 = vmatpush.msrb.mxu3 %v1194_v35 }
  0xa4   :  { %1020 = vmatpush.msrb.mxu2 %v3987_v36  ;;  %v3997_v51 = vsub.f32 %v87_v29, %v3987_v36 }
  0xa5   :  { %943 = vmatpush.msrb.mxu1 %v3867_v25 }
  0xa6   :  { %v5424_v3 = vand.u32 4294901760, %v3997_v51  ;;  %1022 = vmatpush.msrb.mxu2 %v4018_v16 }
  0xa7   :  { %945 = vmatpush.msrb.mxu1 %v3871_v34  ;;  %v79_v34 = vld [vmem:[#allocation5 + $0x128] sm:$0xff] }
  0xa8   :  { %v1199_v10 = vsub.f32 %v3997_v51, %v5424_v3  ;;  %v4048_v42 = vand.u32 4294901760, %v79_v34 }
  0xaa   :  { %v1200_v15 = vand.u32 4294901760, %v1199_v10  ;;  %1024 = vmatpush.msrb.mxu2 %v4048_v42  ;;  %v4056_v60 = vsub.f32 %v79_v34, %v4048_v42 }
  0xac   :  { %1201 = vmatpush.msrb.mxu3 %v1200_v15  ;;  %v5422_v6 = vand.u32 4294901760, %v4056_v60  ;;  %1026 = vmatpush.msrb.mxu2 %v4076_v49 }
  0xae   :  { %1207 = vmatpush.msrb.mxu3 %v1206_v41  ;;  %v1211_v39 = vsub.f32 %v4056_v60, %v5422_v6 }
  0xb0   :  { %v1212_v48 = vand.u32 4294901760, %v1211_v39  ;;  %v67_v39 = vld [vmem:[#allocation5 + $0xc8] sm:$0xff] }
  0xb2   :  { %1213 = vmatpush.msrb.mxu3 %v1212_v48  ;;  %v4132_v48 = vand.u32 4294901760, %v67_v39 }
  0xb5   :  { %v189_v53 = vpop.trf.xlu0 }
  0xb6   :  { %v3948_v55 = vand.u32 4294901760, %v189_v53 }
  0xb8   :  { %v3955_v57 = vsub.f32 %v189_v53, %v3948_v55  ;;  %463 = vmatmul.f32.vlgmr.msra.gmra.mxu1 %v3948_v55 }
  0xb9   :  { %1463 = vmatpush.msra.mxu1 %v3899_v31 }
  0xba   :  { %5568 = vst [vmem:[#allocation11_spill] sm:$0xff] %v3955_v57  ;;  %577 = vmatmul.f32.vlgmr.msra.gmra.mxu2 %v3955_v57  ;;  %v3963_v12 = vand.u32 4294901760, %v3955_v57 }
  0xbb   :  { %1465 = vmatpush.msra.mxu1 %v3921_v44 }
  0xbc   :  { %5569 = vst [vmem:[#allocation12_spill] sm:$0xff] %v3963_v12  ;;  %691 = vmatmul.f32.vlgmr.msra.gmra.mxu3 %v3963_v12  ;;  %v240_v14 = vsub.f32 %v3955_v57, %v3963_v12 }
  0xbd   :  { %v190_v18 = vpop.trf.xlu0  ;;  %1467 = vmatpush.msra.mxu1 %v3939_v50 }
  0xbe   :  { %v3974_v22 = vand.u32 4294901760, %v190_v18  ;;  %v3976_v23 = vand.u32 4294901760, %v240_v14  ;;  %v5420_v14 = vand.u32 4294901760, %v4084_v56 }
  0xbf   :  { %1469 = vmatpush.msra.mxu1 %v3958_v9 }
  0xc0   :  { %5570 = vst [vmem:[#allocation13_spill] sm:$0xff] %v3974_v22  ;;  %v3983_v28 = vsub.f32 %v190_v18, %v3974_v22  ;;  %242 = vmatmul.f32.vlgmr.msra.gmra.mxu0 %v3976_v23  ;;  %467 = vmatmul.f32.gmra.mxu1 %v3974_v22  ;;  %v1217_v29 = vsub.f32 %v4084_v56, %v5420_v14 }
  0xc1   :  { %5571 = vst [vmem:[#allocation14_spill] sm:$0xff] %v3976_v23  ;;  %1335 = vmatpush.msra.mxu0 %v3906_v32  ;;  %1471 = vmatpush.msra.mxu1 %v3987_v36 }
  0xc2   :  { %5572 = vst [vmem:[#allocation15_spill] sm:$0xff] %v3983_v28  ;;  %582 = vmatmul.f32.gmra.mxu2 %v3983_v28  ;;  %v3993_v37 = vand.u32 4294901760, %v3983_v28 }
  0xc3   :  { %1338 = vmatpush.msra.mxu0 %v3928_v45  ;;  %1473 = vmatpush.msra.mxu1 %v4018_v16 }
  0xc4   :  { %5573 = vst [vmem:[#allocation16_spill] sm:$0xff] %v3993_v37  ;;  %697 = vmatmul.f32.gmra.mxu3 %v3993_v37  ;;  %v248_v58 = vsub.f32 %v3983_v28, %v3993_v37  ;;  %v5614_v37 = vand.u32 4294901760, %v3906_v32 }
  0xc5   :  { %v191_v0 = vpop.trf.xlu0  ;;  %1341 = vmatpush.msra.mxu0 %v3944_v52  ;;  %1475 = vmatpush.msra.mxu1 %v4048_v42 }
  0xc6   :  { %v4005_v7 = vand.u32 4294901760, %v191_v0  ;;  %v4007_v8 = vand.u32 4294901760, %v248_v58  ;;  %v71_v58 = vld [vmem:[#allocation5 + $0xe8] sm:$0xff] }
  0xc7   :  { %1344 = vmatpush.msra.mxu0 %v3967_v13  ;;  %1477 = vmatpush.msra.mxu1 %v4076_v49  ;;  %v4104_v10 = vand.u32 4294901760, %v71_v58 }
  0xc8   :  { %5574 = vst [vmem:[#allocation17_spill] sm:$0xff] %v4005_v7  ;;  %v4014_v1 = vsub.f32 %v191_v0, %v4005_v7  ;;  %250 = vmatmul.f32.gmra.mxu0 %v4007_v8  ;;  %471 = vmatmul.f32.gmra.mxu1 %v4005_v7  ;;  %v1218_v0 = vand.u32 4294901760, %v1217_v29 }
  0xc9   :  { %5575 = vst [vmem:[#allocation18_spill] sm:$0xff] %v4007_v8  ;;  %1347 = vmatpush.msra.mxu0 %v3997_v51  ;;  %1028 = vmatpush.msrb.mxu2 %v4104_v10  ;;  %v4112_v15 = vsub.f32 %v71_v58, %v4104_v10 }
  0xca   :  { %5576 = vst [vmem:[#allocation19_spill] sm:$0xff] %v4014_v1  ;;  %587 = vmatmul.f32.gmra.mxu2 %v4014_v1  ;;  %v4023_v17 = vand.u32 4294901760, %v4014_v1  ;;  %1219 = vmatpush.msrb.mxu3 %v1218_v0 }
  0xcb   :  { %1350 = vmatpush.msra.mxu0 %v4027_v2  ;;  %1479 = vmatpush.msra.mxu1 %v4104_v10  ;;  %v5419_v26 = vand.u32 4294901760, %v4112_v15 }
  0xcc   :  { %5577 = vst [vmem:[#allocation20_spill] sm:$0xff] %v4023_v17  ;;  %703 = vmatmul.f32.gmra.mxu3 %v4023_v17  ;;  %v256_v19 = vsub.f32 %v4014_v1, %v4023_v17  ;;  %1030 = vmatpush.msrb.mxu2 %v4132_v48 }
  0xcd   :  { %v192_v20 = vpop.trf.xlu0  ;;  %1353 = vmatpush.msra.mxu0 %v4056_v60  ;;  %1481 = vmatpush.msra.mxu1 %v4132_v48 }
  0xce   :  { %v4035_v24 = vand.u32 4294901760, %v192_v20  ;;  %v4037_v25 = vand.u32 4294901760, %v256_v19 }
  0xcf   :  { %1356 = vmatpush.msra.mxu0 %v4084_v56 }
  0xd0   :  { %5578 = vst [vmem:[#allocation21_spill] sm:$0xff] %v4035_v24  ;;  %v4044_v30 = vsub.f32 %v192_v20, %v4035_v24  ;;  %258 = vmatmul.f32.gmra.mxu0 %v4037_v25  ;;  %475 = vmatmul.f32.gmra.mxu1 %v4035_v24 }
  0xd1   :  { %5579 = vst [vmem:[#allocation22_spill] sm:$0xff] %v4037_v25  ;;  %1359 = vmatpush.msra.mxu0 %v4112_v15 }
  0xd2   :  { %5580 = vst [vmem:[#allocation23_spill] sm:$0xff] %v4044_v30  ;;  %592 = vmatmul.f32.gmra.mxu2 %v4044_v30  ;;  %v4052_v59 = vand.u32 4294901760, %v4044_v30 }
  0xd4   :  { %5581 = vst [vmem:[#allocation24_spill] sm:$0xff] %v4052_v59  ;;  %709 = vmatmul.f32.gmra.mxu3 %v4052_v59  ;;  %v264_v63 = vsub.f32 %v4044_v30, %v4052_v59  ;;  %v47_v59 = vld [vmem:[#allocation5 + $0x28] sm:$0xff] }
  0xd5   :  { %v193_v5 = vpop.trf.xlu0  ;;  %v4267_v1 = vand.u32 4294901760, %v47_v59 }
  0xd6   :  { %v4064_v43 = vand.u32 4294901760, %v193_v5  ;;  %v4066_v38 = vand.u32 4294901760, %v264_v63  ;;  %v1223_v63 = vsub.f32 %v4112_v15, %v5419_v26 }
  0xd8   :  { %5582 = vst [vmem:[#allocation25_spill] sm:$0xff] %v4064_v43  ;;  %v4072_v40 = vsub.f32 %v193_v5, %v4064_v43  ;;  %266 = vmatmul.f32.gmra.mxu0 %v4066_v38  ;;  %479 = vmatmul.f32.gmra.mxu1 %v4064_v43  ;;  %v1224_v47 = vand.u32 4294901760, %v1223_v63 }
  0xd9   :  { %5583 = vst [vmem:[#allocation26_spill] sm:$0xff] %v4066_v38 }
  0xda   :  { %5584 = vst [vmem:[#allocation27_spill] sm:$0xff] %v4072_v40  ;;  %597 = vmatmul.f32.gmra.mxu2 %v4072_v40  ;;  %v4080_v53 = vand.u32 4294901760, %v4072_v40  ;;  %1225 = vmatpush.msrb.mxu3 %v1224_v47  ;;  %v63_v47 = vld [vmem:[#allocation5 + $0xa8] sm:$0xff] }
  0xdb   :  { %v4160_v14 = vand.u32 4294901760, %v63_v47 }
  0xdc   :  { %5585 = vst [vmem:[#allocation28_spill] sm:$0xff] %v4080_v53  ;;  %715 = vmatmul.f32.gmra.mxu3 %v4080_v53  ;;  %v272_v61 = vsub.f32 %v4072_v40, %v4080_v53 }
  0xdd   :  { %v194_v62 = vpop.trf.xlu0  ;;  %1032 = vmatpush.msrb.mxu2 %v4160_v14  ;;  %1483 = vmatpush.msra.mxu1 %v4160_v14 }
  0xde   :  { %v4092_v18 = vand.u32 4294901760, %v194_v62  ;;  %v4094_v27 = vand.u32 4294901760, %v272_v61 }
  0xdf   :  { %1034 = vmatpush.msrb.mxu2 %v4188_v46  ;;  %1485 = vmatpush.msra.mxu1 %v4188_v46 }
  0xe0   :  { %5586 = vst [vmem:[#allocation29_spill] sm:$0xff] %v4092_v18  ;;  %v4100_v35 = vsub.f32 %v194_v62, %v4092_v18  ;;  %274 = vmatmul.f32.gmra.mxu0 %v4094_v27  ;;  %483 = vmatmul.f32.gmra.mxu1 %v4092_v18  ;;  %v4140_v62 = vsub.f32 %v67_v39, %v4132_v48 }
  0xe1   :  { %5587 = vst [vmem:[#allocation30_spill] sm:$0xff] %v4094_v27 }
  0xe2   :  { %5588 = vst [vmem:[#allocation31_spill] sm:$0xff] %v4100_v35  ;;  %602 = vmatmul.f32.gmra.mxu2 %v4100_v35  ;;  %v4108_v11 = vand.u32 4294901760, %v4100_v35  ;;  %v5421_v0 = vand.u32 4294901760, %v4140_v62  ;;  %1362 = vmatpush.msra.mxu0 %v4140_v62 }
  0xe4   :  { %5589 = vst [vmem:[#allocation32_spill] sm:$0xff] %v4108_v11  ;;  %721 = vmatmul.f32.gmra.mxu3 %v4108_v11  ;;  %v280_v19 = vsub.f32 %v4100_v35, %v4108_v11  ;;  %v1229_v63 = vsub.f32 %v4140_v62, %v5421_v0  ;;  %v4168_v0 = vsub.f32 %v63_v47, %v4160_v14 }
  0xe5   :  { %v195_v20 = vpop.trf.xlu0 }
  0xe6   :  { %v4120_v34 = vand.u32 4294901760, %v195_v20  ;;  %v4122_v41 = vand.u32 4294901760, %v280_v19  ;;  %v1230_v26 = vand.u32 4294901760, %v1229_v63  ;;  %v5428_v6 = vand.u32 4294901760, %v4168_v0  ;;  %1365 = vmatpush.msra.mxu0 %v4168_v0 }
  0xe8   :  { %5590 = vst [vmem:[#allocation33_spill] sm:$0xff] %v4120_v34  ;;  %v4128_v5 = vsub.f32 %v195_v20, %v4120_v34  ;;  %282 = vmatmul.f32.gmra.mxu0 %v4122_v41  ;;  %487 = vmatmul.f32.gmra.mxu1 %v4120_v34  ;;  %v1235_v47 = vsub.f32 %v4168_v0, %v5428_v6 }
  0xe9   :  { %5591 = vst [vmem:[#allocation34_spill] sm:$0xff] %v4122_v41  ;;  %1231 = vmatpush.msrb.mxu3 %v1230_v26  ;;  %v4196_v6 = vsub.f32 %v59_v21, %v4188_v46 }
  0xea   :  { %5592 = vst [vmem:[#allocation35_spill] sm:$0xff] %v4128_v5  ;;  %607 = vmatmul.f32.gmra.mxu2 %v4128_v5  ;;  %v4136_v61 = vand.u32 4294901760, %v4128_v5  ;;  %v1236_v54 = vand.u32 4294901760, %v1235_v47 }
  0xeb   :  { %v5440_v33 = vand.u32 4294901760, %v4196_v6  ;;  %1368 = vmatpush.msra.mxu0 %v4196_v6 }
  0xec   :  { %5593 = vst [vmem:[#allocation36_spill] sm:$0xff] %v4136_v61  ;;  %727 = vmatmul.f32.gmra.mxu3 %v4136_v61  ;;  %v288_v29 = vsub.f32 %v4128_v5, %v4136_v61 }
  0xed   :  { %v196_v58 = vpop.trf.xlu0  ;;  %1237 = vmatpush.msrb.mxu3 %v1236_v54  ;;  %v1241_v21 = vsub.f32 %v4196_v6, %v5440_v33 }
  0xee   :  { %v4148_v19 = vand.u32 4294901760, %v196_v58  ;;  %v4150_v20 = vand.u32 4294901760, %v288_v29 }
  0xf0   :  { %5594 = vst [vmem:[#allocation37_spill] sm:$0xff] %v4148_v19  ;;  %v4156_v39 = vsub.f32 %v196_v58, %v4148_v19  ;;  %290 = vmatmul.f32.gmra.mxu0 %v4150_v20  ;;  %491 = vmatmul.f32.gmra.mxu1 %v4148_v19 }
  0xf1   :  { %5595 = vst [vmem:[#allocation38_spill] sm:$0xff] %v4150_v20 }
  0xf2   :  { %5596 = vst [vmem:[#allocation39_spill] sm:$0xff] %v4156_v39  ;;  %612 = vmatmul.f32.gmra.mxu2 %v4156_v39  ;;  %v4164_v29 = vand.u32 4294901760, %v4156_v39 }
  0xf4   :  { %5597 = vst [vmem:[#allocation40_spill] sm:$0xff] %v4164_v29  ;;  %733 = vmatmul.f32.gmra.mxu3 %v4164_v29  ;;  %v296_v58 = vsub.f32 %v4156_v39, %v4164_v29 }
  0xf5   :  { %v197_v63 = vpop.trf.xlu0 }
  0xf6   :  { %v4176_v4 = vand.u32 4294901760, %v197_v63  ;;  %v4178_v26 = vand.u32 4294901760, %v296_v58 }
  0xf8   :  { %5598 = vst [vmem:[#allocation41_spill] sm:$0xff] %v4176_v4  ;;  %v4184_v3 = vsub.f32 %v197_v63, %v4176_v4  ;;  %298 = vmatmul.f32.gmra.mxu0 %v4178_v26  ;;  %495 = vmatmul.f32.gmra.mxu1 %v4176_v4 }
  0xf9   :  { %5599 = vst [vmem:[#allocation42_spill] sm:$0xff] %v4178_v26 }
  0xfa   :  { %5600 = vst [vmem:[#allocation43_spill] sm:$0xff] %v4184_v3  ;;  %617 = vmatmul.f32.gmra.mxu2 %v4184_v3  ;;  %v4192_v58 = vand.u32 4294901760, %v4184_v3 }
  0xfc   :  { %5601 = vst [vmem:[#allocation44_spill] sm:$0xff] %v4192_v58  ;;  %739 = vmatmul.f32.gmra.mxu3 %v4192_v58  ;;  %v304_v63 = vsub.f32 %v4184_v3, %v4192_v58  ;;  %v55_v3 = vld [vmem:[#allocation5 + $0x68] sm:$0xff]  ;;  %v1242_v58 = vand.u32 4294901760, %v1241_v21 }
  0xfd   :  { %v198_v47 = vpop.trf.xlu0  ;;  %v4216_v5 = vand.u32 4294901760, %v55_v3 }
  0xfe   :  { %v4204_v39 = vand.u32 4294901760, %v198_v47  ;;  %v4206_v54 = vand.u32 4294901760, %v304_v63  ;;  %1243 = vmatpush.msrb.mxu3 %v1242_v58 }
  0xff   :  { %1036 = vmatpush.msrb.mxu2 %v4216_v5  ;;  %v4224_v33 = vsub.f32 %v55_v3, %v4216_v5  ;;  %1487 = vmatpush.msra.mxu1 %v4216_v5 }
 0x100   :  { %5602 = vst [vmem:[#allocation45_spill] sm:$0xff] %v4204_v39  ;;  %v4212_v29 = vsub.f32 %v198_v47, %v4204_v39  ;;  %306 = vmatmul.f32.gmra.mxu0 %v4206_v54  ;;  %499 = vmatmul.f32.gmra.mxu1 %v4204_v39 }
 0x101   :  { %5603 = vst [vmem:[#allocation46_spill] sm:$0xff] %v4206_v54  ;;  %v5453_v61 = vand.u32 4294901760, %v4224_v33  ;;  %1371 = vmatpush.msra.mxu0 %v4224_v33 }
 0x102   :  { %5604 = vst [vmem:[#allocation47_spill] sm:$0xff] %v4212_v29  ;;  %622 = vmatmul.f32.gmra.mxu2 %v4212_v29  ;;  %v4220_v63 = vand.u32 4294901760, %v4212_v29 }
 0x103   :  { %v1247_v3 = vsub.f32 %v4224_v33, %v5453_v61 }
 0x104   :  { %5605 = vst [vmem:[#allocation48_spill] sm:$0xff] %v4220_v63  ;;  %745 = vmatmul.f32.gmra.mxu3 %v4220_v63  ;;  %v312_v47 = vsub.f32 %v4212_v29, %v4220_v63  ;;  %v51_v29 = vld [vmem:[#allocation5 + $0x48] sm:$0xff] }
 0x105   :  { %v199_v21 = vpop.trf.xlu0  ;;  %v1248_v63 = vand.u32 4294901760, %v1247_v3  ;;  %v4244_v40 = vand.u32 4294901760, %v51_v29 }
 0x106   :  { %v4232_v35 = vand.u32 4294901760, %v199_v21  ;;  %v4234_v58 = vand.u32 4294901760, %v312_v47 }
 0x107   :  { %1249 = vmatpush.msrb.mxu3 %v1248_v63  ;;  %1038 = vmatpush.msrb.mxu2 %v4244_v40  ;;  %v4252_v61 = vsub.f32 %v51_v29, %v4244_v40 }
 0x108   :  { %5606 = vst [vmem:[#allocation49_spill] sm:$0xff] %v4232_v35  ;;  %v4240_v11 = vsub.f32 %v199_v21, %v4232_v35  ;;  %314 = vmatmul.f32.gmra.mxu0 %v4234_v58  ;;  %503 = vmatmul.f32.gmra.mxu1 %v4232_v35 }
 0x109   :  { %5607 = vst [vmem:[#allocation50_spill] sm:$0xff] %v4234_v58  ;;  %1489 = vmatpush.msra.mxu1 %v4244_v40  ;;  %v5470_v53 = vand.u32 4294901760, %v4252_v61  ;;  %1374 = vmatpush.msra.mxu0 %v4252_v61 }
 0x10a   :  { %5608 = vst [vmem:[#allocation51_spill] sm:$0xff] %v4240_v11  ;;  %627 = vmatmul.f32.gmra.mxu2 %v4240_v11  ;;  %v4248_v47 = vand.u32 4294901760, %v4240_v11 }
 0x10b   :  { %v1253_v29 = vsub.f32 %v4252_v61, %v5470_v53  ;;  %1040 = vmatpush.msrb.mxu2 %v4267_v1  ;;  %1491 = vmatpush.msra.mxu1 %v4267_v1 }
 0x10c   :  { %5609 = vst [vmem:[#allocation52_spill] sm:$0xff] %v4248_v47  ;;  %751 = vmatmul.f32.gmra.mxu3 %v4248_v47  ;;  %v320_v21 = vsub.f32 %v4240_v11, %v4248_v47  ;;  %v43_v47 = vld [vmem:[#allocation5 + $0x8] sm:$0xff] }
 0x10d   :  { %v200_v3 = vpop.trf.xlu0  ;;  %v1254_v17 = vand.u32 4294901760, %v1253_v29  ;;  %v4278_v28 = vand.u32 4294901760, %v43_v47 }
 0x10e   :  { %v4260_v30 = vand.u32 4294901760, %v200_v3  ;;  %v4262_v63 = vand.u32 4294901760, %v320_v21  ;;  %v4276_v21 = vsub.f32 %v47_v59, %v4267_v1 }
 0x10f   :  { %1255 = vmatpush.msrb.mxu3 %v1254_v17  ;;  %1042 = vmatpush.msrb.mxu2 %v4278_v28  ;;  %v4288_v29 = vsub.f32 %v43_v47, %v4278_v28 }
 0x110   :  { %5610 = vst [vmem:[#allocation53_spill] sm:$0xff] %v4260_v30  ;;  %v4270_v11 = vsub.f32 %v200_v3, %v4260_v30  ;;  %322 = vmatmul.f32.gmra.mxu0 %v4262_v63  ;;  %507 = vmatmul.f32.gmra.mxu1 %v4260_v30  ;;  %v5481_v53 = vand.u32 4294901760, %v4276_v21 }
 0x111   :  { %5611 = vst [vmem:[#allocation54_spill] sm:$0xff] %v4262_v63  ;;  %1594 = vmatpush.msra.mxu2 %v5614_v37  ;;  %v1264_v12 = vand.u32 4294901760, %v4288_v29  ;;  %1377 = vmatpush.msra.mxu0 %v4276_v21 }
 0x112   :  { %5612 = vst [vmem:[#allocation55_spill] sm:$0xff] %v4270_v11  ;;  %632 = vmatmul.f32.gmra.mxu2 %v4270_v11  ;;  %v4283_v3 = vand.u32 4294901760, %v4270_v11  ;;  %v1259_v17 = vsub.f32 %v4276_v21, %v5481_v53  ;;  %1493 = vmatpush.msra.mxu1 %v4278_v28 }
 0x113   :  { %v1265_v37 = vsub.f32 %v4288_v29, %v1264_v12  ;;  %1380 = vmatpush.msra.mxu0 %v4288_v29 }
 0x114   :  { %5613 = vst [vmem:[#allocation56_spill] sm:$0xff] %v4283_v3  ;;  %757 = vmatmul.f32.gmra.mxu3 %v4283_v3  ;;  %v328_v59 = vsub.f32 %v4270_v11, %v4283_v3  ;;  %v5616_v11 = vand.u32 4294901760, %v3928_v45  ;;  %v1260_v32 = vand.u32 4294901760, %v1259_v17  ;;  %v5617_v3 = vand.u32 4294901760, %v3944_v52 }
 0x115   :  { %v201_v57 = vpop.trf.xlu0  ;;  %v5619_v52 = vand.u32 4294901760, %v3997_v51 }
 0x116   :  { %v4301_v47 = vand.u32 4294901760, %v201_v57  ;;  %v4303_v30 = vand.u32 4294901760, %v328_v59  ;;  %1598 = vmatpush.msra.mxu2 %v5616_v11  ;;  %1261 = vmatpush.msrb.mxu3 %v1260_v32  ;;  %v1266_v59 = vand.u32 4294901760, %v1265_v37  ;;  %v5618_v11 = vand.u32 4294901760, %v3967_v13 }
 0x117   :  { %v5621_v13 = vand.u32 4294901760, %v4027_v2 }
 0x118   :  { %5615 = vst [vmem:[#allocation57_spill] sm:$0xff] %v4303_v30  ;;  %v4312_v53 = vsub.f32 %v201_v57, %v4301_v47  ;;  %330 = vmatmul.f32.gmra.mxu0 %v4303_v30  ;;  %511 = vmatmul.f32.gmra.mxu1 %v4301_v47 }
 0x119   :  { %1602 = vmatpush.msra.mxu2 %v5617_v3  ;;  %1267 = vmatpush.msrb.mxu3 %v1266_v59 }
 0x11a   :  { %637 = vmatmul.f32.gmra.mxu2 %v4312_v53  ;;  %v4320_v45 = vand.u32 4294901760, %v4312_v53 }
 0x11b   :  { %1606 = vmatpush.msra.mxu2 %v5618_v11  ;;  %1721 = vmatpush.msra.mxu3 %v3899_v31  ;;  %v5622_v31 = vand.u32 4294901760, %v4056_v60 }
 0x11c   :  { %763 = vmatmul.f32.gmra.mxu3 %v4320_v45  ;;  %v336_v57 = vsub.f32 %v4312_v53, %v4320_v45 }
 0x11d   :  { %v202_v17 = vpop.trf.xlu0  ;;  %1610 = vmatpush.msra.mxu2 %v5619_v52  ;;  %1723 = vmatpush.msra.mxu3 %v3921_v44  ;;  %v5623_v44 = vand.u32 4294901760, %v4084_v56 }
 0x11e   :  { %v4330_v3 = vand.u32 4294901760, %v202_v17  ;;  %v4332_v32 = vand.u32 4294901760, %v336_v57 }
 0x11f   :  { %1614 = vmatpush.msra.mxu2 %v5621_v13  ;;  %1725 = vmatpush.msra.mxu3 %v3939_v50  ;;  %v5624_v50 = vand.u32 4294901760, %v4112_v15 }
 0x120   :  { %5620 = vst [vmem:[#allocation58_spill] sm:$0xff] %v4332_v32  ;;  %v4338_v37 = vsub.f32 %v202_v17, %v4330_v3  ;;  %338 = vmatmul.f32.gmra.mxu0 %v4332_v32  ;;  %515 = vmatmul.f32.gmra.mxu1 %v4330_v3 }
 0x121   :  { %1618 = vmatpush.msra.mxu2 %v5622_v31  ;;  %1727 = vmatpush.msra.mxu3 %v3958_v9  ;;  %v5626_v9 = vand.u32 4294901760, %v4140_v62 }
 0x122   :  { %642 = vmatmul.f32.gmra.mxu2 %v4338_v37  ;;  %v4347_v51 = vand.u32 4294901760, %v4338_v37 }
 0x123   :  { %1622 = vmatpush.msra.mxu2 %v5623_v44  ;;  %1729 = vmatpush.msra.mxu3 %v3987_v36  ;;  %v5627_v36 = vand.u32 4294901760, %v4168_v0 }
 0x124   :  { %769 = vmatmul.f32.gmra.mxu3 %v4347_v51  ;;  %v344_v2 = vsub.f32 %v4338_v37, %v4347_v51 }
 0x125   :  { %v203_v59 = vpop.trf.xlu0  ;;  %1626 = vmatpush.msra.mxu2 %v5624_v50  ;;  %1731 = vmatpush.msra.mxu3 %v4018_v16  ;;  %v5628_v16 = vand.u32 4294901760, %v4196_v6  ;;  %v5631_v6 = vand.u32 4294901760, %v4252_v61 }
 0x126   :  { %v4358_v60 = vand.u32 4294901760, %v203_v59  ;;  %v4360_v11 = vand.u32 4294901760, %v344_v2 }
 0x127   :  { %1630 = vmatpush.msra.mxu2 %v5626_v9  ;;  %1733 = vmatpush.msra.mxu3 %v4048_v42  ;;  %v5629_v42 = vand.u32 4294901760, %v4224_v33  ;;  %v5632_v33 = vand.u32 4294901760, %v4276_v21 }
 0x128   :  { %5625 = vst [vmem:[#allocation59_spill] sm:$0xff] %v4360_v11  ;;  %v4366_v56 = vsub.f32 %v203_v59, %v4358_v60  ;;  %346 = vmatmul.f32.gmra.mxu0 %v4360_v11  ;;  %519 = vmatmul.f32.gmra.mxu1 %v4358_v60 }
 0x129   :  { %1634 = vmatpush.msra.mxu2 %v5627_v36  ;;  %1735 = vmatpush.msra.mxu3 %v4076_v49 }
 0x12a   :  { %647 = vmatmul.f32.gmra.mxu2 %v4366_v56  ;;  %v4375_v15 = vand.u32 4294901760, %v4366_v56 }
 0x12b   :  { %1638 = vmatpush.msra.mxu2 %v5628_v16  ;;  %1737 = vmatpush.msra.mxu3 %v4104_v10 }
 0x12c   :  { %775 = vmatmul.f32.gmra.mxu3 %v4375_v15  ;;  %v352_v62 = vsub.f32 %v4366_v56, %v4375_v15 }
 0x12d   :  { %v204_v57 = vpop.trf.xlu0  ;;  %1642 = vmatpush.msra.mxu2 %v5629_v42  ;;  %1739 = vmatpush.msra.mxu3 %v4132_v48 }
 0x12e   :  { %v4386_v0 = vand.u32 4294901760, %v204_v57  ;;  %v4388_v17 = vand.u32 4294901760, %v352_v62 }
 0x12f   :  { %1646 = vmatpush.msra.mxu2 %v5631_v6  ;;  %1741 = vmatpush.msra.mxu3 %v4160_v14 }
 0x130   :  { %5630 = vst [vmem:[#allocation60_spill] sm:$0xff] %v4388_v17  ;;  %v4394_v49 = vsub.f32 %v204_v57, %v4386_v0  ;;  %354 = vmatmul.f32.gmra.mxu0 %v4388_v17  ;;  %523 = vmatmul.f32.gmra.mxu1 %v4386_v0 }
 0x131   :  { %1650 = vmatpush.msra.mxu2 %v5632_v33  ;;  %1743 = vmatpush.msra.mxu3 %v4188_v46 }
 0x132   :  { %652 = vmatmul.f32.gmra.mxu2 %v4394_v49  ;;  %v4403_v10 = vand.u32 4294901760, %v4394_v49 }
 0x133   :  { %1654 = vmatpush.msra.mxu2 %v1264_v12  ;;  %1745 = vmatpush.msra.mxu3 %v4216_v5 }
 0x134   :  { %781 = vmatmul.f32.gmra.mxu3 %v4403_v10  ;;  %v360_v48 = vsub.f32 %v4394_v49, %v4403_v10 }
 0x135   :  { %v464_v61 = vpop.f32.mrf.mxu1  ;;  %1747 = vmatpush.msra.mxu3 %v4244_v40 }
 0x136   :  { %v4412_v14 = vand.u32 4294901760, %v360_v48 }
 0x137   :  { %1749 = vmatpush.msra.mxu3 %v4267_v1 }
 0x138   :  { %5633 = vst [vmem:[#allocation61_spill] sm:$0xff] %v4412_v14  ;;  %362 = vmatmul.f32.gmra.mxu0 %v4412_v14  ;;  %947 = vmatmul.f32.vlgmr.msrb.gmra.mxu1 %v3948_v55 }
 0x139   :  { %1751 = vmatpush.msra.mxu3 %v4278_v28 }
 0x13a   :  { %1048 = vmatmul.f32.vlgmr.msrb.gmra.mxu2 %v3976_v23 }
 0x13c   :  { %1269 = vmatmul.f32.vlgmr.msrb.gmra.mxu3 %v3948_v55 }
 0x13d   :  { %v243_v46 = vpop.f32.mrf.mxu0  ;;  %v468_v12 = vpop.f32.mrf.mxu1 }
 0x13e   :  { %v465_v21 = vadd.f32 %v464_v61, %v243_v46  ;;  %v578_v5 = vpop.f32.mrf.mxu2 }
 0x13f   :  { %v692_v29 = vpop.f32.mrf.mxu3 }
 0x140   :  { %v579_v52 = vadd.f32 %v578_v5, %v465_v21  ;;  %850 = vmatmul.f32.vlgmr.msrb.gmra.mxu0 %v3948_v55  ;;  %951 = vmatmul.f32.gmra.mxu1 %v3974_v22 }
 0x142   :  { %v4423_v40 = vadd.f32 %v692_v29, %v579_v52  ;;  %1056 = vmatmul.f32.gmra.mxu2 %v4007_v8 }
 0x144   :  { %1273 = vmatmul.f32.gmra.mxu3 %v3974_v22 }
 0x145   :  { %v251_v1 = vpop.f32.mrf.mxu0  ;;  %v472_v28 = vpop.f32.mrf.mxu1 }
 0x146   :  { %v469_v13 = vadd.f32 %v468_v12, %v251_v1  ;;  %v583_v31 = vpop.f32.mrf.mxu2 }
 0x147   :  { %v698_v44 = vpop.f32.mrf.mxu3 }
 0x148   :  { %v584_v2 = vadd.f32 %v583_v31, %v469_v13  ;;  %854 = vmatmul.f32.gmra.mxu0 %v3974_v22  ;;  %955 = vmatmul.f32.gmra.mxu1 %v4005_v7 }
 0x14a   :  { %v4429_v59 = vadd.f32 %v698_v44, %v584_v2  ;;  %1064 = vmatmul.f32.gmra.mxu2 %v4037_v25 }
 0x14c   :  { %1277 = vmatmul.f32.gmra.mxu3 %v4005_v7 }
 0x14d   :  { %v259_v50 = vpop.f32.mrf.mxu0  ;;  %v476_v9 = vpop.f32.mrf.mxu1 }
 0x14e   :  { %v473_v36 = vadd.f32 %v472_v28, %v259_v50  ;;  %v588_v16 = vpop.f32.mrf.mxu2 }
 0x14f   :  { %v704_v62 = vpop.f32.mrf.mxu3 }
 0x150   :  { %v589_v57 = vadd.f32 %v588_v16, %v473_v36  ;;  %858 = vmatmul.f32.gmra.mxu0 %v4005_v7  ;;  %959 = vmatmul.f32.gmra.mxu1 %v4035_v24 }
 0x152   :  { %v4435_v42 = vadd.f32 %v704_v62, %v589_v57  ;;  %1072 = vmatmul.f32.gmra.mxu2 %v4066_v38  ;;  %v5637_v38 = vld [vmem:[#allocation11_spill] sm:$0xff] }
 0x154   :  { %1281 = vmatmul.f32.gmra.mxu3 %v4035_v24 }
 0x155   :  { %v267_v6 = vpop.f32.mrf.mxu0  ;;  %v480_v33 = vpop.f32.mrf.mxu1 }
 0x156   :  { %v477_v48 = vadd.f32 %v476_v9, %v267_v6  ;;  %v593_v61 = vpop.f32.mrf.mxu2 }
 0x157   :  { %v710_v46 = vpop.f32.mrf.mxu3 }
 0x158   :  { %v594_v12 = vadd.f32 %v593_v61, %v477_v48  ;;  %862 = vmatmul.f32.gmra.mxu0 %v4035_v24  ;;  %963 = vmatmul.f32.gmra.mxu1 %v4064_v43 }
 0x15a   :  { %v4441_v21 = vadd.f32 %v710_v46, %v594_v12  ;;  %1080 = vmatmul.f32.gmra.mxu2 %v4094_v27 }
 0x15c   :  { %1285 = vmatmul.f32.gmra.mxu3 %v4064_v43 }
 0x15d   :  { %v275_v5 = vpop.f32.mrf.mxu0  ;;  %v484_v29 = vpop.f32.mrf.mxu1 }
 0x15e   :  { %v481_v52 = vadd.f32 %v480_v33, %v275_v5  ;;  %v598_v1 = vpop.f32.mrf.mxu2 }
 0x15f   :  { %v716_v28 = vpop.f32.mrf.mxu3 }
 0x160   :  { %v599_v13 = vadd.f32 %v598_v1, %v481_v52  ;;  %866 = vmatmul.f32.gmra.mxu0 %v4064_v43  ;;  %967 = vmatmul.f32.gmra.mxu1 %v4092_v18 }
 0x162   :  { %v4447_v31 = vadd.f32 %v716_v28, %v599_v13  ;;  %1088 = vmatmul.f32.gmra.mxu2 %v4122_v41 }
 0x164   :  { %1289 = vmatmul.f32.gmra.mxu3 %v4092_v18 }
 0x165   :  { %v283_v44 = vpop.f32.mrf.mxu0  ;;  %v488_v2 = vpop.f32.mrf.mxu1 }
 0x166   :  { %v485_v50 = vadd.f32 %v484_v29, %v283_v44  ;;  %v603_v9 = vpop.f32.mrf.mxu2 }
 0x167   :  { %v722_v36 = vpop.f32.mrf.mxu3 }
 0x168   :  { %v604_v16 = vadd.f32 %v603_v9, %v485_v50  ;;  %870 = vmatmul.f32.gmra.mxu0 %v4092_v18  ;;  %971 = vmatmul.f32.gmra.mxu1 %v4120_v34 }
 0x16a   :  { %v4453_v62 = vadd.f32 %v722_v36, %v604_v16  ;;  %1096 = vmatmul.f32.gmra.mxu2 %v4150_v20 }
 0x16c   :  { %1293 = vmatmul.f32.gmra.mxu3 %v4120_v34 }
 0x16d   :  { %v291_v57 = vpop.f32.mrf.mxu0  ;;  %v492_v6 = vpop.f32.mrf.mxu1 }
 0x16e   :  { %v489_v33 = vadd.f32 %v488_v2, %v291_v57  ;;  %v608_v48 = vpop.f32.mrf.mxu2 }
 0x16f   :  { %v728_v61 = vpop.f32.mrf.mxu3 }
 0x170   :  { %v609_v46 = vadd.f32 %v608_v48, %v489_v33  ;;  %874 = vmatmul.f32.gmra.mxu0 %v4120_v34  ;;  %975 = vmatmul.f32.gmra.mxu1 %v4148_v19 }
 0x172   :  { %v4459_v12 = vadd.f32 %v728_v61, %v609_v46  ;;  %1104 = vmatmul.f32.gmra.mxu2 %v4178_v26 }
 0x174   :  { %1297 = vmatmul.f32.gmra.mxu3 %v4148_v19 }
 0x175   :  { %v299_v5 = vpop.f32.mrf.mxu0  ;;  %v496_v29 = vpop.f32.mrf.mxu1 }
 0x176   :  { %v493_v52 = vadd.f32 %v492_v6, %v299_v5  ;;  %v613_v1 = vpop.f32.mrf.mxu2 }
 0x177   :  { %v734_v28 = vpop.f32.mrf.mxu3 }
 0x178   :  { %v614_v13 = vadd.f32 %v613_v1, %v493_v52  ;;  %878 = vmatmul.f32.gmra.mxu0 %v4148_v19  ;;  %979 = vmatmul.f32.gmra.mxu1 %v4176_v4 }
 0x17a   :  { %v4465_v44 = vadd.f32 %v734_v28, %v614_v13  ;;  %1112 = vmatmul.f32.gmra.mxu2 %v4206_v54 }
 0x17c   :  { %1301 = vmatmul.f32.gmra.mxu3 %v4176_v4 }
 0x17d   :  { %v307_v2 = vpop.f32.mrf.mxu0  ;;  %v500_v50 = vpop.f32.mrf.mxu1 }
 0x17e   :  { %v497_v9 = vadd.f32 %v496_v29, %v307_v2  ;;  %v618_v36 = vpop.f32.mrf.mxu2 }
 0x17f   :  { %v740_v16 = vpop.f32.mrf.mxu3 }
 0x180   :  { %v619_v57 = vadd.f32 %v618_v36, %v497_v9  ;;  %882 = vmatmul.f32.gmra.mxu0 %v4176_v4  ;;  %983 = vmatmul.f32.gmra.mxu1 %v4204_v39 }
 0x182   :  { %v4471_v6 = vadd.f32 %v740_v16, %v619_v57  ;;  %1120 = vmatmul.f32.gmra.mxu2 %v4234_v58 }
 0x184   :  { %1305 = vmatmul.f32.gmra.mxu3 %v4204_v39 }
 0x185   :  { %v315_v33 = vpop.f32.mrf.mxu0  ;;  %v504_v48 = vpop.f32.mrf.mxu1 }
 0x186   :  { %v501_v61 = vadd.f32 %v500_v50, %v315_v33  ;;  %v623_v46 = vpop.f32.mrf.mxu2  ;;  %v5634_v50 = vld [vmem:[#allocation53_spill] sm:$0xff] }
 0x187   :  { %v746_v5 = vpop.f32.mrf.mxu3 }
 0x188   :  { %v624_v52 = vadd.f32 %v623_v46, %v501_v61  ;;  %886 = vmatmul.f32.gmra.mxu0 %v4204_v39  ;;  %987 = vmatmul.f32.gmra.mxu1 %v4232_v35 }
 0x18a   :  { %v4477_v29 = vadd.f32 %v746_v5, %v624_v52  ;;  %1128 = vmatmul.f32.gmra.mxu2 %v4262_v63 }
 0x18c   :  { %1309 = vmatmul.f32.gmra.mxu3 %v4232_v35 }
 0x18d   :  { %v323_v1 = vpop.f32.mrf.mxu0  ;;  %v508_v28 = vpop.f32.mrf.mxu1 }
 0x18e   :  { %v505_v13 = vadd.f32 %v504_v48, %v323_v1  ;;  %v628_v2 = vpop.f32.mrf.mxu2 }
 0x18f   :  { %v752_v9 = vpop.f32.mrf.mxu3 }
 0x190   :  { %v629_v36 = vadd.f32 %v628_v2, %v505_v13  ;;  %890 = vmatmul.f32.gmra.mxu0 %v4232_v35  ;;  %991 = vmatmul.f32.gmra.mxu1 %v5634_v50 }
 0x192   :  { %v4483_v16 = vadd.f32 %v752_v9, %v629_v36  ;;  %1136 = vmatmul.f32.gmra.mxu2 %v4303_v30 }
 0x194   :  { %1313 = vmatmul.f32.gmra.mxu3 %v5634_v50 }
 0x195   :  { %v331_v57 = vpop.f32.mrf.mxu0  ;;  %v512_v33 = vpop.f32.mrf.mxu1 }
 0x196   :  { %v509_v61 = vadd.f32 %v508_v28, %v331_v57  ;;  %v633_v46 = vpop.f32.mrf.mxu2  ;;  %v104_v57 = vld [vmem:[#allocation5 + $0x1f0] sm:$0xff] }
 0x197   :  { %v758_v5 = vpop.f32.mrf.mxu3 }
 0x198   :  { %v634_v52 = vadd.f32 %v633_v46, %v509_v61  ;;  %894 = vmatmul.f32.gmra.mxu0 %v5634_v50  ;;  %995 = vmatmul.f32.gmra.mxu1 %v4301_v47  ;;  %v4498_v61 = vand.u32 4294901760, %v104_v57 }
 0x19a   :  { %v4489_v48 = vadd.f32 %v758_v5, %v634_v52  ;;  %1144 = vmatmul.f32.gmra.mxu2 %v4332_v32  ;;  %1818 = vmatpush.msrb.mxu0 %v4498_v61 }
 0x19b   :  { %2269 = vmatpush.msrb.mxu3 %v4498_v61 }
 0x19c   :  { %1317 = vmatmul.f32.gmra.mxu3 %v4301_v47 }
 0x19d   :  { %v339_v1 = vpop.f32.mrf.mxu0  ;;  %v516_v13 = vpop.f32.mrf.mxu1 }
 0x19e   :  { %v513_v2 = vadd.f32 %v512_v33, %v339_v1  ;;  %v638_v9 = vpop.f32.mrf.mxu2  ;;  %v4502_v33 = vsub.f32 %v104_v57, %v4498_v61 }
 0x19f   :  { %v764_v36 = vpop.f32.mrf.mxu3 }
 0x1a0   :  { %v639_v30 = vadd.f32 %v638_v9, %v513_v2  ;;  %898 = vmatmul.f32.gmra.mxu0 %v4301_v47  ;;  %999 = vmatmul.f32.gmra.mxu1 %v4330_v3  ;;  %v5492_v2 = vand.u32 4294901760, %v4502_v33 }
 0x1a1   :  { %2141 = vmatpush.msrb.mxu2 %v4502_v33 }
 0x1a2   :  { %v4495_v28 = vadd.f32 %v764_v36, %v639_v30  ;;  %1152 = vmatmul.f32.gmra.mxu2 %v4360_v11  ;;  %v1981_v36 = vsub.f32 %v4502_v33, %v5492_v2 }
 0x1a4   :  { %1321 = vmatmul.f32.gmra.mxu3 %v4330_v3 }
 0x1a5   :  { %v347_v46 = vpop.f32.mrf.mxu0  ;;  %v520_v5 = vpop.f32.mrf.mxu1 }
 0x1a6   :  { %v517_v52 = vadd.f32 %v516_v13, %v347_v46  ;;  %v643_v1 = vpop.f32.mrf.mxu2  ;;  %v100_v13 = vld [vmem:[#allocation5 + $0x1d0] sm:$0xff]  ;;  %v1982_v46 = vand.u32 4294901760, %v1981_v36 }
 0x1a7   :  { %v770_v30 = vpop.f32.mrf.mxu3  ;;  %v4516_v11 = vand.u32 4294901760, %v100_v13 }
 0x1a8   :  { %v644_v9 = vadd.f32 %v643_v1, %v517_v52  ;;  %902 = vmatmul.f32.gmra.mxu0 %v4330_v3  ;;  %1003 = vmatmul.f32.gmra.mxu1 %v4358_v60 }
 0x1a9   :  { %1983 = vmatpush.msrb.mxu1 %v1982_v46  ;;  %v4520_v1 = vsub.f32 %v100_v13, %v4516_v11  ;;  %1820 = vmatpush.msrb.mxu0 %v4516_v11 }
 0x1aa   :  { %v4513_v57 = vadd.f32 %v770_v30, %v644_v9  ;;  %1160 = vmatmul.f32.gmra.mxu2 %v4388_v17  ;;  %2271 = vmatpush.msrb.mxu3 %v4516_v11 }
 0x1ab   :  { %2144 = vmatpush.msrb.mxu2 %v4520_v1  ;;  %v5499_v9 = vand.u32 4294901760, %v4520_v1 }
 0x1ac   :  { %1325 = vmatmul.f32.gmra.mxu3 %v4358_v60 }
 0x1ad   :  { %v355_v32 = vpop.f32.mrf.mxu0  ;;  %v524_v52 = vpop.f32.mrf.mxu1  ;;  %v1987_v13 = vsub.f32 %v4520_v1, %v5499_v9 }
 0x1ae   :  { %v521_v63 = vadd.f32 %v520_v5, %v355_v32  ;;  %v648_v2 = vpop.f32.mrf.mxu2  ;;  %v96_v32 = vld [vmem:[#allocation5 + $0x1b0] sm:$0xff] }
 0x1af   :  { %v776_v30 = vpop.f32.mrf.mxu3  ;;  %v1988_v5 = vand.u32 4294901760, %v1987_v13  ;;  %v4534_v17 = vand.u32 4294901760, %v96_v32 }
 0x1b0   :  { %v649_v36 = vadd.f32 %v648_v2, %v521_v63  ;;  %906 = vmatmul.f32.gmra.mxu0 %v4358_v60  ;;  %1007 = vmatmul.f32.gmra.mxu1 %v4386_v0 }
 0x1b1   :  { %1989 = vmatpush.msrb.mxu1 %v1988_v5  ;;  %v4538_v2 = vsub.f32 %v96_v32, %v4534_v17  ;;  %1822 = vmatpush.msrb.mxu0 %v4534_v17 }
 0x1b2   :  { %v4531_v46 = vadd.f32 %v776_v30, %v649_v36  ;;  %1168 = vmatmul.f32.gmra.mxu2 %v4412_v14  ;;  %2273 = vmatpush.msrb.mxu3 %v4534_v17  ;;  %v5635_v14 = vld [vmem:[#allocation12_spill] sm:$0xff] }
 0x1b3   :  { %2147 = vmatpush.msrb.mxu2 %v4538_v2  ;;  %v5506_v36 = vand.u32 4294901760, %v4538_v2 }
 0x1b4   :  { %1329 = vmatmul.f32.gmra.mxu3 %v4386_v0 }
 0x1b5   :  { %v363_v58 = vpop.f32.mrf.mxu0  ;;  %v948_v63 = vpop.f32.mrf.mxu1  ;;  %v1993_v32 = vsub.f32 %v4538_v2, %v5506_v36 }
 0x1b6   :  { %v525_v54 = vadd.f32 %v524_v52, %v363_v58  ;;  %v653_v9 = vpop.f32.mrf.mxu2  ;;  %v92_v58 = vld [vmem:[#allocation5 + $0x190] sm:$0xff] }
 0x1b7   :  { %v782_v30 = vpop.f32.mrf.mxu3  ;;  %v1994_v52 = vand.u32 4294901760, %v1993_v32  ;;  %v4552_v26 = vand.u32 4294901760, %v92_v58 }
 0x1b8   :  { %v654_v13 = vadd.f32 %v653_v9, %v525_v54  ;;  %910 = vmatmul.f32.gmra.mxu0 %v4386_v0  ;;  %1497 = vmatmul.f32.vlgmr.msra.gmra.mxu1 %v5635_v14  ;;  %v5667_v14 = vld [vmem:[#allocation51_spill] sm:$0xff] }
 0x1b9   :  { %1995 = vmatpush.msrb.mxu1 %v1994_v52  ;;  %v4556_v9 = vsub.f32 %v92_v58, %v4552_v26  ;;  %1824 = vmatpush.msrb.mxu0 %v4552_v26  ;;  %v5638_v52 = vld [vmem:[#allocation16_spill] sm:$0xff] }
 0x1ba   :  { %v4549_v5 = vadd.f32 %v782_v30, %v654_v13  ;;  %1656 = vmatmul.f32.vlgmr.msra.gmra.mxu2 %v3948_v55  ;;  %2275 = vmatpush.msrb.mxu3 %v4552_v26 }
 0x1bb   :  { %2150 = vmatpush.msrb.mxu2 %v4556_v9  ;;  %v5515_v32 = vand.u32 4294901760, %v4556_v9 }
 0x1bc   :  { %1753 = vmatmul.f32.vlgmr.msra.gmra.mxu3 %v3948_v55 }
 0x1bd   :  { %v851_v20 = vpop.f32.mrf.mxu0  ;;  %v952_v54 = vpop.f32.mrf.mxu1  ;;  %v1999_v58 = vsub.f32 %v4556_v9, %v5515_v32 }
 0x1be   :  { %v852_v36 = vadd.f32 %v851_v20, %v4423_v40  ;;  %v1049_v30 = vpop.f32.mrf.mxu2  ;;  %v88_v20 = vld [vmem:[#allocation5 + $0x170] sm:$0xff] }
 0x1bf   :  { %v1270_v13 = vpop.f32.mrf.mxu3  ;;  %v2000_v40 = vand.u32 4294901760, %v1999_v58  ;;  %v4571_v25 = vand.u32 4294901760, %v88_v20 }
 0x1c0   :  { %v949_v41 = vadd.f32 %v948_v63, %v852_v36  ;;  %v4563_v27 = vadd.f32 %v1270_v13, %v1049_v30  ;;  %1383 = vmatmul.f32.vlgmr.msra.gmra.mxu0 %v5637_v38  ;;  %1503 = vmatmul.f32.gmra.mxu1 %v5638_v52 }
 0x1c1   :  { %2001 = vmatpush.msrb.mxu1 %v2000_v40  ;;  %v4575_v30 = vsub.f32 %v88_v20, %v4571_v25  ;;  %1826 = vmatpush.msrb.mxu0 %v4571_v25  ;;  %v5641_v40 = vld [vmem:[#allocation20_spill] sm:$0xff] }
 0x1c2   :  { %5636 = vst [vmem:[#allocation62_spill] sm:$0xff] %v4563_v27  ;;  %1660 = vmatmul.f32.gmra.mxu2 %v3974_v22  ;;  %2277 = vmatpush.msrb.mxu3 %v4571_v25  ;;  %v48_v27 = vld [vmem:[#allocation5 + $0x30] sm:$0xff] }
 0x1c3   :  { %3429 = vst [vmem:[#allocation7] sm:$0xff] %v949_v41  ;;  %2153 = vmatpush.msrb.mxu2 %v4575_v30  ;;  %v5522_v58 = vand.u32 4294901760, %v4575_v30 }
 0x1c4   :  { %1757 = vmatmul.f32.gmra.mxu3 %v3974_v22  ;;  %v5640_v22 = vld [vmem:[#allocation15_spill] sm:$0xff] }
 0x1c5   :  { %v855_v63 = vpop.f32.mrf.mxu0  ;;  %v956_v36 = vpop.f32.mrf.mxu1  ;;  %v2005_v20 = vsub.f32 %v4575_v30, %v5522_v58 }
 0x1c6   :  { %v856_v13 = vadd.f32 %v855_v63, %v4429_v59  ;;  %v1057_v32 = vpop.f32.mrf.mxu2  ;;  %v84_v59 = vld [vmem:[#allocation5 + $0x150] sm:$0xff] }
 0x1c7   :  { %v1274_v41 = vpop.f32.mrf.mxu3  ;;  %v2006_v63 = vand.u32 4294901760, %v2005_v20  ;;  %v4590_v23 = vand.u32 4294901760, %v84_v59 }
 0x1c8   :  { %v953_v8 = vadd.f32 %v952_v54, %v856_v13  ;;  %v4582_v52 = vadd.f32 %v1274_v41, %v1057_v32  ;;  %1388 = vmatmul.f32.gmra.mxu0 %v5640_v22  ;;  %1509 = vmatmul.f32.gmra.mxu1 %v5641_v40 }
 0x1c9   :  { %2007 = vmatpush.msrb.mxu1 %v2006_v63  ;;  %v4594_v13 = vsub.f32 %v84_v59, %v4590_v23  ;;  %1828 = vmatpush.msrb.mxu0 %v4590_v23  ;;  %v5644_v63 = vld [vmem:[#allocation24_spill] sm:$0xff] }
 0x1ca   :  { %5639 = vst [vmem:[#allocation63_spill] sm:$0xff] %v4582_v52  ;;  %1664 = vmatmul.f32.gmra.mxu2 %v4005_v7  ;;  %2279 = vmatpush.msrb.mxu3 %v4590_v23  ;;  %v5643_v52 = vld [vmem:[#allocation19_spill] sm:$0xff] }
 0x1cb   :  { %3433 = vst [vmem:[#allocation7 + $0x20] sm:$0xff] %v953_v8  ;;  %2156 = vmatpush.msrb.mxu2 %v4594_v13  ;;  %v5525_v20 = vand.u32 4294901760, %v4594_v13 }
 0x1cc   :  { %1761 = vmatmul.f32.gmra.mxu3 %v4005_v7 }
 0x1cd   :  { %v859_v54 = vpop.f32.mrf.mxu0  ;;  %v960_v32 = vpop.f32.mrf.mxu1  ;;  %v2011_v59 = vsub.f32 %v4594_v13, %v5525_v20 }
 0x1ce   :  { %v860_v41 = vadd.f32 %v859_v54, %v4435_v42  ;;  %v1065_v58 = vpop.f32.mrf.mxu2  ;;  %v80_v42 = vld [vmem:[#allocation5 + $0x130] sm:$0xff] }
 0x1cf   :  { %v1278_v8 = vpop.f32.mrf.mxu3  ;;  %v2012_v54 = vand.u32 4294901760, %v2011_v59  ;;  %v4609_v22 = vand.u32 4294901760, %v80_v42 }
 0x1d0   :  { %v957_v40 = vadd.f32 %v956_v36, %v860_v41  ;;  %v4601_v7 = vadd.f32 %v1278_v8, %v1065_v58  ;;  %1393 = vmatmul.f32.gmra.mxu0 %v5643_v52  ;;  %1515 = vmatmul.f32.gmra.mxu1 %v5644_v63 }
 0x1d1   :  { %2013 = vmatpush.msrb.mxu1 %v2012_v54  ;;  %v4613_v41 = vsub.f32 %v80_v42, %v4609_v22  ;;  %1830 = vmatpush.msrb.mxu0 %v4609_v22  ;;  %v5647_v54 = vld [vmem:[#allocation28_spill] sm:$0xff] }
 0x1d2   :  { %5642 = vst [vmem:[#allocation64_spill] sm:$0xff] %v4601_v7  ;;  %1668 = vmatmul.f32.gmra.mxu2 %v4035_v24  ;;  %2281 = vmatpush.msrb.mxu3 %v4609_v22  ;;  %v5646_v7 = vld [vmem:[#allocation23_spill] sm:$0xff] }
 0x1d3   :  { %3437 = vst [vmem:[#allocation7 + $0x40] sm:$0xff] %v957_v40  ;;  %2159 = vmatpush.msrb.mxu2 %v4613_v41  ;;  %v5528_v59 = vand.u32 4294901760, %v4613_v41 }
 0x1d4   :  { %1765 = vmatmul.f32.gmra.mxu3 %v4035_v24 }
 0x1d5   :  { %v863_v36 = vpop.f32.mrf.mxu0  ;;  %v964_v58 = vpop.f32.mrf.mxu1  ;;  %v2017_v42 = vsub.f32 %v4613_v41, %v5528_v59 }
 0x1d6   :  { %v864_v8 = vadd.f32 %v863_v36, %v4441_v21  ;;  %v1073_v20 = vpop.f32.mrf.mxu2  ;;  %v76_v21 = vld [vmem:[#allocation5 + $0x110] sm:$0xff] }
 0x1d7   :  { %v1282_v40 = vpop.f32.mrf.mxu3  ;;  %v2018_v36 = vand.u32 4294901760, %v2017_v42  ;;  %v4628_v52 = vand.u32 4294901760, %v76_v21 }
 0x1d8   :  { %v961_v63 = vadd.f32 %v960_v32, %v864_v8  ;;  %v4620_v24 = vadd.f32 %v1282_v40, %v1073_v20  ;;  %1398 = vmatmul.f32.gmra.mxu0 %v5646_v7  ;;  %1521 = vmatmul.f32.gmra.mxu1 %v5647_v54 }
 0x1d9   :  { %2019 = vmatpush.msrb.mxu1 %v2018_v36  ;;  %v4632_v8 = vsub.f32 %v76_v21, %v4628_v52  ;;  %1832 = vmatpush.msrb.mxu0 %v4628_v52  ;;  %v5650_v36 = vld [vmem:[#allocation32_spill] sm:$0xff] }
 0x1da   :  { %5645 = vst [vmem:[#allocation65_spill] sm:$0xff] %v4620_v24  ;;  %1672 = vmatmul.f32.gmra.mxu2 %v4064_v43  ;;  %2283 = vmatpush.msrb.mxu3 %v4628_v52  ;;  %v5649_v24 = vld [vmem:[#allocation27_spill] sm:$0xff] }
 0x1db   :  { %3441 = vst [vmem:[#allocation7 + $0x60] sm:$0xff] %v961_v63  ;;  %2162 = vmatpush.msrb.mxu2 %v4632_v8  ;;  %v5531_v42 = vand.u32 4294901760, %v4632_v8 }
 0x1dc   :  { %1769 = vmatmul.f32.gmra.mxu3 %v4064_v43 }
 0x1dd   :  { %v867_v32 = vpop.f32.mrf.mxu0  ;;  %v968_v20 = vpop.f32.mrf.mxu1  ;;  %v2023_v21 = vsub.f32 %v4632_v8, %v5531_v42 }
 0x1de   :  { %v868_v40 = vadd.f32 %v867_v32, %v4447_v31  ;;  %v1081_v59 = vpop.f32.mrf.mxu2  ;;  %v72_v31 = vld [vmem:[#allocation5 + $0xf0] sm:$0xff] }
 0x1df   :  { %v1286_v63 = vpop.f32.mrf.mxu3  ;;  %v2024_v32 = vand.u32 4294901760, %v2023_v21  ;;  %v4647_v7 = vand.u32 4294901760, %v72_v31 }
 0x1e0   :  { %v965_v54 = vadd.f32 %v964_v58, %v868_v40  ;;  %v4639_v43 = vadd.f32 %v1286_v63, %v1081_v59  ;;  %1403 = vmatmul.f32.gmra.mxu0 %v5649_v24  ;;  %1527 = vmatmul.f32.gmra.mxu1 %v5650_v36 }
 0x1e1   :  { %2025 = vmatpush.msrb.mxu1 %v2024_v32  ;;  %v4651_v40 = vsub.f32 %v72_v31, %v4647_v7  ;;  %1834 = vmatpush.msrb.mxu0 %v4647_v7  ;;  %v5653_v32 = vld [vmem:[#allocation36_spill] sm:$0xff] }
 0x1e2   :  { %5648 = vst [vmem:[#allocation66_spill] sm:$0xff] %v4639_v43  ;;  %1676 = vmatmul.f32.gmra.mxu2 %v4092_v18  ;;  %2285 = vmatpush.msrb.mxu3 %v4647_v7  ;;  %v5652_v43 = vld [vmem:[#allocation31_spill] sm:$0xff] }
 0x1e3   :  { %3445 = vst [vmem:[#allocation7 + $0x80] sm:$0xff] %v965_v54  ;;  %2165 = vmatpush.msrb.mxu2 %v4651_v40  ;;  %v5534_v21 = vand.u32 4294901760, %v4651_v40 }
 0x1e4   :  { %1773 = vmatmul.f32.gmra.mxu3 %v4092_v18 }
 0x1e5   :  { %v871_v58 = vpop.f32.mrf.mxu0  ;;  %v972_v59 = vpop.f32.mrf.mxu1  ;;  %v2029_v31 = vsub.f32 %v4651_v40, %v5534_v21 }
 0x1e6   :  { %v872_v63 = vadd.f32 %v871_v58, %v4453_v62  ;;  %v1089_v42 = vpop.f32.mrf.mxu2  ;;  %v68_v62 = vld [vmem:[#allocation5 + $0xd0] sm:$0xff] }
 0x1e7   :  { %v1290_v54 = vpop.f32.mrf.mxu3  ;;  %v2030_v58 = vand.u32 4294901760, %v2029_v31  ;;  %v4666_v24 = vand.u32 4294901760, %v68_v62 }
 0x1e8   :  { %v969_v36 = vadd.f32 %v968_v20, %v872_v63  ;;  %v4658_v18 = vadd.f32 %v1290_v54, %v1089_v42  ;;  %1408 = vmatmul.f32.gmra.mxu0 %v5652_v43  ;;  %1533 = vmatmul.f32.gmra.mxu1 %v5653_v32 }
 0x1e9   :  { %2031 = vmatpush.msrb.mxu1 %v2030_v58  ;;  %v4670_v63 = vsub.f32 %v68_v62, %v4666_v24  ;;  %1836 = vmatpush.msrb.mxu0 %v4666_v24  ;;  %v5656_v58 = vld [vmem:[#allocation40_spill] sm:$0xff] }
 0x1ea   :  { %5651 = vst [vmem:[#allocation67_spill] sm:$0xff] %v4658_v18  ;;  %1680 = vmatmul.f32.gmra.mxu2 %v4120_v34  ;;  %2287 = vmatpush.msrb.mxu3 %v4666_v24  ;;  %v5655_v18 = vld [vmem:[#allocation35_spill] sm:$0xff] }
 0x1eb   :  { %3449 = vst [vmem:[#allocation7 + $0xa0] sm:$0xff] %v969_v36  ;;  %2168 = vmatpush.msrb.mxu2 %v4670_v63  ;;  %v5537_v31 = vand.u32 4294901760, %v4670_v63 }
 0x1ec   :  { %1777 = vmatmul.f32.gmra.mxu3 %v4120_v34 }
 0x1ed   :  { %v875_v20 = vpop.f32.mrf.mxu0  ;;  %v976_v42 = vpop.f32.mrf.mxu1  ;;  %v2035_v62 = vsub.f32 %v4670_v63, %v5537_v31 }
 0x1ee   :  { %v876_v54 = vadd.f32 %v875_v20, %v4459_v12  ;;  %v1097_v21 = vpop.f32.mrf.mxu2  ;;  %v64_v12 = vld [vmem:[#allocation5 + $0xb0] sm:$0xff] }
 0x1ef   :  { %v1294_v36 = vpop.f32.mrf.mxu3  ;;  %v2036_v20 = vand.u32 4294901760, %v2035_v62  ;;  %v4685_v43 = vand.u32 4294901760, %v64_v12 }
 0x1f0   :  { %v973_v32 = vadd.f32 %v972_v59, %v876_v54  ;;  %v4677_v34 = vadd.f32 %v1294_v36, %v1097_v21  ;;  %1413 = vmatmul.f32.gmra.mxu0 %v5655_v18  ;;  %1539 = vmatmul.f32.gmra.mxu1 %v5656_v58 }
 0x1f1   :  { %2037 = vmatpush.msrb.mxu1 %v2036_v20  ;;  %v4689_v54 = vsub.f32 %v64_v12, %v4685_v43  ;;  %1838 = vmatpush.msrb.mxu0 %v4685_v43  ;;  %v5659_v20 = vld [vmem:[#allocation44_spill] sm:$0xff] }
 0x1f2   :  { %5654 = vst [vmem:[#allocation68_spill] sm:$0xff] %v4677_v34  ;;  %1684 = vmatmul.f32.gmra.mxu2 %v4148_v19  ;;  %2289 = vmatpush.msrb.mxu3 %v4685_v43  ;;  %v5658_v34 = vld [vmem:[#allocation39_spill] sm:$0xff] }
 0x1f3   :  { %3453 = vst [vmem:[#allocation7 + $0xc0] sm:$0xff] %v973_v32  ;;  %2171 = vmatpush.msrb.mxu2 %v4689_v54  ;;  %v5540_v62 = vand.u32 4294901760, %v4689_v54 }
 0x1f4   :  { %1781 = vmatmul.f32.gmra.mxu3 %v4148_v19 }
 0x1f5   :  { %v879_v59 = vpop.f32.mrf.mxu0  ;;  %v980_v21 = vpop.f32.mrf.mxu1  ;;  %v2041_v12 = vsub.f32 %v4689_v54, %v5540_v62 }
 0x1f6   :  { %v880_v36 = vadd.f32 %v879_v59, %v4465_v44  ;;  %v1105_v31 = vpop.f32.mrf.mxu2  ;;  %v60_v44 = vld [vmem:[#allocation5 + $0x90] sm:$0xff] }
 0x1f7   :  { %v1298_v32 = vpop.f32.mrf.mxu3  ;;  %v2042_v59 = vand.u32 4294901760, %v2041_v12  ;;  %v4704_v18 = vand.u32 4294901760, %v60_v44 }
 0x1f8   :  { %v977_v58 = vadd.f32 %v976_v42, %v880_v36  ;;  %v4696_v19 = vadd.f32 %v1298_v32, %v1105_v31  ;;  %1418 = vmatmul.f32.gmra.mxu0 %v5658_v34  ;;  %1545 = vmatmul.f32.gmra.mxu1 %v5659_v20 }
 0x1f9   :  { %2043 = vmatpush.msrb.mxu1 %v2042_v59  ;;  %v4708_v36 = vsub.f32 %v60_v44, %v4704_v18  ;;  %1840 = vmatpush.msrb.mxu0 %v4704_v18  ;;  %v5662_v59 = vld [vmem:[#allocation48_spill] sm:$0xff] }
 0x1fa   :  { %5657 = vst [vmem:[#allocation69_spill] sm:$0xff] %v4696_v19  ;;  %1688 = vmatmul.f32.gmra.mxu2 %v4176_v4  ;;  %2291 = vmatpush.msrb.mxu3 %v4704_v18  ;;  %v5661_v19 = vld [vmem:[#allocation43_spill] sm:$0xff] }
 0x1fb   :  { %3457 = vst [vmem:[#allocation7 + $0xe0] sm:$0xff] %v977_v58  ;;  %2174 = vmatpush.msrb.mxu2 %v4708_v36  ;;  %v5543_v12 = vand.u32 4294901760, %v4708_v36 }
 0x1fc   :  { %1785 = vmatmul.f32.gmra.mxu3 %v4176_v4 }
 0x1fd   :  { %v883_v42 = vpop.f32.mrf.mxu0  ;;  %v984_v31 = vpop.f32.mrf.mxu1  ;;  %v2047_v44 = vsub.f32 %v4708_v36, %v5543_v12 }
 0x1fe   :  { %v884_v32 = vadd.f32 %v883_v42, %v4471_v6  ;;  %v1113_v62 = vpop.f32.mrf.mxu2  ;;  %v56_v6 = vld [vmem:[#allocation5 + $0x70] sm:$0xff] }
 0x1ff   :  { %v1302_v58 = vpop.f32.mrf.mxu3  ;;  %v2048_v42 = vand.u32 4294901760, %v2047_v44  ;;  %v4723_v34 = vand.u32 4294901760, %v56_v6 }
 0x200   :  { %v981_v20 = vadd.f32 %v980_v21, %v884_v32  ;;  %v4715_v4 = vadd.f32 %v1302_v58, %v1113_v62  ;;  %1423 = vmatmul.f32.gmra.mxu0 %v5661_v19  ;;  %1551 = vmatmul.f32.gmra.mxu1 %v5662_v59 }
 0x201   :  { %2049 = vmatpush.msrb.mxu1 %v2048_v42  ;;  %v4727_v32 = vsub.f32 %v56_v6, %v4723_v34  ;;  %1842 = vmatpush.msrb.mxu0 %v4723_v34  ;;  %v5665_v42 = vld [vmem:[#allocation52_spill] sm:$0xff] }
 0x202   :  { %5660 = vst [vmem:[#allocation70_spill] sm:$0xff] %v4715_v4  ;;  %1692 = vmatmul.f32.gmra.mxu2 %v4204_v39  ;;  %2293 = vmatpush.msrb.mxu3 %v4723_v34  ;;  %v5664_v4 = vld [vmem:[#allocation47_spill] sm:$0xff] }
 0x203   :  { %3461 = vst [vmem:[#allocation7 + $0x100] sm:$0xff] %v981_v20  ;;  %2177 = vmatpush.msrb.mxu2 %v4727_v32  ;;  %v5546_v44 = vand.u32 4294901760, %v4727_v32 }
 0x204   :  { %1789 = vmatmul.f32.gmra.mxu3 %v4204_v39 }
 0x205   :  { %v887_v21 = vpop.f32.mrf.mxu0  ;;  %v988_v62 = vpop.f32.mrf.mxu1  ;;  %v2053_v6 = vsub.f32 %v4727_v32, %v5546_v44 }
 0x206   :  { %v888_v58 = vadd.f32 %v887_v21, %v4477_v29  ;;  %v1121_v12 = vpop.f32.mrf.mxu2  ;;  %v52_v29 = vld [vmem:[#allocation5 + $0x50] sm:$0xff] }
 0x207   :  { %v1306_v20 = vpop.f32.mrf.mxu3  ;;  %v4742_v21 = vand.u32 4294901760, %v52_v29  ;;  %v2054_v19 = vand.u32 4294901760, %v2053_v6 }
 0x208   :  { %v985_v59 = vadd.f32 %v984_v31, %v888_v58  ;;  %v4734_v39 = vadd.f32 %v1306_v20, %v1121_v12  ;;  %1428 = vmatmul.f32.gmra.mxu0 %v5664_v4  ;;  %1557 = vmatmul.f32.gmra.mxu1 %v5665_v42  ;;  %v4749_v12 = vand.u32 4294901760, %v48_v27 }
 0x209   :  { %v4746_v31 = vsub.f32 %v52_v29, %v4742_v21  ;;  %1844 = vmatpush.msrb.mxu0 %v4742_v21  ;;  %2055 = vmatpush.msrb.mxu1 %v2054_v19 }
 0x20a   :  { %5663 = vst [vmem:[#allocation71_spill] sm:$0xff] %v4734_v39  ;;  %1696 = vmatmul.f32.gmra.mxu2 %v4232_v35  ;;  %2295 = vmatpush.msrb.mxu3 %v4742_v21  ;;  %v4756_v29 = vsub.f32 %v48_v27, %v4749_v12 }
 0x20b   :  { %3465 = vst [vmem:[#allocation7 + $0x120] sm:$0xff] %v985_v59  ;;  %v44_v59 = vld [vmem:[#allocation5 + $0x10] sm:$0xff]  ;;  %2180 = vmatpush.msrb.mxu2 %v4746_v31  ;;  %v5549_v6 = vand.u32 4294901760, %v4746_v31  ;;  %1846 = vmatpush.msrb.mxu0 %v4749_v12 }
 0x20c   :  { %1793 = vmatmul.f32.gmra.mxu3 %v4232_v35  ;;  %v4759_v35 = vand.u32 4294901760, %v44_v59  ;;  %v5550_v27 = vand.u32 4294901760, %v4756_v29 }
 0x20d   :  { %v891_v58 = vpop.f32.mrf.mxu0  ;;  %v992_v20 = vpop.f32.mrf.mxu1  ;;  %2297 = vmatpush.msrb.mxu3 %v4749_v12  ;;  %2183 = vmatpush.msrb.mxu2 %v4756_v29 }
 0x20e   :  { %v892_v44 = vadd.f32 %v891_v58, %v4483_v16  ;;  %v1129_v42 = vpop.f32.mrf.mxu2  ;;  %v5668_v16 = vld [vmem:[#allocation56_spill] sm:$0xff]  ;;  %v2059_v58 = vsub.f32 %v4746_v31, %v5549_v6  ;;  %v4772_v38 = vsub.f32 %v44_v59, %v4759_v35  ;;  %1848 = vmatpush.msrb.mxu0 %v4759_v35 }
 0x20f   :  { %v1310_v39 = vpop.f32.mrf.mxu3  ;;  %2299 = vmatpush.msrb.mxu3 %v4759_v35 }
 0x210   :  { %v989_v19 = vadd.f32 %v988_v62, %v892_v44  ;;  %v4762_v4 = vadd.f32 %v1310_v39, %v1129_v42  ;;  %1433 = vmatmul.f32.gmra.mxu0 %v5667_v14  ;;  %1563 = vmatmul.f32.gmra.mxu1 %v5668_v16  ;;  %v2060_v39 = vand.u32 4294901760, %v2059_v58  ;;  %v2065_v62 = vsub.f32 %v4756_v29, %v5550_v27 }
 0x211   :  { %2186 = vmatpush.msrb.mxu2 %v4772_v38  ;;  %v2070_v44 = vand.u32 4294901760, %v4772_v38  ;;  %v5669_v42 = vand.u32 4294901760, %v4502_v33  ;;  %v5670_v27 = vand.u32 4294901760, %v4520_v1  ;;  %v5673_v1 = vand.u32 4294901760, %v4556_v9 }
 0x212   :  { %5666 = vst [vmem:[#allocation72_spill] sm:$0xff] %v4762_v4  ;;  %1700 = vmatmul.f32.gmra.mxu2 %v5634_v50  ;;  %2061 = vmatpush.msrb.mxu1 %v2060_v39  ;;  %v2066_v59 = vand.u32 4294901760, %v2065_v62 }
 0x213   :  { %3469 = vst [vmem:[#allocation7 + $0x140] sm:$0xff] %v989_v19  ;;  %2400 = vmatpush.msra.mxu0 %v5669_v42  ;;  %v2071_v58 = vsub.f32 %v4772_v38, %v2070_v44  ;;  %v5671_v42 = vand.u32 4294901760, %v4538_v2  ;;  %v5675_v2 = vand.u32 4294901760, %v4594_v13  ;;  %v5678_v13 = vand.u32 4294901760, %v4651_v40 }
 0x214   :  { %1797 = vmatmul.f32.gmra.mxu3 %v5634_v50  ;;  %2067 = vmatpush.msrb.mxu1 %v2066_v59  ;;  %v5672_v50 = vld [vmem:[#allocation55_spill] sm:$0xff] }
 0x215   :  { %v895_v19 = vpop.f32.mrf.mxu0  ;;  %v996_v6 = vpop.f32.mrf.mxu1  ;;  %2404 = vmatpush.msra.mxu0 %v5670_v27  ;;  %v2072_v33 = vand.u32 4294901760, %v2071_v58 }
 0x216   :  { %v896_v16 = vadd.f32 %v895_v19, %v4489_v48  ;;  %v1137_v4 = vpop.f32.mrf.mxu2  ;;  %v5674_v48 = vand.u32 4294901760, %v4575_v30  ;;  %v5679_v19 = vand.u32 4294901760, %v4670_v63 }
 0x217   :  { %v1314_v14 = vpop.f32.mrf.mxu3  ;;  %2408 = vmatpush.msra.mxu0 %v5671_v42  ;;  %2073 = vmatpush.msrb.mxu1 %v2072_v33 }
 0x218   :  { %v993_v39 = vadd.f32 %v992_v20, %v896_v16  ;;  %v4793_v62 = vadd.f32 %v1314_v14, %v1137_v4  ;;  %1438 = vmatmul.f32.gmra.mxu0 %v5672_v50  ;;  %1569 = vmatmul.f32.gmra.mxu1 %v4320_v45 }
 0x219   :  { %2412 = vmatpush.msra.mxu0 %v5673_v1  ;;  %2527 = vmatpush.msra.mxu1 %v4498_v61  ;;  %v5676_v61 = vand.u32 4294901760, %v4613_v41 }
 0x21a   :  { %3473 = vst [vmem:[#allocation7 + $0x160] sm:$0xff] %v993_v39  ;;  %1704 = vmatmul.f32.gmra.mxu2 %v4301_v47  ;;  %v5681_v39 = vand.u32 4294901760, %v4708_v36 }
 0x21b   :  { %2416 = vmatpush.msra.mxu0 %v5674_v48  ;;  %2529 = vmatpush.msra.mxu1 %v4516_v11  ;;  %v5677_v11 = vand.u32 4294901760, %v4632_v8 }
 0x21c   :  { %1801 = vmatmul.f32.gmra.mxu3 %v4301_v47 }
 0x21d   :  { %v899_v4 = vpop.f32.mrf.mxu0  ;;  %v1000_v14 = vpop.f32.mrf.mxu1  ;;  %2420 = vmatpush.msra.mxu0 %v5675_v2  ;;  %2531 = vmatpush.msra.mxu1 %v4534_v17  ;;  %v105_v17 = vld [vmem:[#allocation5 + $0x1f8] sm:$0xff] }
 0x21e   :  { %v900_v9 = vadd.f32 %v899_v4, %v4495_v28  ;;  %v1145_v20 = vpop.f32.mrf.mxu2  ;;  %v4819_v28 = vand.u32 4294901760, %v105_v17 }
 0x21f   :  { %v1318_v16 = vpop.f32.mrf.mxu3  ;;  %2424 = vmatpush.msra.mxu0 %v5676_v61  ;;  %2533 = vmatpush.msra.mxu1 %v4552_v26 }
 0x220   :  { %v997_v30 = vadd.f32 %v996_v6, %v900_v9  ;;  %v4811_v27 = vadd.f32 %v1318_v16, %v1145_v20  ;;  %1443 = vmatmul.f32.gmra.mxu0 %v4312_v53  ;;  %1575 = vmatmul.f32.gmra.mxu1 %v4347_v51  ;;  %v4827_v26 = vsub.f32 %v105_v17, %v4819_v28  ;;  %v5684_v16 = vand.u32 4294901760, %v4756_v29 }
 0x221   :  { %2428 = vmatpush.msra.mxu0 %v5677_v11  ;;  %2535 = vmatpush.msra.mxu1 %v4571_v25 }
 0x222   :  { %3477 = vst [vmem:[#allocation7 + $0x180] sm:$0xff] %v997_v30  ;;  %1708 = vmatmul.f32.gmra.mxu2 %v4330_v3  ;;  %v5557_v40 = vand.u32 4294901760, %v4827_v26 }
 0x223   :  { %2432 = vmatpush.msra.mxu0 %v5678_v13  ;;  %2624 = vmatpush.msra.mxu2 %v4819_v28 }
 0x224   :  { %1805 = vmatmul.f32.gmra.mxu3 %v4330_v3  ;;  %2537 = vmatpush.msra.mxu1 %v4590_v23  ;;  %v2787_v23 = vsub.f32 %v4827_v26, %v5557_v40 }
 0x225   :  { %v903_v41 = vpop.f32.mrf.mxu0  ;;  %v1004_v6 = vpop.f32.mrf.mxu1  ;;  %2436 = vmatpush.msra.mxu0 %v5679_v19 }
 0x226   :  { %v904_v8 = vadd.f32 %v903_v41, %v4513_v57  ;;  %v1153_v59 = vpop.f32.mrf.mxu2  ;;  %2539 = vmatpush.msra.mxu1 %v4609_v22  ;;  %v5680_v57 = vand.u32 4294901760, %v4689_v54  ;;  %v101_v22 = vld [vmem:[#allocation5 + $0x1d8] sm:$0xff]  ;;  %v2788_v63 = vand.u32 4294901760, %v2787_v23  ;;  %v5686_v41 = vld [vmem:[#allocation12_spill] sm:$0xff] }
 0x227   :  { %v1322_v25 = vpop.f32.mrf.mxu3  ;;  %v4846_v42 = vand.u32 4294901760, %v101_v22 }
 0x228   :  { %v1001_v58 = vadd.f32 %v1000_v14, %v904_v8  ;;  %v4835_v33 = vadd.f32 %v1322_v25, %v1153_v59  ;;  %1448 = vmatmul.f32.gmra.mxu0 %v4338_v37  ;;  %1581 = vmatmul.f32.gmra.mxu1 %v4375_v15 }
 0x229   :  { %2541 = vmatpush.msra.mxu1 %v4628_v52  ;;  %2440 = vmatpush.msra.mxu0 %v5680_v57  ;;  %v4855_v4 = vsub.f32 %v101_v22, %v4846_v42  ;;  %v5688_v57 = vld [vmem:[#allocation14_spill] sm:$0xff]  ;;  %v5689_v22 = vld [vmem:[#allocation13_spill] sm:$0xff] }
 0x22a   :  { %3481 = vst [vmem:[#allocation7 + $0x1a0] sm:$0xff] %v1001_v58  ;;  %1712 = vmatmul.f32.gmra.mxu2 %v4358_v60  ;;  %2789 = vmatpush.msra.mxu3 %v2788_v63 }
 0x22b   :  { %2543 = vmatpush.msra.mxu1 %v4647_v7  ;;  %2444 = vmatpush.msra.mxu0 %v5681_v39  ;;  %v5682_v7 = vand.u32 4294901760, %v4727_v32  ;;  %v5556_v9 = vand.u32 4294901760, %v4855_v4  ;;  %v97_v32 = vld [vmem:[#allocation5 + $0x1b8] sm:$0xff] }
 0x22c   :  { %1809 = vmatmul.f32.gmra.mxu3 %v4358_v60  ;;  %2626 = vmatpush.msra.mxu2 %v4846_v42  ;;  %v4872_v20 = vand.u32 4294901760, %v97_v32 }
 0x22d   :  { %v907_v1 = vpop.f32.mrf.mxu0  ;;  %v1008_v48 = vpop.f32.mrf.mxu1  ;;  %2545 = vmatpush.msra.mxu1 %v4666_v24  ;;  %2448 = vmatpush.msra.mxu0 %v5682_v7  ;;  %v2793_v24 = vsub.f32 %v4855_v4, %v5556_v9  ;;  %v5705_v9 = vld [vmem:[#allocation27_spill] sm:$0xff] }
 0x22e   :  { %v908_v52 = vadd.f32 %v907_v1, %v4531_v46  ;;  %v1161_v54 = vpop.f32.mrf.mxu2  ;;  %v5683_v46 = vand.u32 4294901760, %v4746_v31  ;;  %2628 = vmatpush.msra.mxu2 %v4872_v20  ;;  %v4882_v17 = vsub.f32 %v97_v32, %v4872_v20  ;;  %v5690_v1 = vld [vmem:[#allocation15_spill] sm:$0xff] }
 0x22f   :  { %v1326_v36 = vpop.f32.mrf.mxu3  ;;  %2547 = vmatpush.msra.mxu1 %v4685_v43  ;;  %v2794_v43 = vand.u32 4294901760, %v2793_v24  ;;  %v5692_v32 = vld [vmem:[#allocation63_spill] sm:$0xff] }
 0x230   :  { %v1005_v14 = vadd.f32 %v1004_v6, %v908_v52  ;;  %v4860_v2 = vadd.f32 %v1326_v36, %v1161_v54  ;;  %1453 = vmatmul.f32.gmra.mxu0 %v4366_v56  ;;  %1587 = vmatmul.f32.gmra.mxu1 %v4403_v10  ;;  %v89_v52 = vld [vmem:[#allocation5 + $0x178] sm:$0xff]  ;;  %v5691_v36 = vld [vmem:[#allocation16_spill] sm:$0xff] }
 0x231   :  { %2452 = vmatpush.msra.mxu0 %v5683_v46  ;;  %2549 = vmatpush.msra.mxu1 %v4704_v18  ;;  %v4917_v54 = vand.u32 4294901760, %v89_v52 }
 0x232   :  { %3485 = vst [vmem:[#allocation7 + $0x1c0] sm:$0xff] %v1005_v14  ;;  %1716 = vmatmul.f32.gmra.mxu2 %v4386_v0  ;;  %2795 = vmatpush.msra.mxu3 %v2794_v43 }
 0x233   :  { %2456 = vmatpush.msra.mxu0 %v5684_v16  ;;  %2551 = vmatpush.msra.mxu1 %v4723_v34  ;;  %v5555_v34 = vand.u32 4294901760, %v4882_v17 }
 0x234   :  { %1813 = vmatmul.f32.gmra.mxu3 %v4386_v0 }
 0x235   :  { %v911_v31 = vpop.f32.mrf.mxu0  ;;  %v1498_v61 = vpop.f32.mrf.mxu1  ;;  %2460 = vmatpush.msra.mxu0 %v2070_v44  ;;  %2553 = vmatpush.msra.mxu1 %v4742_v21  ;;  %v2799_v38 = vsub.f32 %v4882_v17, %v5555_v34  ;;  %v93_v44 = vld [vmem:[#allocation5 + $0x198] sm:$0xff] }
 0x236   :  { %v912_v30 = vadd.f32 %v911_v31, %v4549_v5  ;;  %v1169_v11 = vpop.f32.mrf.mxu2  ;;  %v5685_v5 = vld [vmem:[#allocation11_spill] sm:$0xff]  ;;  %v4897_v21 = vand.u32 4294901760, %v93_v44  ;;  %v4926_v31 = vsub.f32 %v89_v52, %v4917_v54 }
 0x237   :  { %v1330_v18 = vpop.f32.mrf.mxu3  ;;  %2555 = vmatpush.msra.mxu1 %v4749_v12  ;;  %v2800_v6 = vand.u32 4294901760, %v2799_v38  ;;  %v5687_v12 = vld [vmem:[#allocation62_spill] sm:$0xff] }
 0x238   :  { %v1009_v29 = vadd.f32 %v1008_v48, %v912_v30  ;;  %v4887_v13 = vadd.f32 %v1330_v18, %v1169_v11  ;;  %1458 = vmatmul.f32.gmra.mxu0 %v4394_v49  ;;  %2075 = vmatmul.f32.vlgmr.msrb.gmra.mxu1 %v3948_v55  ;;  %v4905_v58 = vsub.f32 %v93_v44, %v4897_v21  ;;  %v5693_v11 = vld [vmem:[#allocation18_spill] sm:$0xff]  ;;  %v5694_v18 = vld [vmem:[#allocation17_spill] sm:$0xff]  ;;  %v5695_v44 = vld [vmem:[#allocation19_spill] sm:$0xff] }
 0x239   :  { %2557 = vmatpush.msra.mxu1 %v4759_v35  ;;  %2630 = vmatpush.msra.mxu2 %v4897_v21 }
 0x23a   :  { %3489 = vst [vmem:[#allocation7 + $0x1e0] sm:$0xff] %v1009_v29  ;;  %2189 = vmatmul.f32.vlgmr.msrb.gmra.mxu2 %v5685_v5  ;;  %2801 = vmatpush.msra.mxu3 %v2800_v6  ;;  %v5554_v63 = vand.u32 4294901760, %v4905_v58  ;;  %v5553_v29 = vand.u32 4294901760, %v4926_v31  ;;  %v5715_v5 = vld [vmem:[#allocation35_spill] sm:$0xff] }
 0x23b   :  { %3075 = vmatpush.msrb.mxu1 %v4819_v28  ;;  %2632 = vmatpush.msra.mxu2 %v4917_v54 }
 0x23c   :  { %2303 = vmatmul.f32.vlgmr.msrb.gmra.mxu3 %v5686_v41  ;;  %v2805_v48 = vsub.f32 %v4905_v58, %v5554_v63  ;;  %v2811_v6 = vsub.f32 %v4926_v31, %v5553_v29 }
 0x23d   :  { %v1384_v8 = vpop.f32.mrf.mxu0  ;;  %v1504_v59 = vpop.f32.mrf.mxu1  ;;  %3077 = vmatpush.msrb.mxu1 %v4846_v42 }
 0x23e   :  { %v1385_v19 = vadd.f32 %v1384_v8, %v5687_v12  ;;  %v1657_v25 = vpop.f32.mrf.mxu2  ;;  %v2806_v14 = vand.u32 4294901760, %v2805_v48  ;;  %v85_v8 = vld [vmem:[#allocation5 + $0x158] sm:$0xff] }
 0x23f   :  { %v1754_v23 = vpop.f32.mrf.mxu3  ;;  %3079 = vmatpush.msrb.mxu1 %v4872_v20  ;;  %v4938_v12 = vand.u32 4294901760, %v85_v8 }
 0x240   :  { %v1499_v35 = vadd.f32 %v1498_v61, %v1385_v19  ;;  %1854 = vmatmul.f32.vlgmr.msrb.gmra.mxu0 %v5688_v57  ;;  %2079 = vmatmul.f32.gmra.mxu1 %v5689_v22  ;;  %v45_v57 = vld [vmem:[#allocation5 + $0x18] sm:$0xff] }
 0x241   :  { %2947 = vmatpush.msrb.mxu0 %v4827_v26  ;;  %3081 = vmatpush.msrb.mxu1 %v4897_v21 }
 0x242   :  { %v1658_v39 = vadd.f32 %v1657_v25, %v1499_v35  ;;  %2194 = vmatmul.f32.gmra.mxu2 %v5690_v1  ;;  %2807 = vmatpush.msra.mxu3 %v2806_v14  ;;  %v2812_v25 = vand.u32 4294901760, %v2811_v6  ;;  %v81_v6 = vld [vmem:[#allocation5 + $0x138] sm:$0xff] }
 0x243   :  { %2950 = vmatpush.msrb.mxu0 %v4855_v4  ;;  %3083 = vmatpush.msrb.mxu1 %v4917_v54 }
 0x244   :  { %v1755_v7 = vadd.f32 %v1754_v23, %v1658_v39  ;;  %2309 = vmatmul.f32.gmra.mxu3 %v5691_v36  ;;  %2634 = vmatpush.msra.mxu2 %v4938_v12  ;;  %v5697_v39 = vld [vmem:[#allocation64_spill] sm:$0xff] }
 0x245   :  { %v1389_v46 = vpop.f32.mrf.mxu0  ;;  %v1510_v24 = vpop.f32.mrf.mxu1  ;;  %2953 = vmatpush.msrb.mxu0 %v4882_v17  ;;  %3085 = vmatpush.msrb.mxu1 %v4938_v12 }
 0x246   :  { %3430 = vst [vmem:[#allocation7 + $0x8] sm:$0xff] %v1755_v7  ;;  %v1390_v16 = vadd.f32 %v1389_v46, %v5692_v32  ;;  %v1661_v43 = vpop.f32.mrf.mxu2  ;;  %2813 = vmatpush.msra.mxu3 %v2812_v25  ;;  %v4945_v7 = vsub.f32 %v85_v8, %v4938_v12  ;;  %v5698_v32 = vld [vmem:[#allocation22_spill] sm:$0xff]  ;;  %v4955_v8 = vand.u32 4294901760, %v81_v6 }
 0x247   :  { %v1758_v61 = vpop.f32.mrf.mxu3  ;;  %2956 = vmatpush.msrb.mxu0 %v4905_v58 }
 0x248   :  { %v1505_v30 = vadd.f32 %v1504_v59, %v1390_v16  ;;  %1862 = vmatmul.f32.gmra.mxu0 %v5693_v11  ;;  %2083 = vmatmul.f32.gmra.mxu1 %v5694_v18  ;;  %v5696_v59 = vld [vmem:[#allocation20_spill] sm:$0xff]  ;;  %v5699_v16 = vld [vmem:[#allocation21_spill] sm:$0xff]  ;;  %v5735_v18 = vld [vmem:[#allocation51_spill] sm:$0xff] }
 0x249   :  { %2959 = vmatpush.msrb.mxu0 %v4926_v31  ;;  %2636 = vmatpush.msra.mxu2 %v4955_v8  ;;  %v49_v11 = vld [vmem:[#allocation5 + $0x38] sm:$0xff] }
 0x24a   :  { %v1662_v38 = vadd.f32 %v1661_v43, %v1505_v30  ;;  %2199 = vmatmul.f32.gmra.mxu2 %v5695_v44  ;;  %v5552_v43 = vand.u32 4294901760, %v4945_v7  ;;  %v5700_v30 = vld [vmem:[#allocation23_spill] sm:$0xff]  ;;  %3087 = vmatpush.msrb.mxu1 %v4955_v8  ;;  %v5086_v22 = vand.u32 4294901760, %v49_v11 }
 0x24b   :  { %2962 = vmatpush.msrb.mxu0 %v4945_v7  ;;  %v5710_v44 = vld [vmem:[#allocation31_spill] sm:$0xff] }
 0x24c   :  { %v1759_v19 = vadd.f32 %v1758_v61, %v1662_v38  ;;  %2315 = vmatmul.f32.gmra.mxu3 %v5696_v59  ;;  %v2817_v38 = vsub.f32 %v4945_v7, %v5552_v43  ;;  %v4962_v43 = vsub.f32 %v81_v6, %v4955_v8 }
 0x24d   :  { %v1394_v23 = vpop.f32.mrf.mxu0  ;;  %v1516_v35 = vpop.f32.mrf.mxu1 }
 0x24e   :  { %3434 = vst [vmem:[#allocation7 + $0x28] sm:$0xff] %v1759_v19  ;;  %v1395_v48 = vadd.f32 %v1394_v23, %v5697_v39  ;;  %v1665_v52 = vpop.f32.mrf.mxu2  ;;  %v2818_v25 = vand.u32 4294901760, %v2817_v38  ;;  %v5558_v38 = vand.u32 4294901760, %v4962_v43  ;;  %2965 = vmatpush.msrb.mxu0 %v4962_v43 }
 0x24f   :  { %v1762_v14 = vpop.f32.mrf.mxu3 }
 0x250   :  { %v1511_v46 = vadd.f32 %v1510_v24, %v1395_v48  ;;  %1870 = vmatmul.f32.gmra.mxu0 %v5698_v32  ;;  %2087 = vmatmul.f32.gmra.mxu1 %v5699_v16  ;;  %v5701_v24 = vld [vmem:[#allocation24_spill] sm:$0xff]  ;;  %v5702_v48 = vld [vmem:[#allocation65_spill] sm:$0xff]  ;;  %v5730_v16 = vld [vmem:[#allocation47_spill] sm:$0xff] }
 0x251   :  { %2819 = vmatpush.msra.mxu3 %v2818_v25  ;;  %v77_v25 = vld [vmem:[#allocation5 + $0x118] sm:$0xff] }
 0x252   :  { %v1666_v61 = vadd.f32 %v1665_v52, %v1511_v46  ;;  %2204 = vmatmul.f32.gmra.mxu2 %v5700_v30  ;;  %v4972_v6 = vand.u32 4294901760, %v77_v25 }
 0x254   :  { %v1763_v19 = vadd.f32 %v1762_v14, %v1666_v61  ;;  %2321 = vmatmul.f32.gmra.mxu3 %v5701_v24  ;;  %v5703_v14 = vld [vmem:[#allocation26_spill] sm:$0xff]  ;;  %v5704_v61 = vld [vmem:[#allocation25_spill] sm:$0xff]  ;;  %2638 = vmatpush.msra.mxu2 %v4972_v6 }
 0x255   :  { %v1399_v23 = vpop.f32.mrf.mxu0  ;;  %v1522_v39 = vpop.f32.mrf.mxu1  ;;  %3089 = vmatpush.msrb.mxu1 %v4972_v6 }
 0x256   :  { %3438 = vst [vmem:[#allocation7 + $0x48] sm:$0xff] %v1763_v19  ;;  %v1400_v52 = vadd.f32 %v1399_v23, %v5702_v48  ;;  %v1669_v46 = vpop.f32.mrf.mxu2  ;;  %v2823_v19 = vsub.f32 %v4962_v43, %v5558_v38  ;;  %v4979_v38 = vsub.f32 %v77_v25, %v4972_v6 }
 0x257   :  { %v1766_v29 = vpop.f32.mrf.mxu3 }
 0x258   :  { %v1517_v63 = vadd.f32 %v1516_v35, %v1400_v52  ;;  %1878 = vmatmul.f32.gmra.mxu0 %v5703_v14  ;;  %2091 = vmatmul.f32.gmra.mxu1 %v5704_v61  ;;  %v5706_v35 = vld [vmem:[#allocation28_spill] sm:$0xff]  ;;  %v2824_v48 = vand.u32 4294901760, %v2823_v19  ;;  %v5559_v19 = vand.u32 4294901760, %v4979_v38  ;;  %v5725_v61 = vld [vmem:[#allocation43_spill] sm:$0xff] }
 0x259   :  { %2968 = vmatpush.msrb.mxu0 %v4979_v38 }
 0x25a   :  { %v1670_v34 = vadd.f32 %v1669_v46, %v1517_v63  ;;  %2209 = vmatmul.f32.gmra.mxu2 %v5705_v9  ;;  %v5707_v63 = vld [vmem:[#allocation66_spill] sm:$0xff]  ;;  %2825 = vmatpush.msra.mxu3 %v2824_v48 }
 0x25b   :  { %v73_v48 = vld [vmem:[#allocation5 + $0xf8] sm:$0xff] }
 0x25c   :  { %v1767_v23 = vadd.f32 %v1766_v29, %v1670_v34  ;;  %2327 = vmatmul.f32.gmra.mxu3 %v5706_v35  ;;  %v5708_v34 = vld [vmem:[#allocation30_spill] sm:$0xff]  ;;  %v5709_v29 = vld [vmem:[#allocation29_spill] sm:$0xff]  ;;  %v4989_v25 = vand.u32 4294901760, %v73_v48 }
 0x25d   :  { %v1404_v52 = vpop.f32.mrf.mxu0  ;;  %v1528_v40 = vpop.f32.mrf.mxu1 }
 0x25e   :  { %3442 = vst [vmem:[#allocation7 + $0x68] sm:$0xff] %v1767_v23  ;;  %v1405_v46 = vadd.f32 %v1404_v52, %v5707_v63  ;;  %v1673_v9 = vpop.f32.mrf.mxu2  ;;  %v2829_v23 = vsub.f32 %v4979_v38, %v5559_v19  ;;  %2640 = vmatpush.msra.mxu2 %v4989_v25  ;;  %3091 = vmatpush.msrb.mxu1 %v4989_v25 }
 0x25f   :  { %v1770_v30 = vpop.f32.mrf.mxu3  ;;  %v4996_v19 = vsub.f32 %v73_v48, %v4989_v25 }
 0x260   :  { %v1523_v24 = vadd.f32 %v1522_v39, %v1405_v46  ;;  %1886 = vmatmul.f32.gmra.mxu0 %v5708_v34  ;;  %2095 = vmatmul.f32.gmra.mxu1 %v5709_v29  ;;  %v5711_v39 = vld [vmem:[#allocation32_spill] sm:$0xff]  ;;  %v2830_v63 = vand.u32 4294901760, %v2829_v23  ;;  %v5720_v29 = vld [vmem:[#allocation39_spill] sm:$0xff] }
 0x261   :  { %v5560_v23 = vand.u32 4294901760, %v4996_v19  ;;  %2971 = vmatpush.msrb.mxu0 %v4996_v19 }
 0x262   :  { %v1674_v35 = vadd.f32 %v1673_v9, %v1523_v24  ;;  %2214 = vmatmul.f32.gmra.mxu2 %v5710_v44  ;;  %v5712_v9 = vld [vmem:[#allocation67_spill] sm:$0xff]  ;;  %2831 = vmatpush.msra.mxu3 %v2830_v63  ;;  %v69_v63 = vld [vmem:[#allocation5 + $0xd8] sm:$0xff] }
 0x263   :  { %v5006_v48 = vand.u32 4294901760, %v69_v63 }
 0x264   :  { %v1771_v52 = vadd.f32 %v1770_v30, %v1674_v35  ;;  %2333 = vmatmul.f32.gmra.mxu3 %v5711_v39  ;;  %v5713_v30 = vld [vmem:[#allocation34_spill] sm:$0xff]  ;;  %v5714_v35 = vld [vmem:[#allocation33_spill] sm:$0xff] }
 0x265   :  { %v1409_v46 = vpop.f32.mrf.mxu0  ;;  %v1534_v59 = vpop.f32.mrf.mxu1  ;;  %2642 = vmatpush.msra.mxu2 %v5006_v48  ;;  %3093 = vmatpush.msrb.mxu1 %v5006_v48 }
 0x266   :  { %3446 = vst [vmem:[#allocation7 + $0x88] sm:$0xff] %v1771_v52  ;;  %v1410_v24 = vadd.f32 %v1409_v46, %v5712_v9  ;;  %v1677_v44 = vpop.f32.mrf.mxu2  ;;  %v2835_v52 = vsub.f32 %v4996_v19, %v5560_v23  ;;  %v5013_v23 = vsub.f32 %v69_v63, %v5006_v48 }
 0x267   :  { %v1774_v1 = vpop.f32.mrf.mxu3 }
 0x268   :  { %v1529_v36 = vadd.f32 %v1528_v40, %v1410_v24  ;;  %1894 = vmatmul.f32.gmra.mxu0 %v5713_v30  ;;  %2099 = vmatmul.f32.gmra.mxu1 %v5714_v35  ;;  %v5716_v40 = vld [vmem:[#allocation36_spill] sm:$0xff]  ;;  %v2836_v9 = vand.u32 4294901760, %v2835_v52  ;;  %v5561_v52 = vand.u32 4294901760, %v5013_v23 }
 0x269   :  { %2974 = vmatpush.msrb.mxu0 %v5013_v23 }
 0x26a   :  { %v1678_v39 = vadd.f32 %v1677_v44, %v1529_v36  ;;  %2219 = vmatmul.f32.gmra.mxu2 %v5715_v5  ;;  %v5717_v36 = vld [vmem:[#allocation68_spill] sm:$0xff]  ;;  %2837 = vmatpush.msra.mxu3 %v2836_v9  ;;  %v65_v9 = vld [vmem:[#allocation5 + $0xb8] sm:$0xff] }
 0x26b   :  { %v5023_v63 = vand.u32 4294901760, %v65_v9 }
 0x26c   :  { %v1775_v46 = vadd.f32 %v1774_v1, %v1678_v39  ;;  %2339 = vmatmul.f32.gmra.mxu3 %v5716_v40  ;;  %v5718_v1 = vld [vmem:[#allocation38_spill] sm:$0xff]  ;;  %v5719_v39 = vld [vmem:[#allocation37_spill] sm:$0xff] }
 0x26d   :  { %v1414_v24 = vpop.f32.mrf.mxu0  ;;  %v1540_v41 = vpop.f32.mrf.mxu1  ;;  %2644 = vmatpush.msra.mxu2 %v5023_v63  ;;  %3095 = vmatpush.msrb.mxu1 %v5023_v63 }
 0x26e   :  { %3450 = vst [vmem:[#allocation7 + $0xa8] sm:$0xff] %v1775_v46  ;;  %v1415_v44 = vadd.f32 %v1414_v24, %v5717_v36  ;;  %v1681_v5 = vpop.f32.mrf.mxu2  ;;  %v2841_v46 = vsub.f32 %v5013_v23, %v5561_v52  ;;  %v5030_v52 = vsub.f32 %v65_v9, %v5023_v63 }
 0x26f   :  { %v1778_v35 = vpop.f32.mrf.mxu3 }
 0x270   :  { %v1535_v30 = vadd.f32 %v1534_v59, %v1415_v44  ;;  %1902 = vmatmul.f32.gmra.mxu0 %v5718_v1  ;;  %2103 = vmatmul.f32.gmra.mxu1 %v5719_v39  ;;  %v5721_v59 = vld [vmem:[#allocation40_spill] sm:$0xff]  ;;  %v2842_v36 = vand.u32 4294901760, %v2841_v46  ;;  %v5562_v46 = vand.u32 4294901760, %v5030_v52 }
 0x271   :  { %2977 = vmatpush.msrb.mxu0 %v5030_v52 }
 0x272   :  { %v1682_v40 = vadd.f32 %v1681_v5, %v1535_v30  ;;  %2224 = vmatmul.f32.gmra.mxu2 %v5720_v29  ;;  %v5722_v5 = vld [vmem:[#allocation69_spill] sm:$0xff]  ;;  %2843 = vmatpush.msra.mxu3 %v2842_v36  ;;  %v61_v36 = vld [vmem:[#allocation5 + $0x98] sm:$0xff] }
 0x273   :  { %v5040_v9 = vand.u32 4294901760, %v61_v36 }
 0x274   :  { %v1779_v24 = vadd.f32 %v1778_v35, %v1682_v40  ;;  %2345 = vmatmul.f32.gmra.mxu3 %v5721_v59  ;;  %v5723_v35 = vld [vmem:[#allocation42_spill] sm:$0xff]  ;;  %v5724_v40 = vld [vmem:[#allocation41_spill] sm:$0xff] }
 0x275   :  { %v1419_v44 = vpop.f32.mrf.mxu0  ;;  %v1546_v39 = vpop.f32.mrf.mxu1  ;;  %2646 = vmatpush.msra.mxu2 %v5040_v9  ;;  %3097 = vmatpush.msrb.mxu1 %v5040_v9 }
 0x276   :  { %3454 = vst [vmem:[#allocation7 + $0xc8] sm:$0xff] %v1779_v24  ;;  %v1420_v30 = vadd.f32 %v1419_v44, %v5722_v5  ;;  %v1685_v29 = vpop.f32.mrf.mxu2  ;;  %v2847_v24 = vsub.f32 %v5030_v52, %v5562_v46  ;;  %v5047_v46 = vsub.f32 %v61_v36, %v5040_v9 }
 0x277   :  { %v1782_v1 = vpop.f32.mrf.mxu3 }
 0x278   :  { %v1541_v34 = vadd.f32 %v1540_v41, %v1420_v30  ;;  %1910 = vmatmul.f32.gmra.mxu0 %v5723_v35  ;;  %2107 = vmatmul.f32.gmra.mxu1 %v5724_v40  ;;  %v5726_v41 = vld [vmem:[#allocation44_spill] sm:$0xff]  ;;  %v2848_v5 = vand.u32 4294901760, %v2847_v24  ;;  %v5563_v24 = vand.u32 4294901760, %v5047_v46 }
 0x279   :  { %2980 = vmatpush.msrb.mxu0 %v5047_v46 }
 0x27a   :  { %v1686_v59 = vadd.f32 %v1685_v29, %v1541_v34  ;;  %2229 = vmatmul.f32.gmra.mxu2 %v5725_v61  ;;  %v5727_v34 = vld [vmem:[#allocation70_spill] sm:$0xff]  ;;  %2849 = vmatpush.msra.mxu3 %v2848_v5 }
 0x27b   :  { %v57_v5 = vld [vmem:[#allocation5 + $0x78] sm:$0xff] }
 0x27c   :  { %v1783_v44 = vadd.f32 %v1782_v1, %v1686_v59  ;;  %2351 = vmatmul.f32.gmra.mxu3 %v5726_v41  ;;  %v5728_v1 = vld [vmem:[#allocation46_spill] sm:$0xff]  ;;  %v5729_v59 = vld [vmem:[#allocation45_spill] sm:$0xff]  ;;  %v5057_v36 = vand.u32 4294901760, %v57_v5 }
 0x27d   :  { %v1424_v30 = vpop.f32.mrf.mxu0  ;;  %v1552_v40 = vpop.f32.mrf.mxu1 }
 0x27e   :  { %3458 = vst [vmem:[#allocation7 + $0xe8] sm:$0xff] %v1783_v44  ;;  %v1425_v29 = vadd.f32 %v1424_v30, %v5727_v34  ;;  %v1689_v61 = vpop.f32.mrf.mxu2  ;;  %v2853_v44 = vsub.f32 %v5047_v46, %v5563_v24  ;;  %2648 = vmatpush.msra.mxu2 %v5057_v36  ;;  %3099 = vmatpush.msrb.mxu1 %v5057_v36 }
 0x27f   :  { %v1786_v35 = vpop.f32.mrf.mxu3  ;;  %v5064_v24 = vsub.f32 %v57_v5, %v5057_v36 }
 0x280   :  { %v1547_v14 = vadd.f32 %v1546_v39, %v1425_v29  ;;  %1918 = vmatmul.f32.gmra.mxu0 %v5728_v1  ;;  %2111 = vmatmul.f32.gmra.mxu1 %v5729_v59  ;;  %v5731_v39 = vld [vmem:[#allocation48_spill] sm:$0xff]  ;;  %v2854_v34 = vand.u32 4294901760, %v2853_v44 }
 0x281   :  { %v5564_v44 = vand.u32 4294901760, %v5064_v24  ;;  %2983 = vmatpush.msrb.mxu0 %v5064_v24 }
 0x282   :  { %v1690_v41 = vadd.f32 %v1689_v61, %v1547_v14  ;;  %2234 = vmatmul.f32.gmra.mxu2 %v5730_v16  ;;  %v5732_v14 = vld [vmem:[#allocation71_spill] sm:$0xff]  ;;  %2855 = vmatpush.msra.mxu3 %v2854_v34  ;;  %v53_v34 = vld [vmem:[#allocation5 + $0x58] sm:$0xff] }
 0x283   :  { %v5074_v5 = vand.u32 4294901760, %v53_v34 }
 0x284   :  { %v1787_v30 = vadd.f32 %v1786_v35, %v1690_v41  ;;  %2357 = vmatmul.f32.gmra.mxu3 %v5731_v39  ;;  %v5733_v35 = vld [vmem:[#allocation50_spill] sm:$0xff]  ;;  %v5734_v41 = vld [vmem:[#allocation49_spill] sm:$0xff] }
 0x285   :  { %v1429_v29 = vpop.f32.mrf.mxu0  ;;  %v1558_v59 = vpop.f32.mrf.mxu1  ;;  %2650 = vmatpush.msra.mxu2 %v5074_v5  ;;  %3101 = vmatpush.msrb.mxu1 %v5074_v5 }
 0x286   :  { %3462 = vst [vmem:[#allocation7 + $0x108] sm:$0xff] %v1787_v30  ;;  %v1430_v61 = vadd.f32 %v1429_v29, %v5732_v14  ;;  %v1693_v16 = vpop.f32.mrf.mxu2  ;;  %v2859_v30 = vsub.f32 %v5064_v24, %v5564_v44  ;;  %v5081_v44 = vsub.f32 %v53_v34, %v5074_v5 }
 0x287   :  { %v1790_v1 = vpop.f32.mrf.mxu3  ;;  %3103 = vmatpush.msrb.mxu1 %v5086_v22  ;;  %2652 = vmatpush.msra.mxu2 %v5086_v22 }
 0x288   :  { %v1553_v32 = vadd.f32 %v1552_v40, %v1430_v61  ;;  %1926 = vmatmul.f32.gmra.mxu0 %v5733_v35  ;;  %2115 = vmatmul.f32.gmra.mxu1 %v5734_v41  ;;  %v5736_v40 = vld [vmem:[#allocation52_spill] sm:$0xff]  ;;  %v2860_v14 = vand.u32 4294901760, %v2859_v30  ;;  %v5739_v30 = vld [vmem:[#allocation53_spill] sm:$0xff] }
 0x289   :  { %2986 = vmatpush.msrb.mxu0 %v5081_v44 }
 0x28a   :  { %v1694_v39 = vadd.f32 %v1693_v16, %v1553_v32  ;;  %2239 = vmatmul.f32.gmra.mxu2 %v5735_v18  ;;  %v5737_v32 = vld [vmem:[#allocation72_spill] sm:$0xff]  ;;  %2861 = vmatpush.msra.mxu3 %v2860_v14  ;;  %v5096_v14 = vand.u32 4294901760, %v45_v57 }
 0x28c   :  { %v1791_v29 = vadd.f32 %v1790_v1, %v1694_v39  ;;  %2363 = vmatmul.f32.gmra.mxu3 %v5736_v40  ;;  %v5738_v39 = vld [vmem:[#allocation54_spill] sm:$0xff]  ;;  %v5565_v40 = vand.u32 4294901760, %v5081_v44  ;;  %2654 = vmatpush.msra.mxu2 %v5096_v14 }
 0x28d   :  { %v1434_v61 = vpop.f32.mrf.mxu0  ;;  %v1564_v41 = vpop.f32.mrf.mxu1  ;;  %3105 = vmatpush.msrb.mxu1 %v5096_v14 }
 0x28e   :  { %3466 = vst [vmem:[#allocation7 + $0x128] sm:$0xff] %v1791_v29  ;;  %v1435_v16 = vadd.f32 %v1434_v61, %v5737_v32  ;;  %v1697_v18 = vpop.f32.mrf.mxu2  ;;  %v2865_v34 = vsub.f32 %v5081_v44, %v5565_v40  ;;  %v5740_v32 = vld [vmem:[#allocation56_spill] sm:$0xff] }
 0x28f   :  { %v1794_v35 = vpop.f32.mrf.mxu3 }
 0x290   :  { %v1559_v1 = vadd.f32 %v1558_v59, %v1435_v16  ;;  %1934 = vmatmul.f32.gmra.mxu0 %v5738_v39  ;;  %2119 = vmatmul.f32.gmra.mxu1 %v5739_v30  ;;  %v5094_v59 = vsub.f32 %v49_v11, %v5086_v22  ;;  %v2866_v16 = vand.u32 4294901760, %v2865_v34  ;;  %v5741_v34 = vand.u32 4294901760, %v4827_v26  ;;  %v5742_v39 = vld [vmem:[#allocation57_spill] sm:$0xff] }
 0x292   :  { %v1698_v29 = vadd.f32 %v1697_v18, %v1559_v1  ;;  %2244 = vmatmul.f32.gmra.mxu2 %v5672_v50  ;;  %v5567_v18 = vand.u32 4294901760, %v5094_v59  ;;  %v5103_v1 = vsub.f32 %v45_v57, %v5096_v14  ;;  %2989 = vmatpush.msrb.mxu0 %v5094_v59 }
 0x293   :  { %2867 = vmatpush.msra.mxu3 %v2866_v16  ;;  %3206 = vmatpush.msrb.mxu2 %v5741_v34  ;;  %v5744_v34 = vand.u32 4294901760, %v4882_v17 }
 0x294   :  { %v1795_v61 = vadd.f32 %v1794_v35, %v1698_v29  ;;  %2369 = vmatmul.f32.gmra.mxu3 %v5740_v32  ;;  %v2871_v29 = vsub.f32 %v5094_v59, %v5567_v18  ;;  %v2876_v57 = vand.u32 4294901760, %v5103_v1  ;;  %2992 = vmatpush.msrb.mxu0 %v5103_v1  ;;  %v5745_v18 = vand.u32 4294901760, %v4905_v58 }
 0x295   :  { %v1439_v40 = vpop.f32.mrf.mxu0  ;;  %v1570_v11 = vpop.f32.mrf.mxu1  ;;  %v5748_v58 = vand.u32 4294901760, %v4945_v7 }
 0x296   :  { %3470 = vst [vmem:[#allocation7 + $0x148] sm:$0xff] %v1795_v61  ;;  %v1440_v50 = vadd.f32 %v1439_v40, %v4793_v62  ;;  %v1701_v35 = vpop.f32.mrf.mxu2  ;;  %v2872_v62 = vand.u32 4294901760, %v2871_v29  ;;  %v2877_v40 = vsub.f32 %v5103_v1, %v2876_v57  ;;  %v5743_v61 = vand.u32 4294901760, %v4855_v4 }
 0x297   :  { %v1798_v32 = vpop.f32.mrf.mxu3 }
 0x298   :  { %v1565_v30 = vadd.f32 %v1564_v41, %v1440_v50  ;;  %1942 = vmatmul.f32.gmra.mxu0 %v5742_v39  ;;  %2123 = vmatmul.f32.gmra.mxu1 %v4301_v47  ;;  %v2878_v26 = vand.u32 4294901760, %v2877_v40 }
 0x299   :  { %3210 = vmatpush.msrb.mxu2 %v5743_v61  ;;  %2873 = vmatpush.msra.mxu3 %v2872_v62  ;;  %v5746_v62 = vand.u32 4294901760, %v4926_v31 }
 0x29a   :  { %v1702_v16 = vadd.f32 %v1701_v35, %v1565_v30  ;;  %2249 = vmatmul.f32.gmra.mxu2 %v4312_v53 }
 0x29b   :  { %3214 = vmatpush.msrb.mxu2 %v5744_v34  ;;  %2879 = vmatpush.msra.mxu3 %v2878_v26 }
 0x29c   :  { %v1799_v50 = vadd.f32 %v1798_v32, %v1702_v16  ;;  %2375 = vmatmul.f32.gmra.mxu3 %v4320_v45  ;;  %v5747_v32 = vld [vmem:[#allocation58_spill] sm:$0xff]  ;;  %v5752_v16 = vld [vmem:[#allocation59_spill] sm:$0xff] }
 0x29d   :  { %v1444_v41 = vpop.f32.mrf.mxu0  ;;  %v1576_v29 = vpop.f32.mrf.mxu1  ;;  %3218 = vmatpush.msrb.mxu2 %v5745_v18  ;;  %3333 = vmatpush.msrb.mxu3 %v4819_v28 }
 0x29e   :  { %3474 = vst [vmem:[#allocation7 + $0x168] sm:$0xff] %v1799_v50  ;;  %v1445_v4 = vadd.f32 %v1444_v41, %v4811_v27  ;;  %v1705_v30 = vpop.f32.mrf.mxu2  ;;  %v5749_v27 = vand.u32 4294901760, %v4962_v43  ;;  %v5757_v41 = vld [vmem:[#allocation60_spill] sm:$0xff] }
 0x29f   :  { %v1802_v35 = vpop.f32.mrf.mxu3  ;;  %3222 = vmatpush.msrb.mxu2 %v5746_v62  ;;  %3335 = vmatpush.msrb.mxu3 %v4846_v42  ;;  %v5750_v42 = vand.u32 4294901760, %v4979_v38 }
 0x2a0   :  { %v1571_v17 = vadd.f32 %v1570_v11, %v1445_v4  ;;  %1950 = vmatmul.f32.gmra.mxu0 %v5747_v32  ;;  %2127 = vmatmul.f32.gmra.mxu1 %v4330_v3 }
 0x2a1   :  { %3226 = vmatpush.msrb.mxu2 %v5748_v58  ;;  %3337 = vmatpush.msrb.mxu3 %v4872_v20  ;;  %v5751_v20 = vand.u32 4294901760, %v4996_v19 }
 0x2a2   :  { %v1706_v18 = vadd.f32 %v1705_v30, %v1571_v17  ;;  %2254 = vmatmul.f32.gmra.mxu2 %v4338_v37 }
 0x2a3   :  { %3230 = vmatpush.msrb.mxu2 %v5749_v27  ;;  %3339 = vmatpush.msrb.mxu3 %v4897_v21  ;;  %v5753_v21 = vand.u32 4294901760, %v5013_v23 }
 0x2a4   :  { %v1803_v28 = vadd.f32 %v1802_v35, %v1706_v18  ;;  %2381 = vmatmul.f32.gmra.mxu3 %v4347_v51  ;;  %v5761_v35 = vld [vmem:[#allocation14_spill] sm:$0xff] }
 0x2a5   :  { %v1449_v31 = vpop.f32.mrf.mxu0  ;;  %v1582_v11 = vpop.f32.mrf.mxu1  ;;  %3234 = vmatpush.msrb.mxu2 %v5750_v42  ;;  %3341 = vmatpush.msrb.mxu3 %v4917_v54  ;;  %v5763_v18 = vld [vmem:[#allocation18_spill] sm:$0xff]  ;;  %v5764_v42 = vld [vmem:[#allocation17_spill] sm:$0xff] }
 0x2a6   :  { %3478 = vst [vmem:[#allocation7 + $0x188] sm:$0xff] %v1803_v28  ;;  %v1450_v7 = vadd.f32 %v1449_v31, %v4835_v33  ;;  %v1709_v40 = vpop.f32.mrf.mxu2  ;;  %v5754_v33 = vand.u32 4294901760, %v5030_v52 }
 0x2a7   :  { %v1806_v61 = vpop.f32.mrf.mxu3  ;;  %3238 = vmatpush.msrb.mxu2 %v5751_v20  ;;  %3343 = vmatpush.msrb.mxu3 %v4938_v12  ;;  %v5755_v12 = vand.u32 4294901760, %v5047_v46 }
 0x2a8   :  { %v1577_v43 = vadd.f32 %v1576_v29, %v1450_v7  ;;  %1958 = vmatmul.f32.gmra.mxu0 %v5752_v16  ;;  %2131 = vmatmul.f32.gmra.mxu1 %v4358_v60 }
 0x2a9   :  { %3242 = vmatpush.msrb.mxu2 %v5753_v21  ;;  %3345 = vmatpush.msrb.mxu3 %v4955_v8  ;;  %v5756_v8 = vand.u32 4294901760, %v5064_v24 }
 0x2aa   :  { %v1710_v38 = vadd.f32 %v1709_v40, %v1577_v43  ;;  %2259 = vmatmul.f32.gmra.mxu2 %v4366_v56  ;;  %v5765_v40 = vld [vmem:[#allocation22_spill] sm:$0xff] }
 0x2ab   :  { %3246 = vmatpush.msrb.mxu2 %v5754_v33  ;;  %3347 = vmatpush.msrb.mxu3 %v4972_v6  ;;  %v5758_v6 = vand.u32 4294901760, %v5081_v44 }
 0x2ac   :  { %v1807_v54 = vadd.f32 %v1806_v61, %v1710_v38  ;;  %2387 = vmatmul.f32.gmra.mxu3 %v4375_v15 }
 0x2ad   :  { %v1454_v19 = vpop.f32.mrf.mxu0  ;;  %v1588_v26 = vpop.f32.mrf.mxu1  ;;  %3250 = vmatpush.msrb.mxu2 %v5755_v12  ;;  %3349 = vmatpush.msrb.mxu3 %v4989_v25 }
 0x2ae   :  { %3482 = vst [vmem:[#allocation7 + $0x1a8] sm:$0xff] %v1807_v54  ;;  %v1455_v23 = vadd.f32 %v1454_v19, %v4860_v2  ;;  %v1713_v34 = vpop.f32.mrf.mxu2  ;;  %v5759_v2 = vand.u32 4294901760, %v5094_v59  ;;  %v5760_v59 = vld [vmem:[#allocation61_spill] sm:$0xff] }
 0x2af   :  { %v1810_v50 = vpop.f32.mrf.mxu3  ;;  %3254 = vmatpush.msrb.mxu2 %v5756_v8  ;;  %3351 = vmatpush.msrb.mxu3 %v5006_v48  ;;  %v5766_v54 = vld [vmem:[#allocation21_spill] sm:$0xff] }
 0x2b0   :  { %v1583_v52 = vadd.f32 %v1582_v11, %v1455_v23  ;;  %1966 = vmatmul.f32.gmra.mxu0 %v5757_v41  ;;  %2135 = vmatmul.f32.gmra.mxu1 %v4386_v0 }
 0x2b1   :  { %3258 = vmatpush.msrb.mxu2 %v5758_v6  ;;  %3353 = vmatpush.msrb.mxu3 %v5023_v63  ;;  %v5768_v6 = vld [vmem:[#allocation25_spill] sm:$0xff] }
 0x2b2   :  { %v1714_v46 = vadd.f32 %v1713_v34, %v1583_v52  ;;  %2264 = vmatmul.f32.gmra.mxu2 %v4394_v49 }
 0x2b3   :  { %3262 = vmatpush.msrb.mxu2 %v5759_v2  ;;  %3355 = vmatpush.msrb.mxu3 %v5040_v9  ;;  %v5769_v2 = vld [vmem:[#allocation30_spill] sm:$0xff] }
 0x2b4   :  { %v1811_v25 = vadd.f32 %v1810_v50, %v1714_v46  ;;  %2393 = vmatmul.f32.gmra.mxu3 %v4403_v10 }
 0x2b5   :  { %v1459_v24 = vpop.f32.mrf.mxu0  ;;  %v2076_v29 = vpop.f32.mrf.mxu1  ;;  %3266 = vmatpush.msrb.mxu2 %v2876_v57  ;;  %3357 = vmatpush.msrb.mxu3 %v5057_v36 }
 0x2b6   :  { %3486 = vst [vmem:[#allocation7 + $0x1c8] sm:$0xff] %v1811_v25  ;;  %v1460_v48 = vadd.f32 %v1459_v24, %v4887_v13  ;;  %v1717_v44 = vpop.f32.mrf.mxu2 }
 0x2b7   :  { %v1814_v4 = vpop.f32.mrf.mxu3  ;;  %3359 = vmatpush.msrb.mxu3 %v5074_v5  ;;  %v5762_v5 = vld [vmem:[#allocation13_spill] sm:$0xff] }
 0x2b8   :  { %v1589_v63 = vadd.f32 %v1588_v26, %v1460_v48  ;;  %1974 = vmatmul.f32.gmra.mxu0 %v5760_v59  ;;  %2559 = vmatmul.f32.vlgmr.msra.gmra.mxu1 %v3948_v55  ;;  %v5767_v26 = vld [vmem:[#allocation26_spill] sm:$0xff] }
 0x2b9   :  { %3361 = vmatpush.msrb.mxu3 %v5086_v22 }
 0x2ba   :  { %v1718_v30 = vadd.f32 %v1717_v44, %v1589_v63  ;;  %2660 = vmatmul.f32.vlgmr.msra.gmra.mxu2 %v5761_v35  ;;  %v5770_v63 = vld [vmem:[#allocation29_spill] sm:$0xff]  ;;  %v5771_v35 = vld [vmem:[#allocation34_spill] sm:$0xff] }
 0x2bb   :  { %3363 = vmatpush.msrb.mxu3 %v5096_v14 }
 0x2bc   :  { %v1815_v9 = vadd.f32 %v1814_v4, %v1718_v30  ;;  %2881 = vmatmul.f32.vlgmr.msra.gmra.mxu3 %v3948_v55 }
 0x2bd   :  { %v1855_v13 = vpop.f32.mrf.mxu0  ;;  %v2080_v1 = vpop.f32.mrf.mxu1 }
 0x2be   :  { %3490 = vst [vmem:[#allocation7 + $0x1e8] sm:$0xff] %v1815_v9  ;;  %v2077_v36 = vadd.f32 %v2076_v29, %v1855_v13  ;;  %v2190_v57 = vpop.f32.mrf.mxu2 }
 0x2bf   :  { %v2304_v62 = vpop.f32.mrf.mxu3 }
 0x2c0   :  { %v2191_v17 = vadd.f32 %v2190_v57, %v2077_v36  ;;  %2462 = vmatmul.f32.vlgmr.msra.gmra.mxu0 %v3948_v55  ;;  %2563 = vmatmul.f32.gmra.mxu1 %v5762_v5 }
 0x2c2   :  { %v5191_v58 = vadd.f32 %v2304_v62, %v2191_v17  ;;  %2668 = vmatmul.f32.gmra.mxu2 %v5763_v18  ;;  %v5772_v17 = vld [vmem:[#allocation33_spill] sm:$0xff] }
 0x2c4   :  { %2885 = vmatmul.f32.gmra.mxu3 %v5762_v5 }
 0x2c5   :  { %v1863_v22 = vpop.f32.mrf.mxu0  ;;  %v2084_v27 = vpop.f32.mrf.mxu1 }
 0x2c6   :  { %v2081_v28 = vadd.f32 %v2080_v1, %v1863_v22  ;;  %v2195_v31 = vpop.f32.mrf.mxu2  ;;  %v5773_v22 = vld [vmem:[#allocation38_spill] sm:$0xff] }
 0x2c7   :  { %v2310_v14 = vpop.f32.mrf.mxu3 }
 0x2c8   :  { %v2196_v11 = vadd.f32 %v2195_v31, %v2081_v28  ;;  %2466 = vmatmul.f32.gmra.mxu0 %v5762_v5  ;;  %2567 = vmatmul.f32.gmra.mxu1 %v5764_v42 }
 0x2ca   :  { %v5197_v7 = vadd.f32 %v2310_v14, %v2196_v11  ;;  %2676 = vmatmul.f32.gmra.mxu2 %v5765_v40 }
 0x2cc   :  { %2889 = vmatmul.f32.gmra.mxu3 %v5764_v42 }
 0x2cd   :  { %v1871_v61 = vpop.f32.mrf.mxu0  ;;  %v2088_v20 = vpop.f32.mrf.mxu1 }
 0x2ce   :  { %v2085_v43 = vadd.f32 %v2084_v27, %v1871_v61  ;;  %v2200_v21 = vpop.f32.mrf.mxu2  ;;  %v5774_v61 = vld [vmem:[#allocation37_spill] sm:$0xff] }
 0x2cf   :  { %v2316_v38 = vpop.f32.mrf.mxu3 }
 0x2d0   :  { %v2201_v33 = vadd.f32 %v2200_v21, %v2085_v43  ;;  %2470 = vmatmul.f32.gmra.mxu0 %v5764_v42  ;;  %2571 = vmatmul.f32.gmra.mxu1 %v5766_v54  ;;  %v5775_v43 = vld [vmem:[#allocation42_spill] sm:$0xff] }
 0x2d2   :  { %v5203_v19 = vadd.f32 %v2316_v38, %v2201_v33  ;;  %2684 = vmatmul.f32.gmra.mxu2 %v5767_v26 }
 0x2d4   :  { %2893 = vmatmul.f32.gmra.mxu3 %v5766_v54 }
 0x2d5   :  { %v1879_v12 = vpop.f32.mrf.mxu0  ;;  %v2092_v23 = vpop.f32.mrf.mxu1 }
 0x2d6   :  { %v2089_v34 = vadd.f32 %v2088_v20, %v1879_v12  ;;  %v2205_v50 = vpop.f32.mrf.mxu2 }
 0x2d7   :  { %v2322_v8 = vpop.f32.mrf.mxu3 }
 0x2d8   :  { %v2206_v52 = vadd.f32 %v2205_v50, %v2089_v34  ;;  %2474 = vmatmul.f32.gmra.mxu0 %v5766_v54  ;;  %2575 = vmatmul.f32.gmra.mxu1 %v5768_v6  ;;  %v5776_v34 = vld [vmem:[#allocation41_spill] sm:$0xff] }
 0x2da   :  { %v5209_v46 = vadd.f32 %v2322_v8, %v2206_v52  ;;  %2692 = vmatmul.f32.gmra.mxu2 %v5769_v2  ;;  %v5777_v8 = vld [vmem:[#allocation46_spill] sm:$0xff] }
 0x2dc   :  { %2897 = vmatmul.f32.gmra.mxu3 %v5768_v6 }
 0x2dd   :  { %v1887_v25 = vpop.f32.mrf.mxu0  ;;  %v2096_v24 = vpop.f32.mrf.mxu1 }
 0x2de   :  { %v2093_v29 = vadd.f32 %v2092_v23, %v1887_v25  ;;  %v2210_v48 = vpop.f32.mrf.mxu2 }
 0x2df   :  { %v2328_v44 = vpop.f32.mrf.mxu3 }
 0x2e0   :  { %v2211_v4 = vadd.f32 %v2210_v48, %v2093_v29  ;;  %2478 = vmatmul.f32.gmra.mxu0 %v5768_v6  ;;  %2579 = vmatmul.f32.gmra.mxu1 %v5770_v63 }
 0x2e2   :  { %v5215_v30 = vadd.f32 %v2328_v44, %v2211_v4  ;;  %2700 = vmatmul.f32.gmra.mxu2 %v5771_v35  ;;  %v5778_v44 = vld [vmem:[#allocation45_spill] sm:$0xff]  ;;  %v5779_v35 = vld [vmem:[#allocation50_spill] sm:$0xff] }
 0x2e4   :  { %2901 = vmatmul.f32.gmra.mxu3 %v5770_v63 }
 0x2e5   :  { %v1895_v9 = vpop.f32.mrf.mxu0  ;;  %v2100_v13 = vpop.f32.mrf.mxu1 }
 0x2e6   :  { %v2097_v1 = vadd.f32 %v2096_v24, %v1895_v9  ;;  %v2215_v36 = vpop.f32.mrf.mxu2 }
 0x2e7   :  { %v2334_v57 = vpop.f32.mrf.mxu3 }
 0x2e8   :  { %v2216_v62 = vadd.f32 %v2215_v36, %v2097_v1  ;;  %2482 = vmatmul.f32.gmra.mxu0 %v5770_v63  ;;  %2583 = vmatmul.f32.gmra.mxu1 %v5772_v17 }
 0x2ea   :  { %v5221_v18 = vadd.f32 %v2334_v57, %v2216_v62  ;;  %2708 = vmatmul.f32.gmra.mxu2 %v5773_v22  ;;  %v5780_v22 = vld [vmem:[#allocation49_spill] sm:$0xff] }
 0x2ec   :  { %2905 = vmatmul.f32.gmra.mxu3 %v5772_v17 }
 0x2ed   :  { %v1903_v27 = vpop.f32.mrf.mxu0  ;;  %v2104_v28 = vpop.f32.mrf.mxu1 }
 0x2ee   :  { %v2101_v31 = vadd.f32 %v2100_v13, %v1903_v27  ;;  %v2220_v14 = vpop.f32.mrf.mxu2 }
 0x2ef   :  { %v2340_v11 = vpop.f32.mrf.mxu3 }
 0x2f0   :  { %v2221_v40 = vadd.f32 %v2220_v14, %v2101_v31  ;;  %2486 = vmatmul.f32.gmra.mxu0 %v5772_v17  ;;  %2587 = vmatmul.f32.gmra.mxu1 %v5774_v61 }
 0x2f2   :  { %v5227_v20 = vadd.f32 %v2340_v11, %v2221_v40  ;;  %2716 = vmatmul.f32.gmra.mxu2 %v5775_v43 }
 0x2f4   :  { %2909 = vmatmul.f32.gmra.mxu3 %v5774_v61 }
 0x2f5   :  { %v1911_v21 = vpop.f32.mrf.mxu0  ;;  %v2108_v38 = vpop.f32.mrf.mxu1 }
 0x2f6   :  { %v2105_v33 = vadd.f32 %v2104_v28, %v1911_v21  ;;  %v2225_v26 = vpop.f32.mrf.mxu2  ;;  %v5781_v28 = vld [vmem:[#allocation54_spill] sm:$0xff] }
 0x2f7   :  { %v2346_v12 = vpop.f32.mrf.mxu3 }
 0x2f8   :  { %v2226_v23 = vadd.f32 %v2225_v26, %v2105_v33  ;;  %2490 = vmatmul.f32.gmra.mxu0 %v5774_v61  ;;  %2591 = vmatmul.f32.gmra.mxu1 %v5776_v34 }
 0x2fa   :  { %v5233_v50 = vadd.f32 %v2346_v12, %v2226_v23  ;;  %2724 = vmatmul.f32.gmra.mxu2 %v5777_v8 }
 0x2fc   :  { %2913 = vmatmul.f32.gmra.mxu3 %v5776_v34 }
 0x2fd   :  { %v1919_v52 = vpop.f32.mrf.mxu0  ;;  %v2112_v2 = vpop.f32.mrf.mxu1 }
 0x2fe   :  { %v2109_v25 = vadd.f32 %v2108_v38, %v1919_v52  ;;  %v2230_v24 = vpop.f32.mrf.mxu2  ;;  %v5782_v38 = vld [vmem:[#allocation53_spill] sm:$0xff] }
 0x2ff   :  { %v2352_v29 = vpop.f32.mrf.mxu3 }
 0x300   :  { %v2231_v48 = vadd.f32 %v2230_v24, %v2109_v25  ;;  %2494 = vmatmul.f32.gmra.mxu0 %v5776_v34  ;;  %2595 = vmatmul.f32.gmra.mxu1 %v5778_v44 }
 0x302   :  { %v5239_v4 = vadd.f32 %v2352_v29, %v2231_v48  ;;  %2732 = vmatmul.f32.gmra.mxu2 %v5779_v35 }
 0x304   :  { %2917 = vmatmul.f32.gmra.mxu3 %v5778_v44 }
 0x305   :  { %v1927_v9 = vpop.f32.mrf.mxu0  ;;  %v2116_v13 = vpop.f32.mrf.mxu1 }
 0x306   :  { %v2113_v1 = vadd.f32 %v2112_v2, %v1927_v9  ;;  %v2235_v36 = vpop.f32.mrf.mxu2 }
 0x307   :  { %v2358_v57 = vpop.f32.mrf.mxu3 }
 0x308   :  { %v2236_v62 = vadd.f32 %v2235_v36, %v2113_v1  ;;  %2498 = vmatmul.f32.gmra.mxu0 %v5778_v44  ;;  %2599 = vmatmul.f32.gmra.mxu1 %v5780_v22 }
 0x30a   :  { %v5245_v27 = vadd.f32 %v2358_v57, %v2236_v62  ;;  %2740 = vmatmul.f32.gmra.mxu2 %v5781_v28 }
 0x30c   :  { %2921 = vmatmul.f32.gmra.mxu3 %v5780_v22 }
 0x30d   :  { %v1935_v31 = vpop.f32.mrf.mxu0  ;;  %v2120_v14 = vpop.f32.mrf.mxu1 }
 0x30e   :  { %v2117_v11 = vadd.f32 %v2116_v13, %v1935_v31  ;;  %v2240_v40 = vpop.f32.mrf.mxu2 }
 0x30f   :  { %v2364_v43 = vpop.f32.mrf.mxu3 }
 0x310   :  { %v2241_v21 = vadd.f32 %v2240_v40, %v2117_v11  ;;  %2502 = vmatmul.f32.gmra.mxu0 %v5780_v22  ;;  %2603 = vmatmul.f32.gmra.mxu1 %v5782_v38 }
 0x312   :  { %v5251_v33 = vadd.f32 %v2364_v43, %v2241_v21  ;;  %2748 = vmatmul.f32.gmra.mxu2 %v5742_v39 }
 0x314   :  { %2925 = vmatmul.f32.gmra.mxu3 %v5782_v38 }
 0x315   :  { %v1943_v26 = vpop.f32.mrf.mxu0  ;;  %v2124_v12 = vpop.f32.mrf.mxu1 }
 0x316   :  { %v2121_v23 = vadd.f32 %v2120_v14, %v1943_v26  ;;  %v2245_v8 = vpop.f32.mrf.mxu2 }
 0x317   :  { %v2370_v52 = vpop.f32.mrf.mxu3 }
 0x318   :  { %v2246_v2 = vadd.f32 %v2245_v8, %v2121_v23  ;;  %2506 = vmatmul.f32.gmra.mxu0 %v5782_v38  ;;  %2607 = vmatmul.f32.gmra.mxu1 %v4301_v47 }
 0x31a   :  { %v5257_v25 = vadd.f32 %v2370_v52, %v2246_v2  ;;  %2756 = vmatmul.f32.gmra.mxu2 %v5747_v32 }
 0x31c   :  { %2929 = vmatmul.f32.gmra.mxu3 %v4301_v47 }
 0x31d   :  { %v1951_v24 = vpop.f32.mrf.mxu0  ;;  %v2128_v39 = vpop.f32.mrf.mxu1 }
 0x31e   :  { %v2125_v29 = vadd.f32 %v2124_v12, %v1951_v24  ;;  %v2250_v48 = vpop.f32.mrf.mxu2  ;;  %v5783_v24 = vld [vmem:[#allocation12_spill] sm:$0xff] }
 0x31f   :  { %v2376_v35 = vpop.f32.mrf.mxu3 }
 0x320   :  { %v2251_v9 = vadd.f32 %v2250_v48, %v2125_v29  ;;  %2510 = vmatmul.f32.gmra.mxu0 %v4301_v47  ;;  %2611 = vmatmul.f32.gmra.mxu1 %v4330_v3 }
 0x322   :  { %v5263_v13 = vadd.f32 %v2376_v35, %v2251_v9  ;;  %2764 = vmatmul.f32.gmra.mxu2 %v5752_v16 }
 0x324   :  { %2933 = vmatmul.f32.gmra.mxu3 %v4330_v3 }
 0x325   :  { %v1959_v1 = vpop.f32.mrf.mxu0  ;;  %v2132_v32 = vpop.f32.mrf.mxu1 }
 0x326   :  { %v2129_v36 = vadd.f32 %v2128_v39, %v1959_v1  ;;  %v2255_v57 = vpop.f32.mrf.mxu2 }
 0x327   :  { %v2382_v62 = vpop.f32.mrf.mxu3 }
 0x328   :  { %v2256_v28 = vadd.f32 %v2255_v57, %v2129_v36  ;;  %2514 = vmatmul.f32.gmra.mxu0 %v4330_v3  ;;  %2615 = vmatmul.f32.gmra.mxu1 %v4358_v60  ;;  %v5784_v36 = vld [vmem:[#allocation11_spill] sm:$0xff]  ;;  %v5785_v57 = vld [vmem:[#allocation16_spill] sm:$0xff] }
 0x32a   :  { %v5269_v31 = vadd.f32 %v2382_v62, %v2256_v28  ;;  %2772 = vmatmul.f32.gmra.mxu2 %v5757_v41 }
 0x32c   :  { %2937 = vmatmul.f32.gmra.mxu3 %v4358_v60 }
 0x32d   :  { %v1967_v14 = vpop.f32.mrf.mxu0  ;;  %v2136_v16 = vpop.f32.mrf.mxu1 }
 0x32e   :  { %v2133_v11 = vadd.f32 %v2132_v32, %v1967_v14  ;;  %v2260_v40 = vpop.f32.mrf.mxu2 }
 0x32f   :  { %v2388_v43 = vpop.f32.mrf.mxu3 }
 0x330   :  { %v2261_v21 = vadd.f32 %v2260_v40, %v2133_v11  ;;  %2518 = vmatmul.f32.gmra.mxu0 %v4358_v60  ;;  %2619 = vmatmul.f32.gmra.mxu1 %v4386_v0  ;;  %v5786_v40 = vld [vmem:[#allocation15_spill] sm:$0xff] }
 0x332   :  { %v5275_v26 = vadd.f32 %v2388_v43, %v2261_v21  ;;  %2780 = vmatmul.f32.gmra.mxu2 %v5760_v59  ;;  %v5787_v43 = vld [vmem:[#allocation20_spill] sm:$0xff] }
 0x334   :  { %2941 = vmatmul.f32.gmra.mxu3 %v4386_v0 }
 0x335   :  { %v1975_v12 = vpop.f32.mrf.mxu0  ;;  %v2560_v41 = vpop.f32.mrf.mxu1 }
 0x336   :  { %v2137_v23 = vadd.f32 %v2136_v16, %v1975_v12  ;;  %v2265_v8 = vpop.f32.mrf.mxu2 }
 0x337   :  { %v2394_v52 = vpop.f32.mrf.mxu3 }
 0x338   :  { %v2266_v2 = vadd.f32 %v2265_v8, %v2137_v23  ;;  %2522 = vmatmul.f32.gmra.mxu0 %v4386_v0  ;;  %3109 = vmatmul.f32.vlgmr.msrb.gmra.mxu1 %v5783_v24 }
 0x33a   :  { %v5281_v39 = vadd.f32 %v2394_v52, %v2266_v2  ;;  %3268 = vmatmul.f32.vlgmr.msrb.gmra.mxu2 %v3948_v55  ;;  %v5788_v52 = vld [vmem:[#allocation19_spill] sm:$0xff]  ;;  %v5789_v2 = vld [vmem:[#allocation24_spill] sm:$0xff] }
 0x33c   :  { %3365 = vmatmul.f32.vlgmr.msrb.gmra.mxu3 %v3948_v55 }
 0x33d   :  { %v2463_v29 = vpop.f32.mrf.mxu0  ;;  %v2564_v59 = vpop.f32.mrf.mxu1 }
 0x33e   :  { %v2464_v48 = vadd.f32 %v2463_v29, %v5191_v58  ;;  %v2661_v35 = vpop.f32.mrf.mxu2 }
 0x33f   :  { %v2882_v9 = vpop.f32.mrf.mxu3 }
 0x340   :  { %v2561_v1 = vadd.f32 %v2560_v41, %v2464_v48  ;;  %v5286_v32 = vadd.f32 %v2882_v9, %v2661_v35  ;;  %2995 = vmatmul.f32.vlgmr.msrb.gmra.mxu0 %v5784_v36  ;;  %3115 = vmatmul.f32.gmra.mxu1 %v5785_v57  ;;  %v5790_v9 = vld [vmem:[#allocation23_spill] sm:$0xff] }
 0x342   :  { %3431 = vst [vmem:[#allocation7 + $0x10] sm:$0xff] %v2561_v1  ;;  %3272 = vmatmul.f32.gmra.mxu2 %v5762_v5  ;;  %v5791_v1 = vld [vmem:[#allocation28_spill] sm:$0xff] }
 0x344   :  { %3369 = vmatmul.f32.gmra.mxu3 %v5762_v5 }
 0x345   :  { %v2467_v62 = vpop.f32.mrf.mxu0  ;;  %v2568_v55 = vpop.f32.mrf.mxu1 }
 0x346   :  { %v2468_v28 = vadd.f32 %v2467_v62, %v5197_v7  ;;  %v2669_v14 = vpop.f32.mrf.mxu2 }
 0x347   :  { %v2886_v58 = vpop.f32.mrf.mxu3 }
 0x348   :  { %v2565_v16 = vadd.f32 %v2564_v59, %v2468_v28  ;;  %v5293_v11 = vadd.f32 %v2886_v58, %v2669_v14  ;;  %3000 = vmatmul.f32.gmra.mxu0 %v5786_v40  ;;  %3121 = vmatmul.f32.gmra.mxu1 %v5787_v43  ;;  %v5792_v14 = vld [vmem:[#allocation27_spill] sm:$0xff]  ;;  %v5793_v58 = vld [vmem:[#allocation32_spill] sm:$0xff] }
 0x34a   :  { %3435 = vst [vmem:[#allocation7 + $0x30] sm:$0xff] %v2565_v16  ;;  %3276 = vmatmul.f32.gmra.mxu2 %v5764_v42 }
 0x34c   :  { %3373 = vmatmul.f32.gmra.mxu3 %v5764_v42 }
 0x34d   :  { %v2471_v21 = vpop.f32.mrf.mxu0  ;;  %v2572_v5 = vpop.f32.mrf.mxu1 }
 0x34e   :  { %v2472_v12 = vadd.f32 %v2471_v21, %v5203_v19  ;;  %v2677_v41 = vpop.f32.mrf.mxu2 }
 0x34f   :  { %v2890_v7 = vpop.f32.mrf.mxu3 }
 0x350   :  { %v2569_v23 = vadd.f32 %v2568_v55, %v2472_v12  ;;  %v5300_v8 = vadd.f32 %v2890_v7, %v2677_v41  ;;  %3005 = vmatmul.f32.gmra.mxu0 %v5788_v52  ;;  %3127 = vmatmul.f32.gmra.mxu1 %v5789_v2  ;;  %v5794_v12 = vld [vmem:[#allocation31_spill] sm:$0xff]  ;;  %v5795_v41 = vld [vmem:[#allocation36_spill] sm:$0xff] }
 0x352   :  { %3439 = vst [vmem:[#allocation7 + $0x50] sm:$0xff] %v2569_v23  ;;  %3280 = vmatmul.f32.gmra.mxu2 %v5766_v54 }
 0x354   :  { %3377 = vmatmul.f32.gmra.mxu3 %v5766_v54 }
 0x355   :  { %v2475_v24 = vpop.f32.mrf.mxu0  ;;  %v2576_v42 = vpop.f32.mrf.mxu1 }
 0x356   :  { %v2476_v29 = vadd.f32 %v2475_v24, %v5209_v46  ;;  %v2685_v59 = vpop.f32.mrf.mxu2 }
 0x357   :  { %v2894_v19 = vpop.f32.mrf.mxu3 }
 0x358   :  { %v2573_v48 = vadd.f32 %v2572_v5, %v2476_v29  ;;  %v5307_v35 = vadd.f32 %v2894_v19, %v2685_v59  ;;  %3010 = vmatmul.f32.gmra.mxu0 %v5790_v9  ;;  %3133 = vmatmul.f32.gmra.mxu1 %v5791_v1  ;;  %v5797_v29 = vld [vmem:[#allocation40_spill] sm:$0xff] }
 0x35a   :  { %3443 = vst [vmem:[#allocation7 + $0x70] sm:$0xff] %v2573_v48  ;;  %3284 = vmatmul.f32.gmra.mxu2 %v5768_v6 }
 0x35c   :  { %3381 = vmatmul.f32.gmra.mxu3 %v5768_v6 }
 0x35d   :  { %v2479_v36 = vpop.f32.mrf.mxu0  ;;  %v2580_v54 = vpop.f32.mrf.mxu1 }
 0x35e   :  { %v2480_v57 = vadd.f32 %v2479_v36, %v5215_v30  ;;  %v2693_v62 = vpop.f32.mrf.mxu2  ;;  %v5798_v36 = vld [vmem:[#allocation39_spill] sm:$0xff] }
 0x35f   :  { %v2898_v46 = vpop.f32.mrf.mxu3 }
 0x360   :  { %v2577_v55 = vadd.f32 %v2576_v42, %v2480_v57  ;;  %v5314_v28 = vadd.f32 %v2898_v46, %v2693_v62  ;;  %3015 = vmatmul.f32.gmra.mxu0 %v5792_v14  ;;  %3139 = vmatmul.f32.gmra.mxu1 %v5793_v58  ;;  %v5796_v42 = vld [vmem:[#allocation35_spill] sm:$0xff] }
 0x361   :  { %v5800_v58 = vld [vmem:[#allocation43_spill] sm:$0xff] }
 0x362   :  { %3447 = vst [vmem:[#allocation7 + $0x90] sm:$0xff] %v2577_v55  ;;  %3288 = vmatmul.f32.gmra.mxu2 %v5770_v63 }
 0x364   :  { %3385 = vmatmul.f32.gmra.mxu3 %v5770_v63 }
 0x365   :  { %v2483_v16 = vpop.f32.mrf.mxu0  ;;  %v2584_v6 = vpop.f32.mrf.mxu1 }
 0x366   :  { %v2484_v40 = vadd.f32 %v2483_v16, %v5221_v18  ;;  %v2701_v43 = vpop.f32.mrf.mxu2  ;;  %v5801_v16 = vld [vmem:[#allocation48_spill] sm:$0xff] }
 0x367   :  { %v2902_v30 = vpop.f32.mrf.mxu3 }
 0x368   :  { %v2581_v21 = vadd.f32 %v2580_v54, %v2484_v40  ;;  %v5321_v5 = vadd.f32 %v2902_v30, %v2701_v43  ;;  %3020 = vmatmul.f32.gmra.mxu0 %v5794_v12  ;;  %3145 = vmatmul.f32.gmra.mxu1 %v5795_v41  ;;  %v5799_v54 = vld [vmem:[#allocation44_spill] sm:$0xff]  ;;  %v5802_v12 = vld [vmem:[#allocation47_spill] sm:$0xff] }
 0x369   :  { %v5803_v41 = vld [vmem:[#allocation52_spill] sm:$0xff] }
 0x36a   :  { %3451 = vst [vmem:[#allocation7 + $0xb0] sm:$0xff] %v2581_v21  ;;  %3292 = vmatmul.f32.gmra.mxu2 %v5772_v17 }
 0x36c   :  { %3389 = vmatmul.f32.gmra.mxu3 %v5772_v17 }
 0x36d   :  { %v2487_v7 = vpop.f32.mrf.mxu0  ;;  %v2588_v63 = vpop.f32.mrf.mxu1 }
 0x36e   :  { %v2488_v23 = vadd.f32 %v2487_v7, %v5227_v20  ;;  %v2709_v52 = vpop.f32.mrf.mxu2 }
 0x36f   :  { %v2906_v18 = vpop.f32.mrf.mxu3 }
 0x370   :  { %v2585_v2 = vadd.f32 %v2584_v6, %v2488_v23  ;;  %v5328_v24 = vadd.f32 %v2906_v18, %v2709_v52  ;;  %3025 = vmatmul.f32.gmra.mxu0 %v5796_v42  ;;  %3151 = vmatmul.f32.gmra.mxu1 %v5797_v29  ;;  %v5805_v42 = vld [vmem:[#allocation56_spill] sm:$0xff] }
 0x372   :  { %3455 = vst [vmem:[#allocation7 + $0xd0] sm:$0xff] %v2585_v2  ;;  %3296 = vmatmul.f32.gmra.mxu2 %v5774_v61  ;;  %v5804_v2 = vld [vmem:[#allocation51_spill] sm:$0xff] }
 0x374   :  { %3393 = vmatmul.f32.gmra.mxu3 %v5774_v61 }
 0x375   :  { %v2491_v59 = vpop.f32.mrf.mxu0  ;;  %v2592_v17 = vpop.f32.mrf.mxu1 }
 0x376   :  { %v2492_v19 = vadd.f32 %v2491_v59, %v5233_v50  ;;  %v2717_v48 = vpop.f32.mrf.mxu2 }
 0x377   :  { %v2910_v20 = vpop.f32.mrf.mxu3 }
 0x378   :  { %v2589_v9 = vadd.f32 %v2588_v63, %v2492_v19  ;;  %v5335_v1 = vadd.f32 %v2910_v20, %v2717_v48  ;;  %3030 = vmatmul.f32.gmra.mxu0 %v5798_v36  ;;  %3157 = vmatmul.f32.gmra.mxu1 %v5799_v54  ;;  %v5806_v20 = vld [vmem:[#allocation55_spill] sm:$0xff] }
 0x37a   :  { %3459 = vst [vmem:[#allocation7 + $0xf0] sm:$0xff] %v2589_v9  ;;  %3300 = vmatmul.f32.gmra.mxu2 %v5776_v34 }
 0x37c   :  { %3397 = vmatmul.f32.gmra.mxu3 %v5776_v34 }
 0x37d   :  { %v2495_v57 = vpop.f32.mrf.mxu0  ;;  %v2596_v61 = vpop.f32.mrf.mxu1 }
 0x37e   :  { %v2496_v62 = vadd.f32 %v2495_v57, %v5239_v4  ;;  %v2725_v46 = vpop.f32.mrf.mxu2 }
 0x37f   :  { %v2914_v50 = vpop.f32.mrf.mxu3 }
 0x380   :  { %v2593_v55 = vadd.f32 %v2592_v17, %v2496_v62  ;;  %v5342_v14 = vadd.f32 %v2914_v50, %v2725_v46  ;;  %3035 = vmatmul.f32.gmra.mxu0 %v5800_v58  ;;  %3163 = vmatmul.f32.gmra.mxu1 %v5801_v16 }
 0x382   :  { %3463 = vst [vmem:[#allocation7 + $0x110] sm:$0xff] %v2593_v55  ;;  %3304 = vmatmul.f32.gmra.mxu2 %v5778_v44 }
 0x384   :  { %3401 = vmatmul.f32.gmra.mxu3 %v5778_v44 }
 0x385   :  { %v2499_v6 = vpop.f32.mrf.mxu0  ;;  %v2600_v34 = vpop.f32.mrf.mxu1 }
 0x386   :  { %v2500_v40 = vadd.f32 %v2499_v6, %v5245_v27  ;;  %v2733_v43 = vpop.f32.mrf.mxu2 }
 0x387   :  { %v2918_v4 = vpop.f32.mrf.mxu3 }
 0x388   :  { %v2597_v30 = vadd.f32 %v2596_v61, %v2500_v40  ;;  %v5349_v21 = vadd.f32 %v2918_v4, %v2733_v43  ;;  %3040 = vmatmul.f32.gmra.mxu0 %v5802_v12  ;;  %3169 = vmatmul.f32.gmra.mxu1 %v5803_v41 }
 0x38a   :  { %3467 = vst [vmem:[#allocation7 + $0x130] sm:$0xff] %v2597_v30  ;;  %3308 = vmatmul.f32.gmra.mxu2 %v5780_v22 }
 0x38c   :  { %3405 = vmatmul.f32.gmra.mxu3 %v5780_v22 }
 0x38d   :  { %v2503_v7 = vpop.f32.mrf.mxu0  ;;  %v2604_v44 = vpop.f32.mrf.mxu1 }
 0x38e   :  { %v2504_v63 = vadd.f32 %v2503_v7, %v5251_v33  ;;  %v2741_v23 = vpop.f32.mrf.mxu2 }
 0x38f   :  { %v2922_v27 = vpop.f32.mrf.mxu3 }
 0x390   :  { %v2601_v52 = vadd.f32 %v2600_v34, %v2504_v63  ;;  %v5356_v18 = vadd.f32 %v2922_v27, %v2741_v23  ;;  %3045 = vmatmul.f32.gmra.mxu0 %v5804_v2  ;;  %3175 = vmatmul.f32.gmra.mxu1 %v5805_v42 }
 0x392   :  { %3471 = vst [vmem:[#allocation7 + $0x150] sm:$0xff] %v2601_v52  ;;  %3312 = vmatmul.f32.gmra.mxu2 %v5782_v38 }
 0x394   :  { %3409 = vmatmul.f32.gmra.mxu3 %v5782_v38 }
 0x395   :  { %v2507_v29 = vpop.f32.mrf.mxu0  ;;  %v2608_v22 = vpop.f32.mrf.mxu1 }
 0x396   :  { %v2508_v59 = vadd.f32 %v2507_v29, %v5257_v25  ;;  %v2749_v17 = vpop.f32.mrf.mxu2 }
 0x397   :  { %v2926_v33 = vpop.f32.mrf.mxu3 }
 0x398   :  { %v2605_v19 = vadd.f32 %v2604_v44, %v2508_v59  ;;  %v5363_v48 = vadd.f32 %v2926_v33, %v2749_v17  ;;  %3050 = vmatmul.f32.gmra.mxu0 %v5806_v20  ;;  %3181 = vmatmul.f32.gmra.mxu1 %v4320_v45 }
 0x39a   :  { %3475 = vst [vmem:[#allocation7 + $0x170] sm:$0xff] %v2605_v19  ;;  %3316 = vmatmul.f32.gmra.mxu2 %v4301_v47 }
 0x39c   :  { %3413 = vmatmul.f32.gmra.mxu3 %v4301_v47 }
 0x39d   :  { %v2511_v9 = vpop.f32.mrf.mxu0  ;;  %v2612_v38 = vpop.f32.mrf.mxu1 }
 0x39e   :  { %v2512_v36 = vadd.f32 %v2511_v9, %v5263_v13  ;;  %v2757_v54 = vpop.f32.mrf.mxu2 }
 0x39f   :  { %v2930_v25 = vpop.f32.mrf.mxu3 }
 0x3a0   :  { %v2609_v57 = vadd.f32 %v2608_v22, %v2512_v36  ;;  %v5370_v61 = vadd.f32 %v2930_v25, %v2757_v54  ;;  %3055 = vmatmul.f32.gmra.mxu0 %v4312_v53  ;;  %3187 = vmatmul.f32.gmra.mxu1 %v4347_v51 }
 0x3a2   :  { %3479 = vst [vmem:[#allocation7 + $0x190] sm:$0xff] %v2609_v57  ;;  %3320 = vmatmul.f32.gmra.mxu2 %v4330_v3 }
 0x3a4   :  { %3417 = vmatmul.f32.gmra.mxu3 %v4330_v3 }
 0x3a5   :  { %v2515_v45 = vpop.f32.mrf.mxu0  ;;  %v2616_v47 = vpop.f32.mrf.mxu1 }
 0x3a6   :  { %v2516_v62 = vadd.f32 %v2515_v45, %v5269_v31  ;;  %v2765_v46 = vpop.f32.mrf.mxu2 }
 0x3a7   :  { %v2934_v13 = vpop.f32.mrf.mxu3 }
 0x3a8   :  { %v2613_v50 = vadd.f32 %v2612_v38, %v2516_v62  ;;  %v5377_v55 = vadd.f32 %v2934_v13, %v2765_v46  ;;  %3060 = vmatmul.f32.gmra.mxu0 %v4338_v37  ;;  %3193 = vmatmul.f32.gmra.mxu1 %v4375_v15 }
 0x3aa   :  { %3483 = vst [vmem:[#allocation7 + $0x1b0] sm:$0xff] %v2613_v50  ;;  %3324 = vmatmul.f32.gmra.mxu2 %v4358_v60 }
 0x3ac   :  { %3421 = vmatmul.f32.gmra.mxu3 %v4358_v60 }
 0x3ad   :  { %v2519_v53 = vpop.f32.mrf.mxu0  ;;  %v2620_v3 = vpop.f32.mrf.mxu1 }
 0x3ae   :  { %v2520_v51 = vadd.f32 %v2519_v53, %v5275_v26  ;;  %v2773_v58 = vpop.f32.mrf.mxu2 }
 0x3af   :  { %v2938_v31 = vpop.f32.mrf.mxu3 }
 0x3b0   :  { %v2617_v16 = vadd.f32 %v2616_v47, %v2520_v51  ;;  %v5384_v6 = vadd.f32 %v2938_v31, %v2773_v58  ;;  %3065 = vmatmul.f32.gmra.mxu0 %v4366_v56  ;;  %3199 = vmatmul.f32.gmra.mxu1 %v4403_v10 }
 0x3b2   :  { %3487 = vst [vmem:[#allocation7 + $0x1d0] sm:$0xff] %v2617_v16  ;;  %3328 = vmatmul.f32.gmra.mxu2 %v4386_v0 }
 0x3b4   :  { %3425 = vmatmul.f32.gmra.mxu3 %v4386_v0 }
 0x3b5   :  { %v2523_v37 = vpop.f32.mrf.mxu0  ;;  %v3110_v60 = vpop.f32.mrf.mxu1 }
 0x3b6   :  { %v2524_v15 = vadd.f32 %v2523_v37, %v5281_v39  ;;  %v2781_v34 = vpop.f32.mrf.mxu2 }
 0x3b7   :  { %v2942_v26 = vpop.f32.mrf.mxu3 }
 0x3b8   :  { %v2621_v40 = vadd.f32 %v2620_v3, %v2524_v15  ;;  %v5391_v43 = vadd.f32 %v2942_v26, %v2781_v34  ;;  %3070 = vmatmul.f32.gmra.mxu0 %v4394_v49 }
 0x3ba   :  { %3491 = vst [vmem:[#allocation7 + $0x1f0] sm:$0xff] %v2621_v40 }
 0x3bd   :  { %v2996_v56 = vpop.f32.mrf.mxu0  ;;  %v3116_v4 = vpop.f32.mrf.mxu1 }
 0x3be   :  { %v2997_v10 = vadd.f32 %v2996_v56, %v5286_v32  ;;  %v3269_v30 = vpop.f32.mrf.mxu2 }
 0x3bf   :  { %v3366_v12 = vpop.f32.mrf.mxu3 }
 0x3c0   :  { %v3111_v41 = vadd.f32 %v3110_v60, %v2997_v10 }
 0x3c2   :  { %v3270_v0 = vadd.f32 %v3269_v30, %v3111_v41 }
 0x3c4   :  { %v3367_v7 = vadd.f32 %v3366_v12, %v3270_v0 }
 0x3c5   :  { %v3001_v44 = vpop.f32.mrf.mxu0  ;;  %v3122_v63 = vpop.f32.mrf.mxu1 }
 0x3c6   :  { %3432 = vst [vmem:[#allocation7 + $0x18] sm:$0xff] %v3367_v7  ;;  %v3002_v39 = vadd.f32 %v3001_v44, %v5293_v11  ;;  %v3273_v23 = vpop.f32.mrf.mxu2 }
 0x3c7   :  { %v3370_v27 = vpop.f32.mrf.mxu3 }
 0x3c8   :  { %v3117_v52 = vadd.f32 %v3116_v4, %v3002_v39 }
 0x3ca   :  { %v3274_v2 = vadd.f32 %v3273_v23, %v3117_v52 }
 0x3cc   :  { %v3371_v49 = vadd.f32 %v3370_v27, %v3274_v2 }
 0x3cd   :  { %v3006_v42 = vpop.f32.mrf.mxu0  ;;  %v3128_v29 = vpop.f32.mrf.mxu1 }
 0x3ce   :  { %3436 = vst [vmem:[#allocation7 + $0x38] sm:$0xff] %v3371_v49  ;;  %v3007_v32 = vadd.f32 %v3006_v42, %v5300_v8  ;;  %v3277_v22 = vpop.f32.mrf.mxu2 }
 0x3cf   :  { %v3374_v59 = vpop.f32.mrf.mxu3 }
 0x3d0   :  { %v3123_v17 = vadd.f32 %v3122_v63, %v3007_v32 }
 0x3d2   :  { %v3278_v33 = vadd.f32 %v3277_v22, %v3123_v17 }
 0x3d4   :  { %v3375_v19 = vadd.f32 %v3374_v59, %v3278_v33 }
 0x3d5   :  { %v3011_v20 = vpop.f32.mrf.mxu0  ;;  %v3134_v9 = vpop.f32.mrf.mxu1 }
 0x3d6   :  { %3440 = vst [vmem:[#allocation7 + $0x58] sm:$0xff] %v3375_v19  ;;  %v3012_v11 = vadd.f32 %v3011_v20, %v5307_v35  ;;  %v3281_v38 = vpop.f32.mrf.mxu2 }
 0x3d7   :  { %v3378_v36 = vpop.f32.mrf.mxu3 }
 0x3d8   :  { %v3129_v54 = vadd.f32 %v3128_v29, %v3012_v11 }
 0x3da   :  { %v3282_v25 = vadd.f32 %v3281_v38, %v3129_v54 }
 0x3dc   :  { %v3379_v57 = vadd.f32 %v3378_v36, %v3282_v25 }
 0x3dd   :  { %v3016_v45 = vpop.f32.mrf.mxu0  ;;  %v3140_v47 = vpop.f32.mrf.mxu1 }
 0x3de   :  { %3444 = vst [vmem:[#allocation7 + $0x78] sm:$0xff] %v3379_v57  ;;  %v3017_v8 = vadd.f32 %v3016_v45, %v5314_v28  ;;  %v3285_v62 = vpop.f32.mrf.mxu2 }
 0x3df   :  { %v3382_v46 = vpop.f32.mrf.mxu3 }
 0x3e0   :  { %v3135_v13 = vadd.f32 %v3134_v9, %v3017_v8 }
 0x3e2   :  { %v3286_v50 = vadd.f32 %v3285_v62, %v3135_v13 }
 0x3e4   :  { %v3383_v53 = vadd.f32 %v3382_v46, %v3286_v50 }
 0x3e5   :  { %v3021_v3 = vpop.f32.mrf.mxu0  ;;  %v3146_v51 = vpop.f32.mrf.mxu1 }
 0x3e6   :  { %3448 = vst [vmem:[#allocation7 + $0x98] sm:$0xff] %v3383_v53  ;;  %v3022_v35 = vadd.f32 %v3021_v3, %v5321_v5  ;;  %v3289_v58 = vpop.f32.mrf.mxu2 }
 0x3e7   :  { %v3386_v31 = vpop.f32.mrf.mxu3 }
 0x3e8   :  { %v3141_v16 = vadd.f32 %v3140_v47, %v3022_v35 }
 0x3ea   :  { %v3290_v37 = vadd.f32 %v3289_v58, %v3141_v16 }
 0x3ec   :  { %v3387_v60 = vadd.f32 %v3386_v31, %v3290_v37 }
 0x3ed   :  { %v3026_v15 = vpop.f32.mrf.mxu0  ;;  %v3152_v34 = vpop.f32.mrf.mxu1 }
 0x3ee   :  { %3452 = vst [vmem:[#allocation7 + $0xb8] sm:$0xff] %v3387_v60  ;;  %v3027_v28 = vadd.f32 %v3026_v15, %v5328_v24  ;;  %v3293_v26 = vpop.f32.mrf.mxu2 }
 0x3ef   :  { %v3390_v40 = vpop.f32.mrf.mxu3 }
 0x3f0   :  { %v3147_v56 = vadd.f32 %v3146_v51, %v3027_v28 }
 0x3f2   :  { %v3294_v4 = vadd.f32 %v3293_v26, %v3147_v56 }
 0x3f4   :  { %v3391_v10 = vadd.f32 %v3390_v40, %v3294_v4 }
 0x3f5   :  { %v3031_v30 = vpop.f32.mrf.mxu0  ;;  %v3158_v12 = vpop.f32.mrf.mxu1 }
 0x3f6   :  { %3456 = vst [vmem:[#allocation7 + $0xd8] sm:$0xff] %v3391_v10  ;;  %v3032_v5 = vadd.f32 %v3031_v30, %v5335_v1  ;;  %v3297_v41 = vpop.f32.mrf.mxu2 }
 0x3f7   :  { %v3394_v0 = vpop.f32.mrf.mxu3 }
 0x3f8   :  { %v3153_v7 = vadd.f32 %v3152_v34, %v3032_v5 }
 0x3fa   :  { %v3298_v44 = vadd.f32 %v3297_v41, %v3153_v7 }
 0x3fc   :  { %v3395_v63 = vadd.f32 %v3394_v0, %v3298_v44 }
 0x3fd   :  { %v3036_v39 = vpop.f32.mrf.mxu0  ;;  %v3164_v23 = vpop.f32.mrf.mxu1 }
 0x3fe   :  { %3460 = vst [vmem:[#allocation7 + $0xf8] sm:$0xff] %v3395_v63  ;;  %v3037_v24 = vadd.f32 %v3036_v39, %v5342_v14  ;;  %v3301_v27 = vpop.f32.mrf.mxu2 }
 0x3ff   :  { %v3398_v52 = vpop.f32.mrf.mxu3 }
 0x400   :  { %v3159_v2 = vadd.f32 %v3158_v12, %v3037_v24 }
 0x402   :  { %v3302_v49 = vadd.f32 %v3301_v27, %v3159_v2 }
 0x404   :  { %v3399_v42 = vadd.f32 %v3398_v52, %v3302_v49 }
 0x405   :  { %v3041_v29 = vpop.f32.mrf.mxu0  ;;  %v3170_v32 = vpop.f32.mrf.mxu1 }
 0x406   :  { %3464 = vst [vmem:[#allocation7 + $0x118] sm:$0xff] %v3399_v42  ;;  %v3042_v1 = vadd.f32 %v3041_v29, %v5349_v21  ;;  %v3305_v22 = vpop.f32.mrf.mxu2 }
 0x407   :  { %v3402_v59 = vpop.f32.mrf.mxu3 }
 0x408   :  { %v3165_v17 = vadd.f32 %v3164_v23, %v3042_v1 }
 0x40a   :  { %v3306_v33 = vadd.f32 %v3305_v22, %v3165_v17 }
 0x40c   :  { %v3403_v19 = vadd.f32 %v3402_v59, %v3306_v33 }
 0x40d   :  { %v3046_v20 = vpop.f32.mrf.mxu0  ;;  %v3176_v11 = vpop.f32.mrf.mxu1 }
 0x40e   :  { %3468 = vst [vmem:[#allocation7 + $0x138] sm:$0xff] %v3403_v19  ;;  %v3047_v9 = vadd.f32 %v3046_v20, %v5356_v18  ;;  %v3309_v14 = vpop.f32.mrf.mxu2 }
 0x40f   :  { %v3406_v38 = vpop.f32.mrf.mxu3 }
 0x410   :  { %v3171_v36 = vadd.f32 %v3170_v32, %v3047_v9 }
 0x412   :  { %v3310_v54 = vadd.f32 %v3309_v14, %v3171_v36 }
 0x414   :  { %v3407_v25 = vadd.f32 %v3406_v38, %v3310_v54 }
 0x415   :  { %v3051_v57 = vpop.f32.mrf.mxu0  ;;  %v3182_v62 = vpop.f32.mrf.mxu1 }
 0x416   :  { %3472 = vst [vmem:[#allocation7 + $0x158] sm:$0xff] %v3407_v25  ;;  %v3052_v45 = vadd.f32 %v3051_v57, %v5363_v48  ;;  %v3313_v21 = vpop.f32.mrf.mxu2 }
 0x417   :  { %v3410_v47 = vpop.f32.mrf.mxu3 }
 0x418   :  { %v3177_v8 = vadd.f32 %v3176_v11, %v3052_v45 }
 0x41a   :  { %v3314_v46 = vadd.f32 %v3313_v21, %v3177_v8 }
 0x41c   :  { %v3411_v13 = vadd.f32 %v3410_v47, %v3314_v46 }
 0x41d   :  { %v3056_v50 = vpop.f32.mrf.mxu0  ;;  %v3188_v58 = vpop.f32.mrf.mxu1 }
 0x41e   :  { %3476 = vst [vmem:[#allocation7 + $0x178] sm:$0xff] %v3411_v13  ;;  %v3057_v18 = vadd.f32 %v3056_v50, %v5370_v61  ;;  %v3317_v53 = vpop.f32.mrf.mxu2 }
 0x41f   :  { %v3414_v3 = vpop.f32.mrf.mxu3 }
 0x420   :  { %v3183_v51 = vadd.f32 %v3182_v62, %v3057_v18 }
 0x422   :  { %v3318_v35 = vadd.f32 %v3317_v53, %v3183_v51 }
 0x424   :  { %v3415_v31 = vadd.f32 %v3414_v3, %v3318_v35 }
 0x425   :  { %v3061_v16 = vpop.f32.mrf.mxu0  ;;  %v3194_v26 = vpop.f32.mrf.mxu1 }
 0x426   :  { %3480 = vst [vmem:[#allocation7 + $0x198] sm:$0xff] %v3415_v31  ;;  %v3062_v48 = vadd.f32 %v3061_v16, %v5377_v55  ;;  %v3321_v37 = vpop.f32.mrf.mxu2 }
 0x427   :  { %v3418_v60 = vpop.f32.mrf.mxu3 }
 0x428   :  { %v3189_v15 = vadd.f32 %v3188_v58, %v3062_v48 }
 0x42a   :  { %v3322_v34 = vadd.f32 %v3321_v37, %v3189_v15 }
 0x42c   :  { %v3419_v28 = vadd.f32 %v3418_v60, %v3322_v34 }
 0x42d   :  { %v3066_v40 = vpop.f32.mrf.mxu0  ;;  %v3200_v55 = vpop.f32.mrf.mxu1 }
 0x42e   :  { %3484 = vst [vmem:[#allocation7 + $0x1b8] sm:$0xff] %v3419_v28  ;;  %v3067_v61 = vadd.f32 %v3066_v40, %v5384_v6  ;;  %v3325_v56 = vpop.f32.mrf.mxu2 }
 0x42f   :  { %v3422_v10 = vpop.f32.mrf.mxu3 }
 0x430   :  { %v3195_v4 = vadd.f32 %v3194_v26, %v3067_v61 }
 0x432   :  { %v3326_v30 = vadd.f32 %v3325_v56, %v3195_v4 }
 0x434   :  { %v3423_v12 = vadd.f32 %v3422_v10, %v3326_v30 }
 0x435   :  { %v3071_v5 = vpop.f32.mrf.mxu0 }
 0x436   :  { %3488 = vst [vmem:[#allocation7 + $0x1d8] sm:$0xff] %v3423_v12  ;;  %v3072_v41 = vadd.f32 %v3071_v5, %v5391_v43  ;;  %v3329_v7 = vpop.f32.mrf.mxu2 }
 0x437   :  { %v3426_v6 = vpop.f32.mrf.mxu3 }
 0x438   :  { %v3201_v0 = vadd.f32 %v3200_v55, %v3072_v41 }
 0x43a   :  { %v3330_v44 = vadd.f32 %v3329_v7, %v3201_v0 }
 0x43c   :  { %v3427_v63 = vadd.f32 %v3426_v6, %v3330_v44 }
 0x43e   :  { %3492 = vst [vmem:[#allocation7 + $0x1f8] sm:$0xff] %v3427_v63 }
 0x43f   :  { %3505 = dma.vmem_to_hbm [thread:$0]  %s3498_s1, 8192, %s3500_s23, [#allocation4], %s3616_s19, %s3616_s19, %s3617_s20  }
 0x440   :  { %3612 = dma.done.wait [#allocation4], 8192  }
 0x441   :  { %3613 = vsyncadd [#allocation4], 4294959104 }
 0x442   :  { %3510 = vsyncpa [#allocation3], 1 }
 0x443   :  { %3511 = vsyncpa [#allocation6], 1 }
 0x444   :  { %3512 = vsyncpa [#allocation4], 1 }

</bundles_post_ra>
